<compile_context>
chip_gen: v5e
topology: v5e:2x2
jax: 0.10.0
libtpu: 0.0.40
codegen_flags: <defaults>
</compile_context>

<pallas_src>
import functools
import math

import numpy as np
import jax
import jax.numpy as jnp
from jax.experimental import pallas as pl
from jax.experimental.pallas import tpu as pltpu

BF16 = jnp.bfloat16
F32 = jnp.float32
VMEM_LIMIT = 32 * 1024 * 1024


# -----------------------------------------------------------------------------
# In-kernel helpers (all f32 epilogues)
# -----------------------------------------------------------------------------

def _ln(x, g, b, eps=1e-6):
    mu = jnp.mean(x, axis=-1, keepdims=True)
    var = jnp.mean((x - mu) * (x - mu), axis=-1, keepdims=True)
    return (x - mu) * jax.lax.rsqrt(var + eps) * g + b


def _gelu(x):
    # tanh-approx GELU (PyTorch nn.GELU default is erf; tiny numerical difference)
    return 0.5 * x * (1.0 + jnp.tanh(0.7978845608028654 * (x + 0.044715 * x * x * x)))


def _const2(a):
    # Grid-invariant 2-D operand (weights / biases / masks).
    return pl.BlockSpec(a.shape, lambda i: (0, 0))


# -----------------------------------------------------------------------------
# Kernel 1: patch embedding (both streams pre-concatenated) + bias + pos embed
# -----------------------------------------------------------------------------

def _embed_kernel(col_ref, pos_ref, w_ref, b_ref, o_ref):
    col = col_ref[0].astype(BF16)                                  # (Ntot, P)
    acc = jnp.dot(col, w_ref[...], preferred_element_type=F32)     # bf16 MXU, f32 acc
    acc = acc + b_ref[...].astype(F32) + pos_ref[0].astype(F32)
    o_ref[0] = acc.astype(o_ref.dtype)


def patch_embed_tokens(col, pos, w, b):
    B, ntot, p = col.shape
    c = w.shape[1]
    return pl.pallas_call(
        _embed_kernel,
        out_shape=jax.ShapeDtypeStruct((B, ntot, c), BF16),        # bf16 token stream
        grid=(B,),
        in_specs=[
            pl.BlockSpec((1, ntot, p), lambda i: (i, 0, 0)),
            pl.BlockSpec((1, ntot, c), lambda i: (0, 0, 0)),
            _const2(w),
            _const2(b),
        ],
        out_specs=pl.BlockSpec((1, ntot, c), lambda i: (i, 0, 0)),
        compiler_params=pltpu.CompilerParams(
            dimension_semantics=("parallel",), vmem_limit_bytes=VMEM_LIMIT),
    )(col, pos, w, b)


# -----------------------------------------------------------------------------
# Kernel 2: fully fused transformer block (one call per block, grid over batch)
#   LN1 -> QKV -> per-head softmax(QK^T)V -> concat heads -> ONE proj matmul
#   -> residual -> LN2 -> MLP(GELU) -> residual
# -----------------------------------------------------------------------------

def _block_kernel(x_ref, ln1g_ref, ln1b_ref, qkvw_ref, qkvb_ref,
                  projw_ref, projb_ref, ln2g_ref, ln2b_ref,
                  fc1w_ref, fc1b_ref, fc2w_ref, fc2b_ref, o_ref, *, heads):
    x = x_ref[0].astype(F32)                                       # (N, C)
    n_tok, c = x.shape
    dh = c // heads
    scale = 1.0 / math.sqrt(dh)

    # --- attention ---
    h = _ln(x, ln1g_ref[...].astype(F32), ln1b_ref[...].astype(F32))
    qkv = jnp.dot(h.astype(BF16), qkvw_ref[...], preferred_element_type=F32)
    qkv = qkv + qkvb_ref[...].astype(F32)                          # (N, 3C) f32

    # TODO(synk): at real dims (heads=12, dh=64) use a lax.fori_loop over a
    # (heads, N, dh) scratch with 128-padded dh instead of this static unroll.
    head_outs = []
    for hh in range(heads):
        q = (qkv[:, hh * dh:(hh + 1) * dh] * scale).astype(BF16)
        k = qkv[:, c + hh * dh:c + (hh + 1) * dh].astype(BF16)
        v = qkv[:, 2 * c + hh * dh:2 * c + (hh + 1) * dh].astype(BF16)
        s = jnp.einsum('nd,md->nm', q, k, preferred_element_type=F32)   # (N, N)
        s = s - jnp.max(s, axis=-1, keepdims=True)
        e = jnp.exp(s)
        p = e * pl.reciprocal(jnp.sum(e, axis=-1, keepdims=True), approx=True)
        head_outs.append(jnp.dot(p.astype(BF16), v, preferred_element_type=F32))
    attn_cat = jnp.concatenate(head_outs, axis=-1).astype(BF16)    # (N, C)
    attn_out = jnp.dot(attn_cat, projw_ref[...],                   # ONE K=C matmul
                       preferred_element_type=F32)
    y = x + attn_out + projb_ref[...].astype(F32)

    # --- MLP ---
    h2 = _ln(y, ln2g_ref[...].astype(F32), ln2b_ref[...].astype(F32))
    m = jnp.dot(h2.astype(BF16), fc1w_ref[...], preferred_element_type=F32)
    m = _gelu(m + fc1b_ref[...].astype(F32))
    m = jnp.dot(m.astype(BF16), fc2w_ref[...], preferred_element_type=F32)
    m = m + fc2b_ref[...].astype(F32)

    o_ref[0] = (y + m).astype(o_ref.dtype)


def transformer_block(x, p, heads):
    B, n_tok, c = x.shape
    hidden = p["fc1_w"].shape[1]

    flops = B * (2 * n_tok * c * 3 * c          # qkv
                 + 4 * n_tok * n_tok * c        # scores + p@v
                 + 2 * n_tok * c * c            # out proj
                 + 4 * n_tok * c * hidden)      # mlp
    transc = B * (heads * n_tok * n_tok + n_tok * hidden)
    bytes_acc = (2 * B * n_tok * c * 2
                 + (c * 3 * c + c * c + 2 * c * hidden) * 2
                 + (3 * c + 6 * c + hidden) * 4)

    return pl.pallas_call(
        functools.partial(_block_kernel, heads=heads),
        out_shape=jax.ShapeDtypeStruct((B, n_tok, c), BF16),
        grid=(B,),
        in_specs=[
            pl.BlockSpec((1, n_tok, c), lambda i: (i, 0, 0)),
            _const2(p["ln1_g"]), _const2(p["ln1_b"]),
            _const2(p["qkv_w"]), _const2(p["qkv_b"]),
            _const2(p["proj_w"]), _const2(p["proj_b"]),
            _const2(p["ln2_g"]), _const2(p["ln2_b"]),
            _const2(p["fc1_w"]), _const2(p["fc1_b"]),
            _const2(p["fc2_w"]), _const2(p["fc2_b"]),
        ],
        out_specs=pl.BlockSpec((1, n_tok, c), lambda i: (i, 0, 0)),
        compiler_params=pltpu.CompilerParams(
            dimension_semantics=("parallel",), vmem_limit_bytes=VMEM_LIMIT),
        cost_estimate=pl.CostEstimate(flops=int(flops), transcendentals=int(transc),
                                      bytes_accessed=int(bytes_acc)),
    )(x, p["ln1_g"], p["ln1_b"], p["qkv_w"], p["qkv_b"], p["proj_w"], p["proj_b"],
      p["ln2_g"], p["ln2_b"], p["fc1_w"], p["fc1_b"], p["fc2_w"], p["fc2_b"])


# -----------------------------------------------------------------------------
# Kernel 3: fused CENTER head.
#   Backbone final LayerNorm, then a single 3-branch-stacked tower:
#     4 x [ roll-based im2col (hw, 9*cin) -> one matmul -> bias -> ReLU ]
#   then one stacked 1x1 conv -> lane-dense (hw, 8) output written once.
#   conv3x3/stride1/pad1 is realized as 9 pltpu.roll's of the row axis plus a
#   precomputed (hw, 9) 0/1 boundary mask.
# -----------------------------------------------------------------------------

_TAPS = [(dy, dx) for dy in range(3) for dx in range(3)]


def _roll_rows(x, s):
    """out[r] = x[(r + s) mod hw]  (boundary rows are zeroed by the mask)."""
    hw = x.shape[0]
    shift = (-s) % hw
    if shift == 0:
        return x
    return pltpu.roll(x, shift=shift, axis=0)


def _head_kernel(feat_ref, lng_ref, lnb_ref, mask_ref,
                 w0_ref, b0_ref, w1_ref, b1_ref, w2_ref, b2_ref, w3_ref, b3_ref,
                 wf_ref, bf_ref, out_ref, *, feat_w):
    x = _ln(feat_ref[0].astype(F32),
            lng_ref[...].astype(F32), lnb_ref[...].astype(F32))     # (hw, C)
    mask = mask_ref[...].astype(F32)                                # (hw, 9)

    tower_w = [w0_ref, w1_ref, w2_ref, w3_ref]
    tower_b = [b0_ref, b1_ref, b2_ref, b3_ref]

    h = x
    for li in range(4):
        cols = []
        for t, (dy, dx) in enumerate(_TAPS):
            s = (dy - 1) * feat_w + (dx - 1)
            cols.append(_roll_rows(h, s) * mask[:, t:t + 1])        # XLU roll + mask
        slab = jnp.concatenate(cols, axis=-1).astype(BF16)          # (hw, 9*cin)
        h = jnp.maximum(
            jnp.dot(slab, tower_w[li][...], preferred_element_type=F32)
            + tower_b[li][...].astype(F32), 0.0)                    # folded BN + ReLU

    out = jnp.dot(h.astype(BF16), wf_ref[...], preferred_element_type=F32)
    out = out + bf_ref[...].astype(F32)                             # (hw, 8)
    out_ref[0] = out.astype(out_ref.dtype)                          # one dense store


def center_head_raw(head_p, feat_tokens, norm_g, norm_b):
    B, hw, c = feat_tokens.shape
    feat_w = head_p["feat_sz"]

    args = [feat_tokens, norm_g, norm_b, head_p["mask"]]
    in_specs = [pl.BlockSpec((1, hw, c), lambda i: (i, 0, 0)),
                _const2(norm_g), _const2(norm_b), _const2(head_p["mask"])]
    flops = 0
    wbytes = 0
    for wl, bl in zip(head_p["tower_w"], head_p["tower_b"]):
        args += [wl, bl]
        in_specs += [_const2(wl), _const2(bl)]
        flops += 2 * hw * wl.shape[0] * wl.shape[1]
        wbytes += wl.size * 2 + bl.size * 4
    args += [head_p["final_w"], head_p["final_b"]]
    in_specs += [_const2(head_p["final_w"]), _const2(head_p["final_b"])]
    flops += 2 * hw * head_p["final_w"].shape[0] * head_p["final_w"].shape[1]
    wbytes += head_p["final_w"].size * 2 + head_p["final_b"].size * 4
    flops *= B
    bytes_acc = B * hw * c * 2 + B * hw * 8 * 4 + wbytes

    return pl.pallas_call(
        functools.partial(_head_kernel, feat_w=feat_w),
        out_shape=jax.ShapeDtypeStruct((B, hw, 8), F32),
        grid=(B,),
        in_specs=in_specs,
        out_specs=pl.BlockSpec((1, hw, 8), lambda i: (i, 0, 0)),
        compiler_params=pltpu.CompilerParams(
            dimension_semantics=("parallel",), vmem_limit_bytes=VMEM_LIMIT),
        cost_estimate=pl.CostEstimate(flops=int(flops), transcendentals=0,
                                      bytes_accessed=int(bytes_acc)),
    )(*args)


# -----------------------------------------------------------------------------
# Glue: patchify (pure relayout), backbone / head wrappers, bbox decode
# -----------------------------------------------------------------------------

def _patchify(x_nchw, patch):
    B, cin, H, W = x_nchw.shape
    x = jnp.transpose(x_nchw, (0, 2, 3, 1))                        # NHWC
    hp, wp = H // patch, W // patch
    x = x.reshape(B, hp, patch, wp, patch, cin)
    x = jnp.transpose(x, (0, 1, 3, 2, 4, 5)).reshape(B, hp * wp, patch * patch * cin)
    return x


def backbone_forward(params, template_nchw, search_nchw):
    cfg = params["cfg"]
    patch = cfg["patch"]
    z_col = _patchify(template_nchw, patch)                        # (B, Nz, P)
    x_col = _patchify(search_nchw, patch)                          # (B, Nx, P)
    col = jnp.concatenate([z_col, x_col], axis=1)                  # (B, Nz+Nx, P)
    tok = patch_embed_tokens(col, params["pos"], params["patch_w"], params["patch_b"])
    for bp in params["blocks"]:
        tok = transformer_block(tok, bp, cfg["heads"])
    # final LayerNorm is fused into the head kernel
    return tok


def forward_head(params, cat_feature, loader_type="test", is_ot=False, positions=None):
    cfg = params["cfg"]
    feat_sz = cfg["feat_sz"]
    hw = feat_sz * feat_sz
    enc_opt = cat_feature[:, -hw:]                                 # (B, HW, C), pre-norm
    B = enc_opt.shape[0]

    raw = center_head_raw(params["head"], enc_opt, params["norm_g"], params["norm_b"])
    # split the lane-dense slab in plain JAX (tiny); sigmoid on ctr / size
    score_flat = jax.nn.sigmoid(raw[:, :, 0])                      # (B, HW)
    size_m = jax.nn.sigmoid(raw[:, :, 1:3])                        # (B, HW, 2)
    off_m = raw[:, :, 3:5]                                         # (B, HW, 2)

    if positions is not None:
        # OT student path: gather scores at teacher positions.
        s_score = jnp.take_along_axis(score_flat, positions, axis=1)
        return {"s_score": s_score}

    idx = jnp.argmax(score_flat, axis=1)                           # (B,)
    idx_y = (idx // feat_sz).astype(F32)
    idx_x = (idx % feat_sz).astype(F32)
    bidx = jnp.arange(B)
    size_sel = size_m[bidx, idx]                                   # (B, 2)
    off_sel = off_m[bidx, idx]                                     # (B, 2)
    bbox = jnp.stack(
        [(idx_x + off_sel[:, 0]) / feat_sz,
         (idx_y + off_sel[:, 1]) / feat_sz,
         size_sel[:, 0],
         size_sel[:, 1]], axis=1)                                  # (B, 4) cx,cy,w,h
    outputs_coord_new = bbox.reshape(B, 1, 4)                      # Nq = 1

    if not is_ot:
        score_map = score_flat.reshape(B, 1, feat_sz, feat_sz)
        size_map = jnp.transpose(size_m.reshape(B, feat_sz, feat_sz, 2), (0, 3, 1, 2))
        offset_map = jnp.transpose(off_m.reshape(B, feat_sz, feat_sz, 2), (0, 3, 1, 2))
        return {"pred_boxes": outputs_coord_new, "score_map": score_map,
                "size_map": size_map, "offset_map": offset_map}
    else:
        k = min(4, hw)
        t_score, pos_idx = jax.lax.top_k(score_flat, k)            # OT teacher outputs
        return {"t_score": t_score, "positions": pos_idx}


def umdatrack_forward(params, template, search, loader_type="test", is_ot=False,
                      positions=None, bs=64, is_teacher_ot=False):
    x = backbone_forward(params, template, search)
    if loader_type != "train_mix" or is_teacher_ot:
        return forward_head(params, x, loader_type, is_ot, positions)
    else:
        # TODO(synk): 'train_extreme' box-head variant (topk_score path) not modeled.
        out1 = forward_head(params, x[:bs], loader_type, False, None)
        out2 = forward_head(params, x[bs:], loader_type, True, positions)
        return {**out1, **out2}


# -----------------------------------------------------------------------------
# Deterministic synthetic parameter init
# -----------------------------------------------------------------------------

def _build_tap_mask(H, W):
    """(HW, 9) 0/1 mask: mask[r, t] = 1 iff the tap-t neighbor of row r is in-bounds."""
    hw = H * W
    m = np.zeros((hw, 9), np.float32)
    for t, (dy, dx) in enumerate(_TAPS):
        for i in range(H):
            for j in range(W):
                qi, qj = i + dy - 1, j + dx - 1
                if 0 <= qi < H and 0 <= qj < W:
                    m[i * W + j, t] = 1.0
    return jnp.asarray(m)


def init_params(key, embed_dim=32, depth=2, heads=4, mlp_ratio=4, in_chans=3,
                patch=8, tmpl_size=16, search_size=32, head_channel=32):
    keys = iter(jax.random.split(key, 256))

    def w(shape, scale=0.02, dtype=F32):
        return (scale * jax.random.normal(next(keys), shape)).astype(dtype)

    def zeros(shape):
        return jnp.zeros(shape, F32)

    nz = (tmpl_size // patch) ** 2
    nx = (search_size // patch) ** 2
    ntot = nz + nx
    feat_sz = search_size // patch
    P = patch * patch * in_chans
    C = embed_dim
    hidden = mlp_ratio * embed_dim

    params = {
        "cfg": {"patch": patch, "heads": heads, "feat_sz": feat_sz, "embed_dim": C},
        "patch_w": w((P, C), dtype=BF16),
        "patch_b": zeros((1, C)),
        "pos": w((1, ntot, C)),
        "norm_g": jnp.ones((1, C), F32),
        "norm_b": zeros((1, C)),
        "blocks": [],
    }
    for _ in range(depth):
        params["blocks"].append({
            "ln1_g": jnp.ones((1, C), F32), "ln1_b": zeros((1, C)),
            "qkv_w": w((C, 3 * C), dtype=BF16), "qkv_b": zeros((1, 3 * C)),
            "proj_w": w((C, C), dtype=BF16), "proj_b": zeros((1, C)),
            "ln2_g": jnp.ones((1, C), F32), "ln2_b": zeros((1, C)),
            "fc1_w": w((C, hidden), dtype=BF16), "fc1_b": zeros((1, hidden)),
            "fc2_w": w((hidden, C), dtype=BF16), "fc2_b": zeros((1, C)),
        })

    # ------------------------------------------------------------------
    # CENTER head, 3 branches (ctr / size / offset) stacked along lanes.
    #   per-branch channels: [C, ch, ch/2, ch/4, ch/8], 3x3 conv + folded-BN + ReLU
    #   layer 0: shared input -> stacked (9*C, 3*ch)
    #   layers 1-3: block-diagonal over branches -> (9*3*cin, 3*cout)
    #   final 1x1: (3*c_last, 8) -> lanes [ctr | size(2) | offset(2) | pad(3)]
    # ------------------------------------------------------------------
    ch = head_channel
    br = [C, ch, ch // 2, ch // 4, ch // 8]
    rng = np.random.default_rng(0)

    tower_w, tower_b = [], []
    w0 = (0.05 * rng.standard_normal((9 * C, 3 * br[1]))).astype(np.float32)
    b0 = (0.01 * rng.standard_normal((1, 3 * br[1]))).astype(np.float32)
    tower_w.append(jnp.asarray(w0, BF16))
    tower_b.append(jnp.asarray(b0))
    for li in range(1, 4):
        cin_b, cout_b = br[li], br[li + 1]
        wl = np.zeros((9 * 3 * cin_b, 3 * cout_b), np.float32)
        for t in range(9):
            for b in range(3):
                r0 = t * 3 * cin_b + b * cin_b
                wl[r0:r0 + cin_b, b * cout_b:(b + 1) * cout_b] = \
                    0.05 * rng.standard_normal((cin_b, cout_b))
        bl = (0.01 * rng.standard_normal((1, 3 * cout_b))).astype(np.float32)
        tower_w.append(jnp.asarray(wl, BF16))
        tower_b.append(jnp.asarray(bl))

    cl = br[-1]
    wf = np.zeros((3 * cl, 8), np.float32)
    wf[0:cl, 0:1] = 0.05 * rng.standard_normal((cl, 1))            # ctr (1 ch)
    wf[cl:2 * cl, 1:3] = 0.05 * rng.standard_normal((cl, 2))       # size (2 ch)
    wf[2 * cl:3 * cl, 3:5] = 0.05 * rng.standard_normal((cl, 2))   # offset (2 ch)
    bf_ = np.zeros((1, 8), np.float32)
    bf_[0, 0:5] = 0.01 * rng.standard_normal(5)

    params["head"] = {
        "feat_sz": feat_sz,
        "tower_w": tower_w,
        "tower_b": tower_b,
        "final_w": jnp.asarray(wf, BF16),
        "final_b": jnp.asarray(bf_),
        "mask": _build_tap_mask(feat_sz, feat_sz),
    }
    return params


# -----------------------------------------------------------------------------
# Main
# -----------------------------------------------------------------------------

if __name__ == "__main__":
    key = jax.random.PRNGKey(0)
    k_param, k_z, k_x = jax.random.split(key, 3)

    params = init_params(k_param)

    B = 2
    template = jax.random.normal(k_z, (B, 3, 16, 16), dtype=F32)   # NCHW
    search = jax.random.normal(k_x, (B, 3, 32, 32), dtype=F32)     # NCHW

    fwd = jax.jit(lambda t, s: umdatrack_forward(params, t, s, loader_type="test"))
    out = fwd(template, search)
    jax.block_until_ready(out["pred_boxes"])
    jax.block_until_ready(out["score_map"])

    assert out["pred_boxes"].shape == (B, 1, 4)
    assert out["score_map"].shape == (B, 1, 4, 4)
    assert out["size_map"].shape == (B, 2, 4, 4)
    assert out["offset_map"].shape == (B, 2, 4, 4)
    assert bool(jnp.all(jnp.isfinite(out["pred_boxes"])))
    print("KERNEL_OK")
</pallas_src>

<mosaic_0001>
module attributes {stable_mosaic.version = 11 : i64} {
  func.func @_embed_kernel(%arg0: i32, %arg1: memref<1x20x192xf32, #tpu.memory_space<vmem>>, %arg2: memref<1x20x32xf32, #tpu.memory_space<vmem>>, %arg3: memref<192x32xbf16, #tpu.memory_space<vmem>>, %arg4: memref<1x32xf32, #tpu.memory_space<vmem>>, %arg5: memref<1x20x32xbf16, #tpu.memory_space<vmem>>) attributes {dimension_semantics = [#tpu.dimension_semantics<parallel>], iteration_bounds = array<i64: 2>, scalar_prefetch = 0 : i64, scratch_operands = 0 : i64, tpu.core_type = #tpu.core_type<tc>, window_params = [{transform_indices = @transform_0, window_bounds = array<i64: 1, 20, 192>}, {pipeline_mode = #tpu.pipeline_mode<synchronous>, transform_indices = @transform_1, window_bounds = array<i64: 1, 20, 32>}, {pipeline_mode = #tpu.pipeline_mode<synchronous>, transform_indices = @transform_2, window_bounds = array<i64: 192, 32>}, {pipeline_mode = #tpu.pipeline_mode<synchronous>, transform_indices = @transform_3, window_bounds = array<i64: 1, 32>}, {transform_indices = @transform_4, window_bounds = array<i64: 1, 20, 32>}]} {
    %c0 = arith.constant 0 : index
    %c0_0 = arith.constant 0 : index
    %c0_1 = arith.constant 0 : index
    %0 = vector.load %arg1[%c0, %c0_0, %c0_1] : memref<1x20x192xf32, #tpu.memory_space<vmem>>, vector<1x20x192xf32>
    %1 = vector.shape_cast %0 : vector<1x20x192xf32> to vector<20x192xf32>
    %2 = arith.truncf %1 : vector<20x192xf32> to vector<20x192xbf16>
    %c0_2 = arith.constant 0 : index
    %c0_3 = arith.constant 0 : index
    %3 = vector.load %arg3[%c0_2, %c0_3] : memref<192x32xbf16, #tpu.memory_space<vmem>>, vector<192x32xbf16>
    %cst = arith.constant dense<0.000000e+00> : vector<20x32xf32>
    %4 = tpu.matmul %2, %3, %cst {dimension_numbers = #tpu.dot_dimension_numbers<[1], [0], [0], [1], [0, 0, 1, 1], [], []>} : vector<20x192xbf16>, vector<192x32xbf16>, vector<20x32xf32> -> vector<20x32xf32>
    %c0_4 = arith.constant 0 : index
    %c0_5 = arith.constant 0 : index
    %5 = vector.load %arg4[%c0_4, %c0_5] : memref<1x32xf32, #tpu.memory_space<vmem>>, vector<1x32xf32>
    %6 = vector.broadcast %5 : vector<1x32xf32> to vector<20x32xf32>
    %7 = arith.addf %4, %6 : vector<20x32xf32>
    %c0_6 = arith.constant 0 : index
    %c0_7 = arith.constant 0 : index
    %c0_8 = arith.constant 0 : index
    %8 = vector.load %arg2[%c0_6, %c0_7, %c0_8] : memref<1x20x32xf32, #tpu.memory_space<vmem>>, vector<1x20x32xf32>
    %9 = vector.shape_cast %8 : vector<1x20x32xf32> to vector<20x32xf32>
    %10 = arith.addf %7, %9 : vector<20x32xf32>
    %11 = arith.truncf %10 : vector<20x32xf32> to vector<20x32xbf16>
    %c0_9 = arith.constant 0 : index
    %c0_10 = arith.constant 0 : index
    %c0_11 = arith.constant 0 : index
    %12 = vector.load %arg5[%c0_9, %c0_10, %c0_11] : memref<1x20x32xbf16, #tpu.memory_space<vmem>>, vector<1x20x32xbf16>
    %13 = vector.shape_cast %12 : vector<1x20x32xbf16> to vector<20x32xbf16>
    %14 = vector.shape_cast %11 : vector<20x32xbf16> to vector<1x20x32xbf16>
    tpu.vector_store %arg5[%c0_9, %c0_10, %c0_11], %14 {strides = array<i32>} : memref<1x20x32xbf16, #tpu.memory_space<vmem>>, vector<1x20x32xbf16>,
    return
  }
  func.func @transform_0(%arg0: i32) -> (i32, i32, i32) {
    %c0_i32 = arith.constant 0 : i32
    %c0_i32_0 = arith.constant 0 : i32
    %c0_i32_1 = arith.constant 0 : i32
    return %arg0, %c0_i32, %c0_i32_0 : i32, i32, i32
  }
  func.func @transform_1(%arg0: i32) -> (i32, i32, i32) {
    %c0_i32 = arith.constant 0 : i32
    %c0_i32_0 = arith.constant 0 : i32
    %c0_i32_1 = arith.constant 0 : i32
    %c0_i32_2 = arith.constant 0 : i32
    return %c0_i32, %c0_i32_0, %c0_i32_1 : i32, i32, i32
  }
  func.func @transform_2(%arg0: i32) -> (i32, i32) {
    %c0_i32 = arith.constant 0 : i32
    %c0_i32_0 = arith.constant 0 : i32
    %c0_i32_1 = arith.constant 0 : i32
    return %c0_i32, %c0_i32_0 : i32, i32
  }
  func.func @transform_3(%arg0: i32) -> (i32, i32) {
    %c0_i32 = arith.constant 0 : i32
    %c0_i32_0 = arith.constant 0 : i32
    %c0_i32_1 = arith.constant 0 : i32
    return %c0_i32, %c0_i32_0 : i32, i32
  }
  func.func @transform_4(%arg0: i32) -> (i32, i32, i32) {
    %c0_i32 = arith.constant 0 : i32
    %c0_i32_0 = arith.constant 0 : i32
    %c0_i32_1 = arith.constant 0 : i32
    return %arg0, %c0_i32, %c0_i32_0 : i32, i32, i32
  }
}

module attributes {stable_mosaic.version = 11 : i64} {
  func.func @_block_kernel(%arg0: i32, %arg1: memref<1x20x32xbf16, #tpu.memory_space<vmem>>, %arg2: memref<1x32xf32, #tpu.memory_space<vmem>>, %arg3: memref<1x32xf32, #tpu.memory_space<vmem>>, %arg4: memref<32x96xbf16, #tpu.memory_space<vmem>>, %arg5: memref<1x96xf32, #tpu.memory_space<vmem>>, %arg6: memref<32x32xbf16, #tpu.memory_space<vmem>>, %arg7: memref<1x32xf32, #tpu.memory_space<vmem>>, %arg8: memref<1x32xf32, #tpu.memory_space<vmem>>, %arg9: memref<1x32xf32, #tpu.memory_space<vmem>>, %arg10: memref<32x128xbf16, #tpu.memory_space<vmem>>, %arg11: memref<1x128xf32, #tpu.memory_space<vmem>>, %arg12: memref<128x32xbf16, #tpu.memory_space<vmem>>, %arg13: memref<1x32xf32, #tpu.memory_space<vmem>>, %arg14: memref<1x20x32xbf16, #tpu.memory_space<vmem>>) attributes {dimension_semantics = [#tpu.dimension_semantics<parallel>], iteration_bounds = array<i64: 2>, scalar_prefetch = 0 : i64, scratch_operands = 0 : i64, tpu.core_type = #tpu.core_type<tc>, window_params = [{transform_indices = @transform_0, window_bounds = array<i64: 1, 20, 32>}, {pipeline_mode = #tpu.pipeline_mode<synchronous>, transform_indices = @transform_1, window_bounds = array<i64: 1, 32>}, {pipeline_mode = #tpu.pipeline_mode<synchronous>, transform_indices = @transform_2, window_bounds = array<i64: 1, 32>}, {pipeline_mode = #tpu.pipeline_mode<synchronous>, transform_indices = @transform_3, window_bounds = array<i64: 32, 96>}, {pipeline_mode = #tpu.pipeline_mode<synchronous>, transform_indices = @transform_4, window_bounds = array<i64: 1, 96>}, {pipeline_mode = #tpu.pipeline_mode<synchronous>, transform_indices = @transform_5, window_bounds = array<i64: 32, 32>}, {pipeline_mode = #tpu.pipeline_mode<synchronous>, transform_indices = @transform_6, window_bounds = array<i64: 1, 32>}, {pipeline_mode = #tpu.pipeline_mode<synchronous>, transform_indices = @transform_7, window_bounds = array<i64: 1, 32>}, {pipeline_mode = #tpu.pipeline_mode<synchronous>, transform_indices = @transform_8, window_bounds = array<i64: 1, 32>}, {pipeline_mode = #tpu.pipeline_mode<synchronous>, transform_indices = @transform_9, window_bounds = array<i64: 32, 128>}, {pipeline_mode = #tpu.pipeline_mode<synchronous>, transform_indices = @transform_10, window_bounds = array<i64: 1, 128>}, {pipeline_mode = #tpu.pipeline_mode<synchronous>, transform_indices = @transform_11, window_bounds = array<i64: 128, 32>}, {pipeline_mode = #tpu.pipeline_mode<synchronous>, transform_indices = @transform_12, window_bounds = array<i64: 1, 32>}, {transform_indices = @transform_13, window_bounds = array<i64: 1, 20, 32>}]} {
    %c0 = arith.constant 0 : index
    %c0_0 = arith.constant 0 : index
    %c0_1 = arith.constant 0 : index
    %0 = vector.load %arg1[%c0, %c0_0, %c0_1] : memref<1x20x32xbf16, #tpu.memory_space<vmem>>, vector<1x20x32xbf16>
    %1 = vector.shape_cast %0 : vector<1x20x32xbf16> to vector<20x32xbf16>
    %2 = arith.extf %1 : vector<20x32xbf16> to vector<20x32xf32>
    %c0_2 = arith.constant 0 : index
    %c0_3 = arith.constant 0 : index
    %3 = vector.load %arg2[%c0_2, %c0_3] : memref<1x32xf32, #tpu.memory_space<vmem>>, vector<1x32xf32>
    %c0_4 = arith.constant 0 : index
    %c0_5 = arith.constant 0 : index
    %4 = vector.load %arg3[%c0_4, %c0_5] : memref<1x32xf32, #tpu.memory_space<vmem>>, vector<1x32xf32>
    %cst = arith.constant dense<0.000000e+00> : vector<20xf32>
    %5 = vector.multi_reduction <add>, %2, %cst [1] : vector<20x32xf32> to vector<20xf32>
    %6 = vector.shape_cast %5 : vector<20xf32> to vector<20x1xf32>
    %cst_6 = arith.constant 3.200000e+01 : f32
    %7 = vector.broadcast %cst_6 : f32 to vector<20x1xf32>
    %8 = arith.divf %6, %7 : vector<20x1xf32>
    %9 = vector.broadcast %8 : vector<20x1xf32> to vector<20x32xf32>
    %10 = arith.subf %2, %9 : vector<20x32xf32>
    %11 = vector.broadcast %8 : vector<20x1xf32> to vector<20x32xf32>
    %12 = arith.subf %2, %11 : vector<20x32xf32>
    %13 = arith.mulf %10, %12 : vector<20x32xf32>
    %cst_7 = arith.constant dense<0.000000e+00> : vector<20xf32>
    %14 = vector.multi_reduction <add>, %13, %cst_7 [1] : vector<20x32xf32> to vector<20xf32>
    %15 = vector.shape_cast %14 : vector<20xf32> to vector<20x1xf32>
    %cst_8 = arith.constant 3.200000e+01 : f32
    %16 = vector.broadcast %cst_8 : f32 to vector<20x1xf32>
    %17 = arith.divf %15, %16 : vector<20x1xf32>
    %18 = vector.broadcast %8 : vector<20x1xf32> to vector<20x32xf32>
    %19 = arith.subf %2, %18 : vector<20x32xf32>
    %cst_9 = arith.constant 9.99999997E-7 : f32
    %20 = vector.broadcast %cst_9 : f32 to vector<20x1xf32>
    %21 = arith.addf %17, %20 : vector<20x1xf32>
    %22 = math.rsqrt %21 : vector<20x1xf32>
    %23 = vector.broadcast %22 : vector<20x1xf32> to vector<20x32xf32>
    %24 = arith.mulf %19, %23 : vector<20x32xf32>
    %25 = vector.broadcast %3 : vector<1x32xf32> to vector<20x32xf32>
    %26 = arith.mulf %24, %25 : vector<20x32xf32>
    %27 = vector.broadcast %4 : vector<1x32xf32> to vector<20x32xf32>
    %28 = arith.addf %26, %27 : vector<20x32xf32>
    %29 = arith.truncf %28 : vector<20x32xf32> to vector<20x32xbf16>
    %c0_10 = arith.constant 0 : index
    %c0_11 = arith.constant 0 : index
    %30 = vector.load %arg4[%c0_10, %c0_11] : memref<32x96xbf16, #tpu.memory_space<vmem>>, vector<32x96xbf16>
    %cst_12 = arith.constant dense<0.000000e+00> : vector<20x96xf32>
    %31 = tpu.matmul %29, %30, %cst_12 {dimension_numbers = #tpu.dot_dimension_numbers<[1], [0], [0], [1], [0, 0, 1, 1], [], []>} : vector<20x32xbf16>, vector<32x96xbf16>, vector<20x96xf32> -> vector<20x96xf32>
    %c0_13 = arith.constant 0 : index
    %c0_14 = arith.constant 0 : index
    %32 = vector.load %arg5[%c0_13, %c0_14] : memref<1x96xf32, #tpu.memory_space<vmem>>, vector<1x96xf32>
    %33 = vector.broadcast %32 : vector<1x96xf32> to vector<20x96xf32>
    %34 = arith.addf %31, %33 : vector<20x96xf32>
    %35 = vector.extract_strided_slice %34 {offsets = [0, 0], sizes = [20, 8], strides = [1, 1]} : vector<20x96xf32> to vector<20x8xf32>
    %cst_15 = arith.constant 0.353553385 : f32
    %36 = vector.broadcast %cst_15 : f32 to vector<20x8xf32>
    %37 = arith.mulf %35, %36 : vector<20x8xf32>
    %38 = arith.truncf %37 : vector<20x8xf32> to vector<20x8xbf16>
    %39 = vector.extract_strided_slice %34 {offsets = [0, 32], sizes = [20, 8], strides = [1, 1]} : vector<20x96xf32> to vector<20x8xf32>
    %40 = arith.truncf %39 : vector<20x8xf32> to vector<20x8xbf16>
    %41 = vector.extract_strided_slice %34 {offsets = [0, 64], sizes = [20, 8], strides = [1, 1]} : vector<20x96xf32> to vector<20x8xf32>
    %42 = arith.truncf %41 : vector<20x8xf32> to vector<20x8xbf16>
    "tpu.trace_start"() <{level = 10 : i32, message = "nd,md->nm"}> : () -> ()
    %cst_16 = arith.constant dense<0.000000e+00> : vector<20x20xf32>
    %43 = tpu.matmul %38, %40, %cst_16 {dimension_numbers = #tpu.dot_dimension_numbers<[1], [1], [0], [0], [0, 0, 1, 0], [], []>} : vector<20x8xbf16>, vector<20x8xbf16>, vector<20x20xf32> -> vector<20x20xf32>
    "tpu.trace_stop"() : () -> ()
    %cst_17 = arith.constant dense<0xFF800000> : vector<20xf32>
    %44 = vector.multi_reduction <maximumf>, %43, %cst_17 [1] : vector<20x20xf32> to vector<20xf32>
    %45 = vector.shape_cast %44 : vector<20xf32> to vector<20x1xf32>
    %46 = vector.broadcast %45 : vector<20x1xf32> to vector<20x20xf32>
    %47 = arith.subf %43, %46 : vector<20x20xf32>
    %48 = math.exp %47 : vector<20x20xf32>
    %cst_18 = arith.constant dense<0.000000e+00> : vector<20xf32>
    %49 = vector.multi_reduction <add>, %48, %cst_18 [1] : vector<20x20xf32> to vector<20xf32>
    %50 = vector.shape_cast %49 : vector<20xf32> to vector<20x1xf32>
    %51 = tpu.reciprocal %50 {approx = true} : vector<20x1xf32> -> vector<20x1xf32>
    %52 = vector.broadcast %51 : vector<20x1xf32> to vector<20x20xf32>
    %53 = arith.mulf %48, %52 : vector<20x20xf32>
    %54 = arith.truncf %53 : vector<20x20xf32> to vector<20x20xbf16>
    %cst_19 = arith.constant dense<0.000000e+00> : vector<20x8xf32>
    %55 = tpu.matmul %54, %42, %cst_19 {dimension_numbers = #tpu.dot_dimension_numbers<[1], [0], [0], [1], [0, 0, 1, 1], [], []>} : vector<20x20xbf16>, vector<20x8xbf16>, vector<20x8xf32> -> vector<20x8xf32>
    %56 = vector.extract_strided_slice %34 {offsets = [0, 8], sizes = [20, 8], strides = [1, 1]} : vector<20x96xf32> to vector<20x8xf32>
    %cst_20 = arith.constant 0.353553385 : f32
    %57 = vector.broadcast %cst_20 : f32 to vector<20x8xf32>
    %58 = arith.mulf %56, %57 : vector<20x8xf32>
    %59 = arith.truncf %58 : vector<20x8xf32> to vector<20x8xbf16>
    %60 = vector.extract_strided_slice %34 {offsets = [0, 40], sizes = [20, 8], strides = [1, 1]} : vector<20x96xf32> to vector<20x8xf32>
    %61 = arith.truncf %60 : vector<20x8xf32> to vector<20x8xbf16>
    %62 = vector.extract_strided_slice %34 {offsets = [0, 72], sizes = [20, 8], strides = [1, 1]} : vector<20x96xf32> to vector<20x8xf32>
    %63 = arith.truncf %62 : vector<20x8xf32> to vector<20x8xbf16>
    "tpu.trace_start"() <{level = 10 : i32, message = "nd,md->nm"}> : () -> ()
    %cst_21 = arith.constant dense<0.000000e+00> : vector<20x20xf32>
    %64 = tpu.matmul %59, %61, %cst_21 {dimension_numbers = #tpu.dot_dimension_numbers<[1], [1], [0], [0], [0, 0, 1, 0], [], []>} : vector<20x8xbf16>, vector<20x8xbf16>, vector<20x20xf32> -> vector<20x20xf32>
    "tpu.trace_stop"() : () -> ()
    %cst_22 = arith.constant dense<0xFF800000> : vector<20xf32>
    %65 = vector.multi_reduction <maximumf>, %64, %cst_22 [1] : vector<20x20xf32> to vector<20xf32>
    %66 = vector.shape_cast %65 : vector<20xf32> to vector<20x1xf32>
    %67 = vector.broadcast %66 : vector<20x1xf32> to vector<20x20xf32>
    %68 = arith.subf %64, %67 : vector<20x20xf32>
    %69 = math.exp %68 : vector<20x20xf32>
    %cst_23 = arith.constant dense<0.000000e+00> : vector<20xf32>
    %70 = vector.multi_reduction <add>, %69, %cst_23 [1] : vector<20x20xf32> to vector<20xf32>
    %71 = vector.shape_cast %70 : vector<20xf32> to vector<20x1xf32>
    %72 = tpu.reciprocal %71 {approx = true} : vector<20x1xf32> -> vector<20x1xf32>
    %73 = vector.broadcast %72 : vector<20x1xf32> to vector<20x20xf32>
    %74 = arith.mulf %69, %73 : vector<20x20xf32>
    %75 = arith.truncf %74 : vector<20x20xf32> to vector<20x20xbf16>
    %cst_24 = arith.constant dense<0.000000e+00> : vector<20x8xf32>
    %76 = tpu.matmul %75, %63, %cst_24 {dimension_numbers = #tpu.dot_dimension_numbers<[1], [0], [0], [1], [0, 0, 1, 1], [], []>} : vector<20x20xbf16>, vector<20x8xbf16>, vector<20x8xf32> -> vector<20x8xf32>
    %77 = vector.extract_strided_slice %34 {offsets = [0, 16], sizes = [20, 8], strides = [1, 1]} : vector<20x96xf32> to vector<20x8xf32>
    %cst_25 = arith.constant 0.353553385 : f32
    %78 = vector.broadcast %cst_25 : f32 to vector<20x8xf32>
    %79 = arith.mulf %77, %78 : vector<20x8xf32>
    %80 = arith.truncf %79 : vector<20x8xf32> to vector<20x8xbf16>
    %81 = vector.extract_strided_slice %34 {offsets = [0, 48], sizes = [20, 8], strides = [1, 1]} : vector<20x96xf32> to vector<20x8xf32>
    %82 = arith.truncf %81 : vector<20x8xf32> to vector<20x8xbf16>
    %83 = vector.extract_strided_slice %34 {offsets = [0, 80], sizes = [20, 8], strides = [1, 1]} : vector<20x96xf32> to vector<20x8xf32>
    %84 = arith.truncf %83 : vector<20x8xf32> to vector<20x8xbf16>
    "tpu.trace_start"() <{level = 10 : i32, message = "nd,md->nm"}> : () -> ()
    %cst_26 = arith.constant dense<0.000000e+00> : vector<20x20xf32>
    %85 = tpu.matmul %80, %82, %cst_26 {dimension_numbers = #tpu.dot_dimension_numbers<[1], [1], [0], [0], [0, 0, 1, 0], [], []>} : vector<20x8xbf16>, vector<20x8xbf16>, vector<20x20xf32> -> vector<20x20xf32>
    "tpu.trace_stop"() : () -> ()
    %cst_27 = arith.constant dense<0xFF800000> : vector<20xf32>
    %86 = vector.multi_reduction <maximumf>, %85, %cst_27 [1] : vector<20x20xf32> to vector<20xf32>
    %87 = vector.shape_cast %86 : vector<20xf32> to vector<20x1xf32>
    %88 = vector.broadcast %87 : vector<20x1xf32> to vector<20x20xf32>
    %89 = arith.subf %85, %88 : vector<20x20xf32>
    %90 = math.exp %89 : vector<20x20xf32>
    %cst_28 = arith.constant dense<0.000000e+00> : vector<20xf32>
    %91 = vector.multi_reduction <add>, %90, %cst_28 [1] : vector<20x20xf32> to vector<20xf32>
    %92 = vector.shape_cast %91 : vector<20xf32> to vector<20x1xf32>
    %93 = tpu.reciprocal %92 {approx = true} : vector<20x1xf32> -> vector<20x1xf32>
    %94 = vector.broadcast %93 : vector<20x1xf32> to vector<20x20xf32>
    %95 = arith.mulf %90, %94 : vector<20x20xf32>
    %96 = arith.truncf %95 : vector<20x20xf32> to vector<20x20xbf16>
    %cst_29 = arith.constant dense<0.000000e+00> : vector<20x8xf32>
    %97 = tpu.matmul %96, %84, %cst_29 {dimension_numbers = #tpu.dot_dimension_numbers<[1], [0], [0], [1], [0, 0, 1, 1], [], []>} : vector<20x20xbf16>, vector<20x8xbf16>, vector<20x8xf32> -> vector<20x8xf32>
    %98 = vector.extract_strided_slice %34 {offsets = [0, 24], sizes = [20, 8], strides = [1, 1]} : vector<20x96xf32> to vector<20x8xf32>
    %cst_30 = arith.constant 0.353553385 : f32
    %99 = vector.broadcast %cst_30 : f32 to vector<20x8xf32>
    %100 = arith.mulf %98, %99 : vector<20x8xf32>
    %101 = arith.truncf %100 : vector<20x8xf32> to vector<20x8xbf16>
    %102 = vector.extract_strided_slice %34 {offsets = [0, 56], sizes = [20, 8], strides = [1, 1]} : vector<20x96xf32> to vector<20x8xf32>
    %103 = arith.truncf %102 : vector<20x8xf32> to vector<20x8xbf16>
    %104 = vector.extract_strided_slice %34 {offsets = [0, 88], sizes = [20, 8], strides = [1, 1]} : vector<20x96xf32> to vector<20x8xf32>
    %105 = arith.truncf %104 : vector<20x8xf32> to vector<20x8xbf16>
    "tpu.trace_start"() <{level = 10 : i32, message = "nd,md->nm"}> : () -> ()
    %cst_31 = arith.constant dense<0.000000e+00> : vector<20x20xf32>
    %106 = tpu.matmul %101, %103, %cst_31 {dimension_numbers = #tpu.dot_dimension_numbers<[1], [1], [0], [0], [0, 0, 1, 0], [], []>} : vector<20x8xbf16>, vector<20x8xbf16>, vector<20x20xf32> -> vector<20x20xf32>
    "tpu.trace_stop"() : () -> ()
    %cst_32 = arith.constant dense<0xFF800000> : vector<20xf32>
    %107 = vector.multi_reduction <maximumf>, %106, %cst_32 [1] : vector<20x20xf32> to vector<20xf32>
    %108 = vector.shape_cast %107 : vector<20xf32> to vector<20x1xf32>
    %109 = vector.broadcast %108 : vector<20x1xf32> to vector<20x20xf32>
    %110 = arith.subf %106, %109 : vector<20x20xf32>
    %111 = math.exp %110 : vector<20x20xf32>
    %cst_33 = arith.constant dense<0.000000e+00> : vector<20xf32>
    %112 = vector.multi_reduction <add>, %111, %cst_33 [1] : vector<20x20xf32> to vector<20xf32>
    %113 = vector.shape_cast %112 : vector<20xf32> to vector<20x1xf32>
    %114 = tpu.reciprocal %113 {approx = true} : vector<20x1xf32> -> vector<20x1xf32>
    %115 = vector.broadcast %114 : vector<20x1xf32> to vector<20x20xf32>
    %116 = arith.mulf %111, %115 : vector<20x20xf32>
    %117 = arith.truncf %116 : vector<20x20xf32> to vector<20x20xbf16>
    %cst_34 = arith.constant dense<0.000000e+00> : vector<20x8xf32>
    %118 = tpu.matmul %117, %105, %cst_34 {dimension_numbers = #tpu.dot_dimension_numbers<[1], [0], [0], [1], [0, 0, 1, 1], [], []>} : vector<20x20xbf16>, vector<20x8xbf16>, vector<20x8xf32> -> vector<20x8xf32>
    %119 = tpu.concatenate %55, %76, %97, %118 in 1 : vector<20x8xf32>, vector<20x8xf32>, vector<20x8xf32>, vector<20x8xf32> -> vector<20x32xf32>
    %120 = arith.truncf %119 : vector<20x32xf32> to vector<20x32xbf16>
    %c0_35 = arith.constant 0 : index
    %c0_36 = arith.constant 0 : index
    %121 = vector.load %arg6[%c0_35, %c0_36] : memref<32x32xbf16, #tpu.memory_space<vmem>>, vector<32x32xbf16>
    %cst_37 = arith.constant dense<0.000000e+00> : vector<20x32xf32>
    %122 = tpu.matmul %120, %121, %cst_37 {dimension_numbers = #tpu.dot_dimension_numbers<[1], [0], [0], [1], [0, 0, 1, 1], [], []>} : vector<20x32xbf16>, vector<32x32xbf16>, vector<20x32xf32> -> vector<20x32xf32>
    %123 = arith.addf %2, %122 : vector<20x32xf32>
    %c0_38 = arith.constant 0 : index
    %c0_39 = arith.constant 0 : index
    %124 = vector.load %arg7[%c0_38, %c0_39] : memref<1x32xf32, #tpu.memory_space<vmem>>, vector<1x32xf32>
    %125 = vector.broadcast %124 : vector<1x32xf32> to vector<20x32xf32>
    %126 = arith.addf %123, %125 : vector<20x32xf32>
    %c0_40 = arith.constant 0 : index
    %c0_41 = arith.constant 0 : index
    %127 = vector.load %arg8[%c0_40, %c0_41] : memref<1x32xf32, #tpu.memory_space<vmem>>, vector<1x32xf32>
    %c0_42 = arith.constant 0 : index
    %c0_43 = arith.constant 0 : index
    %128 = vector.load %arg9[%c0_42, %c0_43] : memref<1x32xf32, #tpu.memory_space<vmem>>, vector<1x32xf32>
    %cst_44 = arith.constant dense<0.000000e+00> : vector<20xf32>
    %129 = vector.multi_reduction <add>, %126, %cst_44 [1] : vector<20x32xf32> to vector<20xf32>
    %130 = vector.shape_cast %129 : vector<20xf32> to vector<20x1xf32>
    %cst_45 = arith.constant 3.200000e+01 : f32
    %131 = vector.broadcast %cst_45 : f32 to vector<20x1xf32>
    %132 = arith.divf %130, %131 : vector<20x1xf32>
    %133 = vector.broadcast %132 : vector<20x1xf32> to vector<20x32xf32>
    %134 = arith.subf %126, %133 : vector<20x32xf32>
    %135 = vector.broadcast %132 : vector<20x1xf32> to vector<20x32xf32>
    %136 = arith.subf %126, %135 : vector<20x32xf32>
    %137 = arith.mulf %134, %136 : vector<20x32xf32>
    %cst_46 = arith.constant dense<0.000000e+00> : vector<20xf32>
    %138 = vector.multi_reduction <add>, %137, %cst_46 [1] : vector<20x32xf32> to vector<20xf32>
    %139 = vector.shape_cast %138 : vector<20xf32> to vector<20x1xf32>
    %cst_47 = arith.constant 3.200000e+01 : f32
    %140 = vector.broadcast %cst_47 : f32 to vector<20x1xf32>
    %141 = arith.divf %139, %140 : vector<20x1xf32>
    %142 = vector.broadcast %132 : vector<20x1xf32> to vector<20x32xf32>
    %143 = arith.subf %126, %142 : vector<20x32xf32>
    %cst_48 = arith.constant 9.99999997E-7 : f32
    %144 = vector.broadcast %cst_48 : f32 to vector<20x1xf32>
    %145 = arith.addf %141, %144 : vector<20x1xf32>
    %146 = math.rsqrt %145 : vector<20x1xf32>
    %147 = vector.broadcast %146 : vector<20x1xf32> to vector<20x32xf32>
    %148 = arith.mulf %143, %147 : vector<20x32xf32>
    %149 = vector.broadcast %127 : vector<1x32xf32> to vector<20x32xf32>
    %150 = arith.mulf %148, %149 : vector<20x32xf32>
    %151 = vector.broadcast %128 : vector<1x32xf32> to vector<20x32xf32>
    %152 = arith.addf %150, %151 : vector<20x32xf32>
    %153 = arith.truncf %152 : vector<20x32xf32> to vector<20x32xbf16>
    %c0_49 = arith.constant 0 : index
    %c0_50 = arith.constant 0 : index
    %154 = vector.load %arg10[%c0_49, %c0_50] : memref<32x128xbf16, #tpu.memory_space<vmem>>, vector<32x128xbf16>
    %cst_51 = arith.constant dense<0.000000e+00> : vector<20x128xf32>
    %155 = tpu.matmul %153, %154, %cst_51 {dimension_numbers = #tpu.dot_dimension_numbers<[1], [0], [0], [1], [0, 0, 1, 1], [], []>} : vector<20x32xbf16>, vector<32x128xbf16>, vector<20x128xf32> -> vector<20x128xf32>
    %c0_52 = arith.constant 0 : index
    %c0_53 = arith.constant 0 : index
    %156 = vector.load %arg11[%c0_52, %c0_53] : memref<1x128xf32, #tpu.memory_space<vmem>>, vector<1x128xf32>
    %157 = vector.broadcast %156 : vector<1x128xf32> to vector<20x128xf32>
    %158 = arith.addf %155, %157 : vector<20x128xf32>
    %cst_54 = arith.constant 5.000000e-01 : f32
    %159 = vector.broadcast %cst_54 : f32 to vector<20x128xf32>
    %160 = arith.mulf %159, %158 : vector<20x128xf32>
    %cst_55 = arith.constant 4.471500e-02 : f32
    %161 = vector.broadcast %cst_55 : f32 to vector<20x128xf32>
    %162 = arith.mulf %161, %158 : vector<20x128xf32>
    %163 = arith.mulf %162, %158 : vector<20x128xf32>
    %164 = arith.mulf %163, %158 : vector<20x128xf32>
    %165 = arith.addf %158, %164 : vector<20x128xf32>
    %cst_56 = arith.constant 0.797884583 : f32
    %166 = vector.broadcast %cst_56 : f32 to vector<20x128xf32>
    %167 = arith.mulf %166, %165 : vector<20x128xf32>
    %168 = math.tanh %167 : vector<20x128xf32>
    %cst_57 = arith.constant 1.000000e+00 : f32
    %169 = vector.broadcast %cst_57 : f32 to vector<20x128xf32>
    %170 = arith.addf %169, %168 : vector<20x128xf32>
    %171 = arith.mulf %160, %170 : vector<20x128xf32>
    %172 = arith.truncf %171 : vector<20x128xf32> to vector<20x128xbf16>
    %c0_58 = arith.constant 0 : index
    %c0_59 = arith.constant 0 : index
    %173 = vector.load %arg12[%c0_58, %c0_59] : memref<128x32xbf16, #tpu.memory_space<vmem>>, vector<128x32xbf16>
    %cst_60 = arith.constant dense<0.000000e+00> : vector<20x32xf32>
    %174 = tpu.matmul %172, %173, %cst_60 {dimension_numbers = #tpu.dot_dimension_numbers<[1], [0], [0], [1], [0, 0, 1, 1], [], []>} : vector<20x128xbf16>, vector<128x32xbf16>, vector<20x32xf32> -> vector<20x32xf32>
    %c0_61 = arith.constant 0 : index
    %c0_62 = arith.constant 0 : index
    %175 = vector.load %arg13[%c0_61, %c0_62] : memref<1x32xf32, #tpu.memory_space<vmem>>, vector<1x32xf32>
    %176 = vector.broadcast %175 : vector<1x32xf32> to vector<20x32xf32>
    %177 = arith.addf %174, %176 : vector<20x32xf32>
    %178 = arith.addf %126, %177 : vector<20x32xf32>
    %179 = arith.truncf %178 : vector<20x32xf32> to vector<20x32xbf16>
    %c0_63 = arith.constant 0 : index
    %c0_64 = arith.constant 0 : index
    %c0_65 = arith.constant 0 : index
    %180 = vector.load %arg14[%c0_63, %c0_64, %c0_65] : memref<1x20x32xbf16, #tpu.memory_space<vmem>>, vector<1x20x32xbf16>
    %181 = vector.shape_cast %180 : vector<1x20x32xbf16> to vector<20x32xbf16>
    %182 = vector.shape_cast %179 : vector<20x32xbf16> to vector<1x20x32xbf16>
    tpu.vector_store %arg14[%c0_63, %c0_64, %c0_65], %182 {strides = array<i32>} : memref<1x20x32xbf16, #tpu.memory_space<vmem>>, vector<1x20x32xbf16>,
    return
  }
  func.func @transform_0(%arg0: i32) -> (i32, i32, i32) {
    %c0_i32 = arith.constant 0 : i32
    %c0_i32_0 = arith.constant 0 : i32
    %c0_i32_1 = arith.constant 0 : i32
    return %arg0, %c0_i32, %c0_i32_0 : i32, i32, i32
  }
  func.func @transform_1(%arg0: i32) -> (i32, i32) {
    %c0_i32 = arith.constant 0 : i32
    %c0_i32_0 = arith.constant 0 : i32
    %c0_i32_1 = arith.constant 0 : i32
    return %c0_i32, %c0_i32_0 : i32, i32
  }
  func.func @transform_2(%arg0: i32) -> (i32, i32) {
    %c0_i32 = arith.constant 0 : i32
    %c0_i32_0 = arith.constant 0 : i32
    %c0_i32_1 = arith.constant 0 : i32
    return %c0_i32, %c0_i32_0 : i32, i32
  }
  func.func @transform_3(%arg0: i32) -> (i32, i32) {
    %c0_i32 = arith.constant 0 : i32
    %c0_i32_0 = arith.constant 0 : i32
    %c0_i32_1 = arith.constant 0 : i32
    return %c0_i32, %c0_i32_0 : i32, i32
  }
  func.func @transform_4(%arg0: i32) -> (i32, i32) {
    %c0_i32 = arith.constant 0 : i32
    %c0_i32_0 = arith.constant 0 : i32
    %c0_i32_1 = arith.constant 0 : i32
    return %c0_i32, %c0_i32_0 : i32, i32
  }
  func.func @transform_5(%arg0: i32) -> (i32, i32) {
    %c0_i32 = arith.constant 0 : i32
    %c0_i32_0 = arith.constant 0 : i32
    %c0_i32_1 = arith.constant 0 : i32
    return %c0_i32, %c0_i32_0 : i32, i32
  }
  func.func @transform_6(%arg0: i32) -> (i32, i32) {
    %c0_i32 = arith.constant 0 : i32
    %c0_i32_0 = arith.constant 0 : i32
    %c0_i32_1 = arith.constant 0 : i32
    return %c0_i32, %c0_i32_0 : i32, i32
  }
  func.func @transform_7(%arg0: i32) -> (i32, i32) {
    %c0_i32 = arith.constant 0 : i32
    %c0_i32_0 = arith.constant 0 : i32
    %c0_i32_1 = arith.constant 0 : i32
    return %c0_i32, %c0_i32_0 : i32, i32
  }
  func.func @transform_8(%arg0: i32) -> (i32, i32) {
    %c0_i32 = arith.constant 0 : i32
    %c0_i32_0 = arith.constant 0 : i32
    %c0_i32_1 = arith.constant 0 : i32
    return %c0_i32, %c0_i32_0 : i32, i32
  }
  func.func @transform_9(%arg0: i32) -> (i32, i32) {
    %c0_i32 = arith.constant 0 : i32
    %c0_i32_0 = arith.constant 0 : i32
    %c0_i32_1 = arith.constant 0 : i32
    return %c0_i32, %c0_i32_0 : i32, i32
  }
  func.func @transform_10(%arg0: i32) -> (i32, i32) {
    %c0_i32 = arith.constant 0 : i32
    %c0_i32_0 = arith.constant 0 : i32
    %c0_i32_1 = arith.constant 0 : i32
    return %c0_i32, %c0_i32_0 : i32, i32
  }
  func.func @transform_11(%arg0: i32) -> (i32, i32) {
    %c0_i32 = arith.constant 0 : i32
    %c0_i32_0 = arith.constant 0 : i32
    %c0_i32_1 = arith.constant 0 : i32
    return %c0_i32, %c0_i32_0 : i32, i32
  }
  func.func @transform_12(%arg0: i32) -> (i32, i32) {
    %c0_i32 = arith.constant 0 : i32
    %c0_i32_0 = arith.constant 0 : i32
    %c0_i32_1 = arith.constant 0 : i32
    return %c0_i32, %c0_i32_0 : i32, i32
  }
  func.func @transform_13(%arg0: i32) -> (i32, i32, i32) {
    %c0_i32 = arith.constant 0 : i32
    %c0_i32_0 = arith.constant 0 : i32
    %c0_i32_1 = arith.constant 0 : i32
    return %arg0, %c0_i32, %c0_i32_0 : i32, i32, i32
  }
}

module attributes {stable_mosaic.version = 11 : i64} {
  func.func @_head_kernel(%arg0: i32, %arg1: memref<1x16x32xbf16, #tpu.memory_space<vmem>>, %arg2: memref<1x32xf32, #tpu.memory_space<vmem>>, %arg3: memref<1x32xf32, #tpu.memory_space<vmem>>, %arg4: memref<16x9xf32, #tpu.memory_space<vmem>>, %arg5: memref<288x96xbf16, #tpu.memory_space<vmem>>, %arg6: memref<1x96xf32, #tpu.memory_space<vmem>>, %arg7: memref<864x48xbf16, #tpu.memory_space<vmem>>, %arg8: memref<1x48xf32, #tpu.memory_space<vmem>>, %arg9: memref<432x24xbf16, #tpu.memory_space<vmem>>, %arg10: memref<1x24xf32, #tpu.memory_space<vmem>>, %arg11: memref<216x12xbf16, #tpu.memory_space<vmem>>, %arg12: memref<1x12xf32, #tpu.memory_space<vmem>>, %arg13: memref<12x8xbf16, #tpu.memory_space<vmem>>, %arg14: memref<1x8xf32, #tpu.memory_space<vmem>>, %arg15: memref<1x16x8xf32, #tpu.memory_space<vmem>>) attributes {dimension_semantics = [#tpu.dimension_semantics<parallel>], iteration_bounds = array<i64: 2>, scalar_prefetch = 0 : i64, scratch_operands = 0 : i64, tpu.core_type = #tpu.core_type<tc>, window_params = [{transform_indices = @transform_0, window_bounds = array<i64: 1, 16, 32>}, {pipeline_mode = #tpu.pipeline_mode<synchronous>, transform_indices = @transform_1, window_bounds = array<i64: 1, 32>}, {pipeline_mode = #tpu.pipeline_mode<synchronous>, transform_indices = @transform_2, window_bounds = array<i64: 1, 32>}, {pipeline_mode = #tpu.pipeline_mode<synchronous>, transform_indices = @transform_3, window_bounds = array<i64: 16, 9>}, {pipeline_mode = #tpu.pipeline_mode<synchronous>, transform_indices = @transform_4, window_bounds = array<i64: 288, 96>}, {pipeline_mode = #tpu.pipeline_mode<synchronous>, transform_indices = @transform_5, window_bounds = array<i64: 1, 96>}, {pipeline_mode = #tpu.pipeline_mode<synchronous>, transform_indices = @transform_6, window_bounds = array<i64: 864, 48>}, {pipeline_mode = #tpu.pipeline_mode<synchronous>, transform_indices = @transform_7, window_bounds = array<i64: 1, 48>}, {pipeline_mode = #tpu.pipeline_mode<synchronous>, transform_indices = @transform_8, window_bounds = array<i64: 432, 24>}, {pipeline_mode = #tpu.pipeline_mode<synchronous>, transform_indices = @transform_9, window_bounds = array<i64: 1, 24>}, {pipeline_mode = #tpu.pipeline_mode<synchronous>, transform_indices = @transform_10, window_bounds = array<i64: 216, 12>}, {pipeline_mode = #tpu.pipeline_mode<synchronous>, transform_indices = @transform_11, window_bounds = array<i64: 1, 12>}, {pipeline_mode = #tpu.pipeline_mode<synchronous>, transform_indices = @transform_12, window_bounds = array<i64: 12, 8>}, {pipeline_mode = #tpu.pipeline_mode<synchronous>, transform_indices = @transform_13, window_bounds = array<i64: 1, 8>}, {transform_indices = @transform_14, window_bounds = array<i64: 1, 16, 8>}]} {
    %c0 = arith.constant 0 : index
    %c0_0 = arith.constant 0 : index
    %c0_1 = arith.constant 0 : index
    %0 = vector.load %arg1[%c0, %c0_0, %c0_1] : memref<1x16x32xbf16, #tpu.memory_space<vmem>>, vector<1x16x32xbf16>
    %1 = vector.shape_cast %0 : vector<1x16x32xbf16> to vector<16x32xbf16>
    %2 = arith.extf %1 : vector<16x32xbf16> to vector<16x32xf32>
    %c0_2 = arith.constant 0 : index
    %c0_3 = arith.constant 0 : index
    %3 = vector.load %arg2[%c0_2, %c0_3] : memref<1x32xf32, #tpu.memory_space<vmem>>, vector<1x32xf32>
    %c0_4 = arith.constant 0 : index
    %c0_5 = arith.constant 0 : index
    %4 = vector.load %arg3[%c0_4, %c0_5] : memref<1x32xf32, #tpu.memory_space<vmem>>, vector<1x32xf32>
    %cst = arith.constant dense<0.000000e+00> : vector<16xf32>
    %5 = vector.multi_reduction <add>, %2, %cst [1] : vector<16x32xf32> to vector<16xf32>
    %6 = vector.shape_cast %5 : vector<16xf32> to vector<16x1xf32>
    %cst_6 = arith.constant 3.200000e+01 : f32
    %7 = vector.broadcast %cst_6 : f32 to vector<16x1xf32>
    %8 = arith.divf %6, %7 : vector<16x1xf32>
    %9 = vector.broadcast %8 : vector<16x1xf32> to vector<16x32xf32>
    %10 = arith.subf %2, %9 : vector<16x32xf32>
    %11 = vector.broadcast %8 : vector<16x1xf32> to vector<16x32xf32>
    %12 = arith.subf %2, %11 : vector<16x32xf32>
    %13 = arith.mulf %10, %12 : vector<16x32xf32>
    %cst_7 = arith.constant dense<0.000000e+00> : vector<16xf32>
    %14 = vector.multi_reduction <add>, %13, %cst_7 [1] : vector<16x32xf32> to vector<16xf32>
    %15 = vector.shape_cast %14 : vector<16xf32> to vector<16x1xf32>
    %cst_8 = arith.constant 3.200000e+01 : f32
    %16 = vector.broadcast %cst_8 : f32 to vector<16x1xf32>
    %17 = arith.divf %15, %16 : vector<16x1xf32>
    %18 = vector.broadcast %8 : vector<16x1xf32> to vector<16x32xf32>
    %19 = arith.subf %2, %18 : vector<16x32xf32>
    %cst_9 = arith.constant 9.99999997E-7 : f32
    %20 = vector.broadcast %cst_9 : f32 to vector<16x1xf32>
    %21 = arith.addf %17, %20 : vector<16x1xf32>
    %22 = math.rsqrt %21 : vector<16x1xf32>
    %23 = vector.broadcast %22 : vector<16x1xf32> to vector<16x32xf32>
    %24 = arith.mulf %19, %23 : vector<16x32xf32>
    %25 = vector.broadcast %3 : vector<1x32xf32> to vector<16x32xf32>
    %26 = arith.mulf %24, %25 : vector<16x32xf32>
    %27 = vector.broadcast %4 : vector<1x32xf32> to vector<16x32xf32>
    %28 = arith.addf %26, %27 : vector<16x32xf32>
    %c0_10 = arith.constant 0 : index
    %c0_11 = arith.constant 0 : index
    %29 = vector.load %arg4[%c0_10, %c0_11] : memref<16x9xf32, #tpu.memory_space<vmem>>, vector<16x9xf32>
    %c5_i32 = arith.constant 5 : i32
    %30 = tpu.dynamic_rotate %28 by %c5_i32 dim 0 : vector<16x32xf32>, i32 -> vector<16x32xf32>
    %31 = vector.extract_strided_slice %29 {offsets = [0, 0], sizes = [16, 1], strides = [1, 1]} : vector<16x9xf32> to vector<16x1xf32>
    %32 = vector.broadcast %31 : vector<16x1xf32> to vector<16x32xf32>
    %33 = arith.mulf %30, %32 : vector<16x32xf32>
    %c4_i32 = arith.constant 4 : i32
    %34 = tpu.dynamic_rotate %28 by %c4_i32 dim 0 : vector<16x32xf32>, i32 -> vector<16x32xf32>
    %35 = vector.extract_strided_slice %29 {offsets = [0, 1], sizes = [16, 1], strides = [1, 1]} : vector<16x9xf32> to vector<16x1xf32>
    %36 = vector.broadcast %35 : vector<16x1xf32> to vector<16x32xf32>
    %37 = arith.mulf %34, %36 : vector<16x32xf32>
    %c3_i32 = arith.constant 3 : i32
    %38 = tpu.dynamic_rotate %28 by %c3_i32 dim 0 : vector<16x32xf32>, i32 -> vector<16x32xf32>
    %39 = vector.extract_strided_slice %29 {offsets = [0, 2], sizes = [16, 1], strides = [1, 1]} : vector<16x9xf32> to vector<16x1xf32>
    %40 = vector.broadcast %39 : vector<16x1xf32> to vector<16x32xf32>
    %41 = arith.mulf %38, %40 : vector<16x32xf32>
    %c1_i32 = arith.constant 1 : i32
    %42 = tpu.dynamic_rotate %28 by %c1_i32 dim 0 : vector<16x32xf32>, i32 -> vector<16x32xf32>
    %43 = vector.extract_strided_slice %29 {offsets = [0, 3], sizes = [16, 1], strides = [1, 1]} : vector<16x9xf32> to vector<16x1xf32>
    %44 = vector.broadcast %43 : vector<16x1xf32> to vector<16x32xf32>
    %45 = arith.mulf %42, %44 : vector<16x32xf32>
    %46 = vector.extract_strided_slice %29 {offsets = [0, 4], sizes = [16, 1], strides = [1, 1]} : vector<16x9xf32> to vector<16x1xf32>
    %47 = vector.broadcast %46 : vector<16x1xf32> to vector<16x32xf32>
    %48 = arith.mulf %28, %47 : vector<16x32xf32>
    %c15_i32 = arith.constant 15 : i32
    %49 = tpu.dynamic_rotate %28 by %c15_i32 dim 0 : vector<16x32xf32>, i32 -> vector<16x32xf32>
    %50 = vector.extract_strided_slice %29 {offsets = [0, 5], sizes = [16, 1], strides = [1, 1]} : vector<16x9xf32> to vector<16x1xf32>
    %51 = vector.broadcast %50 : vector<16x1xf32> to vector<16x32xf32>
    %52 = arith.mulf %49, %51 : vector<16x32xf32>
    %c13_i32 = arith.constant 13 : i32
    %53 = tpu.dynamic_rotate %28 by %c13_i32 dim 0 : vector<16x32xf32>, i32 -> vector<16x32xf32>
    %54 = vector.extract_strided_slice %29 {offsets = [0, 6], sizes = [16, 1], strides = [1, 1]} : vector<16x9xf32> to vector<16x1xf32>
    %55 = vector.broadcast %54 : vector<16x1xf32> to vector<16x32xf32>
    %56 = arith.mulf %53, %55 : vector<16x32xf32>
    %c12_i32 = arith.constant 12 : i32
    %57 = tpu.dynamic_rotate %28 by %c12_i32 dim 0 : vector<16x32xf32>, i32 -> vector<16x32xf32>
    %58 = vector.extract_strided_slice %29 {offsets = [0, 7], sizes = [16, 1], strides = [1, 1]} : vector<16x9xf32> to vector<16x1xf32>
    %59 = vector.broadcast %58 : vector<16x1xf32> to vector<16x32xf32>
    %60 = arith.mulf %57, %59 : vector<16x32xf32>
    %c11_i32 = arith.constant 11 : i32
    %61 = tpu.dynamic_rotate %28 by %c11_i32 dim 0 : vector<16x32xf32>, i32 -> vector<16x32xf32>
    %62 = vector.extract_strided_slice %29 {offsets = [0, 8], sizes = [16, 1], strides = [1, 1]} : vector<16x9xf32> to vector<16x1xf32>
    %63 = vector.broadcast %62 : vector<16x1xf32> to vector<16x32xf32>
    %64 = arith.mulf %61, %63 : vector<16x32xf32>
    %65 = tpu.concatenate %33, %37, %41, %45, %48, %52, %56, %60, %64 in 1 : vector<16x32xf32>, vector<16x32xf32>, vector<16x32xf32>, vector<16x32xf32>, vector<16x32xf32>, vector<16x32xf32>, vector<16x32xf32>, vector<16x32xf32>, vector<16x32xf32> -> vector<16x288xf32>
    %66 = arith.truncf %65 : vector<16x288xf32> to vector<16x288xbf16>
    %c0_12 = arith.constant 0 : index
    %c0_13 = arith.constant 0 : index
    %67 = vector.load %arg5[%c0_12, %c0_13] : memref<288x96xbf16, #tpu.memory_space<vmem>>, vector<288x96xbf16>
    %cst_14 = arith.constant dense<0.000000e+00> : vector<16x96xf32>
    %68 = tpu.matmul %66, %67, %cst_14 {dimension_numbers = #tpu.dot_dimension_numbers<[1], [0], [0], [1], [0, 0, 1, 1], [], []>} : vector<16x288xbf16>, vector<288x96xbf16>, vector<16x96xf32> -> vector<16x96xf32>
    %c0_15 = arith.constant 0 : index
    %c0_16 = arith.constant 0 : index
    %69 = vector.load %arg6[%c0_15, %c0_16] : memref<1x96xf32, #tpu.memory_space<vmem>>, vector<1x96xf32>
    %70 = vector.broadcast %69 : vector<1x96xf32> to vector<16x96xf32>
    %71 = arith.addf %68, %70 : vector<16x96xf32>
    %cst_17 = arith.constant 0.000000e+00 : f32
    %72 = vector.broadcast %cst_17 : f32 to vector<16x96xf32>
    %73 = arith.maximumf %71, %72 : vector<16x96xf32>
    %c5_i32_18 = arith.constant 5 : i32
    %74 = tpu.dynamic_rotate %73 by %c5_i32_18 dim 0 : vector<16x96xf32>, i32 -> vector<16x96xf32>
    %75 = vector.extract_strided_slice %29 {offsets = [0, 0], sizes = [16, 1], strides = [1, 1]} : vector<16x9xf32> to vector<16x1xf32>
    %76 = vector.broadcast %75 : vector<16x1xf32> to vector<16x96xf32>
    %77 = arith.mulf %74, %76 : vector<16x96xf32>
    %c4_i32_19 = arith.constant 4 : i32
    %78 = tpu.dynamic_rotate %73 by %c4_i32_19 dim 0 : vector<16x96xf32>, i32 -> vector<16x96xf32>
    %79 = vector.extract_strided_slice %29 {offsets = [0, 1], sizes = [16, 1], strides = [1, 1]} : vector<16x9xf32> to vector<16x1xf32>
    %80 = vector.broadcast %79 : vector<16x1xf32> to vector<16x96xf32>
    %81 = arith.mulf %78, %80 : vector<16x96xf32>
    %c3_i32_20 = arith.constant 3 : i32
    %82 = tpu.dynamic_rotate %73 by %c3_i32_20 dim 0 : vector<16x96xf32>, i32 -> vector<16x96xf32>
    %83 = vector.extract_strided_slice %29 {offsets = [0, 2], sizes = [16, 1], strides = [1, 1]} : vector<16x9xf32> to vector<16x1xf32>
    %84 = vector.broadcast %83 : vector<16x1xf32> to vector<16x96xf32>
    %85 = arith.mulf %82, %84 : vector<16x96xf32>
    %c1_i32_21 = arith.constant 1 : i32
    %86 = tpu.dynamic_rotate %73 by %c1_i32_21 dim 0 : vector<16x96xf32>, i32 -> vector<16x96xf32>
    %87 = vector.extract_strided_slice %29 {offsets = [0, 3], sizes = [16, 1], strides = [1, 1]} : vector<16x9xf32> to vector<16x1xf32>
    %88 = vector.broadcast %87 : vector<16x1xf32> to vector<16x96xf32>
    %89 = arith.mulf %86, %88 : vector<16x96xf32>
    %90 = vector.extract_strided_slice %29 {offsets = [0, 4], sizes = [16, 1], strides = [1, 1]} : vector<16x9xf32> to vector<16x1xf32>
    %91 = vector.broadcast %90 : vector<16x1xf32> to vector<16x96xf32>
    %92 = arith.mulf %73, %91 : vector<16x96xf32>
    %c15_i32_22 = arith.constant 15 : i32
    %93 = tpu.dynamic_rotate %73 by %c15_i32_22 dim 0 : vector<16x96xf32>, i32 -> vector<16x96xf32>
    %94 = vector.extract_strided_slice %29 {offsets = [0, 5], sizes = [16, 1], strides = [1, 1]} : vector<16x9xf32> to vector<16x1xf32>
    %95 = vector.broadcast %94 : vector<16x1xf32> to vector<16x96xf32>
    %96 = arith.mulf %93, %95 : vector<16x96xf32>
    %c13_i32_23 = arith.constant 13 : i32
    %97 = tpu.dynamic_rotate %73 by %c13_i32_23 dim 0 : vector<16x96xf32>, i32 -> vector<16x96xf32>
    %98 = vector.extract_strided_slice %29 {offsets = [0, 6], sizes = [16, 1], strides = [1, 1]} : vector<16x9xf32> to vector<16x1xf32>
    %99 = vector.broadcast %98 : vector<16x1xf32> to vector<16x96xf32>
    %100 = arith.mulf %97, %99 : vector<16x96xf32>
    %c12_i32_24 = arith.constant 12 : i32
    %101 = tpu.dynamic_rotate %73 by %c12_i32_24 dim 0 : vector<16x96xf32>, i32 -> vector<16x96xf32>
    %102 = vector.extract_strided_slice %29 {offsets = [0, 7], sizes = [16, 1], strides = [1, 1]} : vector<16x9xf32> to vector<16x1xf32>
    %103 = vector.broadcast %102 : vector<16x1xf32> to vector<16x96xf32>
    %104 = arith.mulf %101, %103 : vector<16x96xf32>
    %c11_i32_25 = arith.constant 11 : i32
    %105 = tpu.dynamic_rotate %73 by %c11_i32_25 dim 0 : vector<16x96xf32>, i32 -> vector<16x96xf32>
    %106 = vector.extract_strided_slice %29 {offsets = [0, 8], sizes = [16, 1], strides = [1, 1]} : vector<16x9xf32> to vector<16x1xf32>
    %107 = vector.broadcast %106 : vector<16x1xf32> to vector<16x96xf32>
    %108 = arith.mulf %105, %107 : vector<16x96xf32>
    %109 = tpu.concatenate %77, %81, %85, %89, %92, %96, %100, %104, %108 in 1 : vector<16x96xf32>, vector<16x96xf32>, vector<16x96xf32>, vector<16x96xf32>, vector<16x96xf32>, vector<16x96xf32>, vector<16x96xf32>, vector<16x96xf32>, vector<16x96xf32> -> vector<16x864xf32>
    %110 = arith.truncf %109 : vector<16x864xf32> to vector<16x864xbf16>
    %c0_26 = arith.constant 0 : index
    %c0_27 = arith.constant 0 : index
    %111 = vector.load %arg7[%c0_26, %c0_27] : memref<864x48xbf16, #tpu.memory_space<vmem>>, vector<864x48xbf16>
    %cst_28 = arith.constant dense<0.000000e+00> : vector<16x48xf32>
    %112 = tpu.matmul %110, %111, %cst_28 {dimension_numbers = #tpu.dot_dimension_numbers<[1], [0], [0], [1], [0, 0, 1, 1], [], []>} : vector<16x864xbf16>, vector<864x48xbf16>, vector<16x48xf32> -> vector<16x48xf32>
    %c0_29 = arith.constant 0 : index
    %c0_30 = arith.constant 0 : index
    %113 = vector.load %arg8[%c0_29, %c0_30] : memref<1x48xf32, #tpu.memory_space<vmem>>, vector<1x48xf32>
    %114 = vector.broadcast %113 : vector<1x48xf32> to vector<16x48xf32>
    %115 = arith.addf %112, %114 : vector<16x48xf32>
    %cst_31 = arith.constant 0.000000e+00 : f32
    %116 = vector.broadcast %cst_31 : f32 to vector<16x48xf32>
    %117 = arith.maximumf %115, %116 : vector<16x48xf32>
    %c5_i32_32 = arith.constant 5 : i32
    %118 = tpu.dynamic_rotate %117 by %c5_i32_32 dim 0 : vector<16x48xf32>, i32 -> vector<16x48xf32>
    %119 = vector.extract_strided_slice %29 {offsets = [0, 0], sizes = [16, 1], strides = [1, 1]} : vector<16x9xf32> to vector<16x1xf32>
    %120 = vector.broadcast %119 : vector<16x1xf32> to vector<16x48xf32>
    %121 = arith.mulf %118, %120 : vector<16x48xf32>
    %c4_i32_33 = arith.constant 4 : i32
    %122 = tpu.dynamic_rotate %117 by %c4_i32_33 dim 0 : vector<16x48xf32>, i32 -> vector<16x48xf32>
    %123 = vector.extract_strided_slice %29 {offsets = [0, 1], sizes = [16, 1], strides = [1, 1]} : vector<16x9xf32> to vector<16x1xf32>
    %124 = vector.broadcast %123 : vector<16x1xf32> to vector<16x48xf32>
    %125 = arith.mulf %122, %124 : vector<16x48xf32>
    %c3_i32_34 = arith.constant 3 : i32
    %126 = tpu.dynamic_rotate %117 by %c3_i32_34 dim 0 : vector<16x48xf32>, i32 -> vector<16x48xf32>
    %127 = vector.extract_strided_slice %29 {offsets = [0, 2], sizes = [16, 1], strides = [1, 1]} : vector<16x9xf32> to vector<16x1xf32>
    %128 = vector.broadcast %127 : vector<16x1xf32> to vector<16x48xf32>
    %129 = arith.mulf %126, %128 : vector<16x48xf32>
    %c1_i32_35 = arith.constant 1 : i32
    %130 = tpu.dynamic_rotate %117 by %c1_i32_35 dim 0 : vector<16x48xf32>, i32 -> vector<16x48xf32>
    %131 = vector.extract_strided_slice %29 {offsets = [0, 3], sizes = [16, 1], strides = [1, 1]} : vector<16x9xf32> to vector<16x1xf32>
    %132 = vector.broadcast %131 : vector<16x1xf32> to vector<16x48xf32>
    %133 = arith.mulf %130, %132 : vector<16x48xf32>
    %134 = vector.extract_strided_slice %29 {offsets = [0, 4], sizes = [16, 1], strides = [1, 1]} : vector<16x9xf32> to vector<16x1xf32>
    %135 = vector.broadcast %134 : vector<16x1xf32> to vector<16x48xf32>
    %136 = arith.mulf %117, %135 : vector<16x48xf32>
    %c15_i32_36 = arith.constant 15 : i32
    %137 = tpu.dynamic_rotate %117 by %c15_i32_36 dim 0 : vector<16x48xf32>, i32 -> vector<16x48xf32>
    %138 = vector.extract_strided_slice %29 {offsets = [0, 5], sizes = [16, 1], strides = [1, 1]} : vector<16x9xf32> to vector<16x1xf32>
    %139 = vector.broadcast %138 : vector<16x1xf32> to vector<16x48xf32>
    %140 = arith.mulf %137, %139 : vector<16x48xf32>
    %c13_i32_37 = arith.constant 13 : i32
    %141 = tpu.dynamic_rotate %117 by %c13_i32_37 dim 0 : vector<16x48xf32>, i32 -> vector<16x48xf32>
    %142 = vector.extract_strided_slice %29 {offsets = [0, 6], sizes = [16, 1], strides = [1, 1]} : vector<16x9xf32> to vector<16x1xf32>
    %143 = vector.broadcast %142 : vector<16x1xf32> to vector<16x48xf32>
    %144 = arith.mulf %141, %143 : vector<16x48xf32>
    %c12_i32_38 = arith.constant 12 : i32
    %145 = tpu.dynamic_rotate %117 by %c12_i32_38 dim 0 : vector<16x48xf32>, i32 -> vector<16x48xf32>
    %146 = vector.extract_strided_slice %29 {offsets = [0, 7], sizes = [16, 1], strides = [1, 1]} : vector<16x9xf32> to vector<16x1xf32>
    %147 = vector.broadcast %146 : vector<16x1xf32> to vector<16x48xf32>
    %148 = arith.mulf %145, %147 : vector<16x48xf32>
    %c11_i32_39 = arith.constant 11 : i32
    %149 = tpu.dynamic_rotate %117 by %c11_i32_39 dim 0 : vector<16x48xf32>, i32 -> vector<16x48xf32>
    %150 = vector.extract_strided_slice %29 {offsets = [0, 8], sizes = [16, 1], strides = [1, 1]} : vector<16x9xf32> to vector<16x1xf32>
    %151 = vector.broadcast %150 : vector<16x1xf32> to vector<16x48xf32>
    %152 = arith.mulf %149, %151 : vector<16x48xf32>
    %153 = tpu.concatenate %121, %125, %129, %133, %136, %140, %144, %148, %152 in 1 : vector<16x48xf32>, vector<16x48xf32>, vector<16x48xf32>, vector<16x48xf32>, vector<16x48xf32>, vector<16x48xf32>, vector<16x48xf32>, vector<16x48xf32>, vector<16x48xf32> -> vector<16x432xf32>
    %154 = arith.truncf %153 : vector<16x432xf32> to vector<16x432xbf16>
    %c0_40 = arith.constant 0 : index
    %c0_41 = arith.constant 0 : index
    %155 = vector.load %arg9[%c0_40, %c0_41] : memref<432x24xbf16, #tpu.memory_space<vmem>>, vector<432x24xbf16>
    %cst_42 = arith.constant dense<0.000000e+00> : vector<16x24xf32>
    %156 = tpu.matmul %154, %155, %cst_42 {dimension_numbers = #tpu.dot_dimension_numbers<[1], [0], [0], [1], [0, 0, 1, 1], [], []>} : vector<16x432xbf16>, vector<432x24xbf16>, vector<16x24xf32> -> vector<16x24xf32>
    %c0_43 = arith.constant 0 : index
    %c0_44 = arith.constant 0 : index
    %157 = vector.load %arg10[%c0_43, %c0_44] : memref<1x24xf32, #tpu.memory_space<vmem>>, vector<1x24xf32>
    %158 = vector.broadcast %157 : vector<1x24xf32> to vector<16x24xf32>
    %159 = arith.addf %156, %158 : vector<16x24xf32>
    %cst_45 = arith.constant 0.000000e+00 : f32
    %160 = vector.broadcast %cst_45 : f32 to vector<16x24xf32>
    %161 = arith.maximumf %159, %160 : vector<16x24xf32>
    %c5_i32_46 = arith.constant 5 : i32
    %162 = tpu.dynamic_rotate %161 by %c5_i32_46 dim 0 : vector<16x24xf32>, i32 -> vector<16x24xf32>
    %163 = vector.extract_strided_slice %29 {offsets = [0, 0], sizes = [16, 1], strides = [1, 1]} : vector<16x9xf32> to vector<16x1xf32>
    %164 = vector.broadcast %163 : vector<16x1xf32> to vector<16x24xf32>
    %165 = arith.mulf %162, %164 : vector<16x24xf32>
    %c4_i32_47 = arith.constant 4 : i32
    %166 = tpu.dynamic_rotate %161 by %c4_i32_47 dim 0 : vector<16x24xf32>, i32 -> vector<16x24xf32>
    %167 = vector.extract_strided_slice %29 {offsets = [0, 1], sizes = [16, 1], strides = [1, 1]} : vector<16x9xf32> to vector<16x1xf32>
    %168 = vector.broadcast %167 : vector<16x1xf32> to vector<16x24xf32>
    %169 = arith.mulf %166, %168 : vector<16x24xf32>
    %c3_i32_48 = arith.constant 3 : i32
    %170 = tpu.dynamic_rotate %161 by %c3_i32_48 dim 0 : vector<16x24xf32>, i32 -> vector<16x24xf32>
    %171 = vector.extract_strided_slice %29 {offsets = [0, 2], sizes = [16, 1], strides = [1, 1]} : vector<16x9xf32> to vector<16x1xf32>
    %172 = vector.broadcast %171 : vector<16x1xf32> to vector<16x24xf32>
    %173 = arith.mulf %170, %172 : vector<16x24xf32>
    %c1_i32_49 = arith.constant 1 : i32
    %174 = tpu.dynamic_rotate %161 by %c1_i32_49 dim 0 : vector<16x24xf32>, i32 -> vector<16x24xf32>
    %175 = vector.extract_strided_slice %29 {offsets = [0, 3], sizes = [16, 1], strides = [1, 1]} : vector<16x9xf32> to vector<16x1xf32>
    %176 = vector.broadcast %175 : vector<16x1xf32> to vector<16x24xf32>
    %177 = arith.mulf %174, %176 : vector<16x24xf32>
    %178 = vector.extract_strided_slice %29 {offsets = [0, 4], sizes = [16, 1], strides = [1, 1]} : vector<16x9xf32> to vector<16x1xf32>
    %179 = vector.broadcast %178 : vector<16x1xf32> to vector<16x24xf32>
    %180 = arith.mulf %161, %179 : vector<16x24xf32>
    %c15_i32_50 = arith.constant 15 : i32
    %181 = tpu.dynamic_rotate %161 by %c15_i32_50 dim 0 : vector<16x24xf32>, i32 -> vector<16x24xf32>
    %182 = vector.extract_strided_slice %29 {offsets = [0, 5], sizes = [16, 1], strides = [1, 1]} : vector<16x9xf32> to vector<16x1xf32>
    %183 = vector.broadcast %182 : vector<16x1xf32> to vector<16x24xf32>
    %184 = arith.mulf %181, %183 : vector<16x24xf32>
    %c13_i32_51 = arith.constant 13 : i32
    %185 = tpu.dynamic_rotate %161 by %c13_i32_51 dim 0 : vector<16x24xf32>, i32 -> vector<16x24xf32>
    %186 = vector.extract_strided_slice %29 {offsets = [0, 6], sizes = [16, 1], strides = [1, 1]} : vector<16x9xf32> to vector<16x1xf32>
    %187 = vector.broadcast %186 : vector<16x1xf32> to vector<16x24xf32>
    %188 = arith.mulf %185, %187 : vector<16x24xf32>
    %c12_i32_52 = arith.constant 12 : i32
    %189 = tpu.dynamic_rotate %161 by %c12_i32_52 dim 0 : vector<16x24xf32>, i32 -> vector<16x24xf32>
    %190 = vector.extract_strided_slice %29 {offsets = [0, 7], sizes = [16, 1], strides = [1, 1]} : vector<16x9xf32> to vector<16x1xf32>
    %191 = vector.broadcast %190 : vector<16x1xf32> to vector<16x24xf32>
    %192 = arith.mulf %189, %191 : vector<16x24xf32>
    %c11_i32_53 = arith.constant 11 : i32
    %193 = tpu.dynamic_rotate %161 by %c11_i32_53 dim 0 : vector<16x24xf32>, i32 -> vector<16x24xf32>
    %194 = vector.extract_strided_slice %29 {offsets = [0, 8], sizes = [16, 1], strides = [1, 1]} : vector<16x9xf32> to vector<16x1xf32>
    %195 = vector.broadcast %194 : vector<16x1xf32> to vector<16x24xf32>
    %196 = arith.mulf %193, %195 : vector<16x24xf32>
    %197 = tpu.concatenate %165, %169, %173, %177, %180, %184, %188, %192, %196 in 1 : vector<16x24xf32>, vector<16x24xf32>, vector<16x24xf32>, vector<16x24xf32>, vector<16x24xf32>, vector<16x24xf32>, vector<16x24xf32>, vector<16x24xf32>, vector<16x24xf32> -> vector<16x216xf32>
    %198 = arith.truncf %197 : vector<16x216xf32> to vector<16x216xbf16>
    %c0_54 = arith.constant 0 : index
    %c0_55 = arith.constant 0 : index
    %199 = vector.load %arg11[%c0_54, %c0_55] : memref<216x12xbf16, #tpu.memory_space<vmem>>, vector<216x12xbf16>
    %cst_56 = arith.constant dense<0.000000e+00> : vector<16x12xf32>
    %200 = tpu.matmul %198, %199, %cst_56 {dimension_numbers = #tpu.dot_dimension_numbers<[1], [0], [0], [1], [0, 0, 1, 1], [], []>} : vector<16x216xbf16>, vector<216x12xbf16>, vector<16x12xf32> -> vector<16x12xf32>
    %c0_57 = arith.constant 0 : index
    %c0_58 = arith.constant 0 : index
    %201 = vector.load %arg12[%c0_57, %c0_58] : memref<1x12xf32, #tpu.memory_space<vmem>>, vector<1x12xf32>
    %202 = vector.broadcast %201 : vector<1x12xf32> to vector<16x12xf32>
    %203 = arith.addf %200, %202 : vector<16x12xf32>
    %cst_59 = arith.constant 0.000000e+00 : f32
    %204 = vector.broadcast %cst_59 : f32 to vector<16x12xf32>
    %205 = arith.maximumf %203, %204 : vector<16x12xf32>
    %206 = arith.truncf %205 : vector<16x12xf32> to vector<16x12xbf16>
    %c0_60 = arith.constant 0 : index
    %c0_61 = arith.constant 0 : index
    %207 = vector.load %arg13[%c0_60, %c0_61] : memref<12x8xbf16, #tpu.memory_space<vmem>>, vector<12x8xbf16>
    %cst_62 = arith.constant dense<0.000000e+00> : vector<16x8xf32>
    %208 = tpu.matmul %206, %207, %cst_62 {dimension_numbers = #tpu.dot_dimension_numbers<[1], [0], [0], [1], [0, 0, 1, 1], [], []>} : vector<16x12xbf16>, vector<12x8xbf16>, vector<16x8xf32> -> vector<16x8xf32>
    %c0_63 = arith.constant 0 : index
    %c0_64 = arith.constant 0 : index
    %209 = vector.load %arg14[%c0_63, %c0_64] : memref<1x8xf32, #tpu.memory_space<vmem>>, vector<1x8xf32>
    %210 = vector.broadcast %209 : vector<1x8xf32> to vector<16x8xf32>
    %211 = arith.addf %208, %210 : vector<16x8xf32>
    %c0_65 = arith.constant 0 : index
    %c0_66 = arith.constant 0 : index
    %c0_67 = arith.constant 0 : index
    %212 = vector.load %arg15[%c0_65, %c0_66, %c0_67] : memref<1x16x8xf32, #tpu.memory_space<vmem>>, vector<1x16x8xf32>
    %213 = vector.shape_cast %212 : vector<1x16x8xf32> to vector<16x8xf32>
    %214 = vector.shape_cast %211 : vector<16x8xf32> to vector<1x16x8xf32>
    tpu.vector_store %arg15[%c0_65, %c0_66, %c0_67], %214 {strides = array<i32>} : memref<1x16x8xf32, #tpu.memory_space<vmem>>, vector<1x16x8xf32>,
    return
  }
  func.func @transform_0(%arg0: i32) -> (i32, i32, i32) {
    %c0_i32 = arith.constant 0 : i32
    %c0_i32_0 = arith.constant 0 : i32
    %c0_i32_1 = arith.constant 0 : i32
    return %arg0, %c0_i32, %c0_i32_0 : i32, i32, i32
  }
  func.func @transform_1(%arg0: i32) -> (i32, i32) {
    %c0_i32 = arith.constant 0 : i32
    %c0_i32_0 = arith.constant 0 : i32
    %c0_i32_1 = arith.constant 0 : i32
    return %c0_i32, %c0_i32_0 : i32, i32
  }
  func.func @transform_2(%arg0: i32) -> (i32, i32) {
    %c0_i32 = arith.constant 0 : i32
    %c0_i32_0 = arith.constant 0 : i32
    %c0_i32_1 = arith.constant 0 : i32
    return %c0_i32, %c0_i32_0 : i32, i32
  }
  func.func @transform_3(%arg0: i32) -> (i32, i32) {
    %c0_i32 = arith.constant 0 : i32
    %c0_i32_0 = arith.constant 0 : i32
    %c0_i32_1 = arith.constant 0 : i32
    return %c0_i32, %c0_i32_0 : i32, i32
  }
  func.func @transform_4(%arg0: i32) -> (i32, i32) {
    %c0_i32 = arith.constant 0 : i32
    %c0_i32_0 = arith.constant 0 : i32
    %c0_i32_1 = arith.constant 0 : i32
    return %c0_i32, %c0_i32_0 : i32, i32
  }
  func.func @transform_5(%arg0: i32) -> (i32, i32) {
    %c0_i32 = arith.constant 0 : i32
    %c0_i32_0 = arith.constant 0 : i32
    %c0_i32_1 = arith.constant 0 : i32
    return %c0_i32, %c0_i32_0 : i32, i32
  }
  func.func @transform_6(%arg0: i32) -> (i32, i32) {
    %c0_i32 = arith.constant 0 : i32
    %c0_i32_0 = arith.constant 0 : i32
    %c0_i32_1 = arith.constant 0 : i32
    return %c0_i32, %c0_i32_0 : i32, i32
  }
  func.func @transform_7(%arg0: i32) -> (i32, i32) {
    %c0_i32 = arith.constant 0 : i32
    %c0_i32_0 = arith.constant 0 : i32
    %c0_i32_1 = arith.constant 0 : i32
    return %c0_i32, %c0_i32_0 : i32, i32
  }
  func.func @transform_8(%arg0: i32) -> (i32, i32) {
    %c0_i32 = arith.constant 0 : i32
    %c0_i32_0 = arith.constant 0 : i32
    %c0_i32_1 = arith.constant 0 : i32
    return %c0_i32, %c0_i32_0 : i32, i32
  }
  func.func @transform_9(%arg0: i32) -> (i32, i32) {
    %c0_i32 = arith.constant 0 : i32
    %c0_i32_0 = arith.constant 0 : i32
    %c0_i32_1 = arith.constant 0 : i32
    return %c0_i32, %c0_i32_0 : i32, i32
  }
  func.func @transform_10(%arg0: i32) -> (i32, i32) {
    %c0_i32 = arith.constant 0 : i32
    %c0_i32_0 = arith.constant 0 : i32
    %c0_i32_1 = arith.constant 0 : i32
    return %c0_i32, %c0_i32_0 : i32, i32
  }
  func.func @transform_11(%arg0: i32) -> (i32, i32) {
    %c0_i32 = arith.constant 0 : i32
    %c0_i32_0 = arith.constant 0 : i32
    %c0_i32_1 = arith.constant 0 : i32
    return %c0_i32, %c0_i32_0 : i32, i32
  }
  func.func @transform_12(%arg0: i32) -> (i32, i32) {
    %c0_i32 = arith.constant 0 : i32
    %c0_i32_0 = arith.constant 0 : i32
    %c0_i32_1 = arith.constant 0 : i32
    return %c0_i32, %c0_i32_0 : i32, i32
  }
  func.func @transform_13(%arg0: i32) -> (i32, i32) {
    %c0_i32 = arith.constant 0 : i32
    %c0_i32_0 = arith.constant 0 : i32
    %c0_i32_1 = arith.constant 0 : i32
    return %c0_i32, %c0_i32_0 : i32, i32
  }
  func.func @transform_14(%arg0: i32) -> (i32, i32, i32) {
    %c0_i32 = arith.constant 0 : i32
    %c0_i32_0 = arith.constant 0 : i32
    %c0_i32_1 = arith.constant 0 : i32
    return %arg0, %c0_i32, %c0_i32_0 : i32, i32, i32
  }
}

</mosaic_0001>

<bundles_post_ra>
// kernel: _lambda_.4
= control target key start
LH: loop header
LB: loop body
LE: loop exit
PB: predicated region body
PF: predicated region fallthrough
CT: control target
= control target key end

     0   :  { %s544_s15 = smov 0   ;;  %s617_s0 = inlined_call_operand.vmem [shape: f32[2,20,192], index: 0, kind: input, shape index: {}]   ;;  %s618_s1 = inlined_call_operand.vmem [shape: f32[1,20,32], index: 1, kind: input, shape index: {}]   ;;  %s619_s2 = inlined_call_operand.vmem [shape: bf16[192,32], index: 2, kind: input, shape index: {}]   ;;  %s620_s3 = inlined_call_operand.vmem [shape: f32[1,32], index: 3, kind: input, shape index: {}]   ;;  %s621_s4 = inlined_call_operand.vmem [shape: bf16[2,20,32], index: 4, kind: output, shape index: {}]  }
   0x1 LB: > { %s421_s16 = sadd.s32 4294967295, %s517_s15   ;;  %p425_p0 = scmp.ge.s32.totalorder %s517_s15, 1  ;;  %s517_s15 = sphi %s544_s15, %s14_s15  }
   0x2   : > { %p162_p1 = scmp.lt.s32.totalorder %s517_s15, 3 }
   0x4   : > { %p163_p2 = pnand %p425_p0, %p162_p1 }
   0x5   : > { %p188_p3 = scmp.lt.s32.totalorder (!%p163_p2), %s421_s16, 1 }
   0x6   : > { %166 = sbr.rel (%p163_p2) target bundleno = 186 (0xba), region = 36 }
   0xb   : > { %v487_v0 = vld [vmem:[%s619_s2 + $0x38] sm:$0xff]  ;;  %v486_v2 = vld [vmem:[%s619_s2 + $0x30] sm:$0xff]  ;;  %s623_s16 = smov (!%p188_p3, %s421_s16), 1  ;;  %v485_v4 = vld [vmem:[%s619_s2 + $0x28] sm:$0xff]  ;;  %vm309_vm0 = vcmask 523264   ;;  %vm361_vm1 = vcmask 257024  }
   0xc   : > { %v491_v1 = vld [vmem:[%s619_s2 + $0x58] sm:$0xff]  ;;  %316 = vmatpush.bf16.msra.mxu0 %v487_v0  ;;  %492 = vmatpush.bf16.msra.mxu2 %v487_v0  ;;  %v490_v3 = vld [vmem:[%s619_s2 + $0x50] sm:$0xff]  ;;  %s500_s25 = smul.u32 48, %s623_s16  ;;  %v489_v5 = vld [vmem:[%s619_s2 + $0x48] sm:$0xff]  ;;  %vm364_vm2 = vcmask 254976  }
   0xd   : > { %338 = vmatpush.bf16.msra.mxu1 %v491_v1  ;;  %v484_v6 = vld [vmem:[%s619_s2 + $0x20] sm:$0xff]  ;;  %v483_v10 = vld [vmem:[%s619_s2 + $0x18] sm:$0xff]  ;;  %v482_v12 = vld [vmem:[%s619_s2 + $0x10] sm:$0xff]  ;;  %s501_s23 = smul.u32 12, %s623_s16 }
   0xe   : > { %s192_s6 = scalar_lea.vmem %s617_s0, %s500_s25  ;;  %v488_v7 = vld [vmem:[%s619_s2 + $0x40] sm:$0xff]  ;;  %v481_v13 = vld [vmem:[%s619_s2 + $0x8] sm:$0xff]  ;;  %v354_v34 = vld [vmem:[%s618_s1 + $0x10] sm:$0xf] }
   0xf   : > { %v200_v8 = vld [vmem:[%s192_s6 + $0x8] sm:$0xff]  ;;  %v202_v9 = vld [vmem:[%s192_s6 + $0x18] sm:$0xff]  ;;  %v480_v14 = vld [vmem:[%s619_s2] sm:$0xff]  ;;  %s197_s28 = scalar_lea.vmem %s621_s4, %s501_s23 }
  0x10   : > { %317 = vmatpush.bf16.msra.mxu0 %v486_v2  ;;  %493 = vmatpush.bf16.msra.mxu2 %v486_v2  ;;  %v206_v11 = vpack.c.bf16 %v202_v9, %v200_v8  ;;  %v199_v15 = vld [vmem:[%s192_s6] sm:$0xff]  ;;  %v201_v16 = vld [vmem:[%s192_s6 + $0x10] sm:$0xff]  ;;  %v204_v18 = vld [vmem:[%s192_s6 + $0x28] sm:$0xf] }
  0x11   : > { %339 = vmatpush.bf16.msra.mxu1 %v490_v3  ;;  %v203_v17 = vld [vmem:[%s192_s6 + $0x20] sm:$0xf]  ;;  %v205_v19 = vpack.c.bf16 %v201_v16, %v199_v15  ;;  %v208_v21 = vpack.c.bf16 %v204_v18, %v204_v18  ;;  %v353_v38 = vld [vmem:[%s618_s1 + $0x8] sm:$0xff] }
  0x12   : > { %v207_v20 = vpack.c.bf16 %v203_v17, %v203_v17  ;;  %v510_v24 = vld [vmem:[%s620_s3] ss:$0 sm:$0xff] }
  0x13   : > { %v352_v27 = vld [vmem:[%s618_s1] sm:$0xff] }
  0x14   : > { %318 = vmatpush.bf16.msra.mxu0 %v485_v4  ;;  %494 = vmatpush.bf16.msra.mxu2 %v485_v4 }
  0x15   : > { %340 = vmatpush.bf16.msra.mxu1 %v489_v5 }
  0x18   : > { %319 = vmatpush.bf16.msra.mxu0 %v484_v6  ;;  %495 = vmatpush.bf16.msra.mxu2 %v484_v6 }
  0x19   : > { %341 = vmatpush.bf16.msra.mxu1 %v488_v7 }
  0x1c   : > { %320 = vmatpush.bf16.msra.mxu0 %v483_v10  ;;  %496 = vmatpush.bf16.msra.mxu2 %v483_v10 }
  0x1d   : > { %476 = vmatmul.msk.bf16.vlgmr.msra.gmra.mxu1 %vm309_vm0, %v206_v11 }
  0x20   : > { %321 = vmatpush.bf16.msra.mxu0 %v482_v12  ;;  %497 = vmatpush.bf16.msra.mxu2 %v482_v12 }
  0x24   : > { %322 = vmatpush.bf16.msra.mxu0 %v481_v13  ;;  %498 = vmatpush.bf16.msra.mxu2 %v481_v13 }
  0x28   : > { %323 = vmatpush.bf16.msra.mxu0 %v480_v14  ;;  %499 = vmatpush.bf16.msra.mxu2 %v480_v14 }
  0x2b   : > { %324 = vmatmul.bf16.vlgmr.msra.gmra.mxu0 %v205_v19  ;;  %329 = vmatmul.bf16.vlgmr.msra.gmra.mxu2 %v207_v20 }
  0x2d   : > { %477 = vmatmul.msk.bf16.gmra.mxu1 %vm309_vm0, %v208_v21 }
  0x9a   : > { %v343_v22 = vpop.f32.mrf.mxu1 }
  0xa2   : > { %v345_v23 = vpop.f32.mrf.mxu1 }
  0xa8   : > { %v325_v25 = vpop.f32.mrf.mxu0 }
  0xa9   : > { %v326_v26 = vadd.f32 %v510_v24, %v325_v25 }
  0xaa   : > { %v348_v28 = vpop.f32.mrf.mxu1 }
  0xab   : > { %v344_v29 = vadd.f32 %v343_v22, %v326_v26 }
  0xad   : > { %v355_v30 = vadd.f32 %v352_v27, %v344_v29 }
  0xae   : > { %v330_v31 = vpop.f32.mrf.mxu2 }
  0xaf   : > { %v358_v32 = vpack.c.bf16 %v355_v30, %v355_v30  ;;  %v331_v33 = vadd.f32 %v510_v24, %v330_v31 }
  0xb0   : > { %v327_v35 = vpop.f32.mrf.mxu0 }
  0xb1   : > { %362 = vst.msk [vmem:[%s197_s28] sm:$0xf] %vm361_vm1, %v358_v32  ;;  %v349_v36 = vadd.f32 %v348_v28, %v331_v33  ;;  %v328_v37 = vadd.f32 %v510_v24, %v327_v35 }
  0xb2   : > { %v350_v39 = vpop.f32.mrf.mxu1 }
  0xb3   : > { %v357_v40 = vadd.f32 %v354_v34, %v349_v36  ;;  %v346_v41 = vadd.f32 %v345_v23, %v328_v37 }
  0xb5   : > { %v360_v42 = vpack.c.bf16 %v357_v40, %v357_v40  ;;  %v356_v43 = vadd.f32 %v353_v38, %v346_v41 }
  0xb6   : > { %v332_v44 = vpop.f32.mrf.mxu2 }
  0xb7   : > { %365 = vst.msk [vmem:[%s197_s28 + $0x8] sm:$0x3] %vm364_vm2, %v360_v42  ;;  %v359_v45 = vpack.c.bf16 %v356_v43, %v356_v43 }
  0xb9   : > { %363 = vst.msk [vmem:[%s197_s28 + $0x4] sm:$0xf] %vm361_vm1, %v359_v45 }
  0xba PF: > { %s14_s15 = sadd.s32 1, %s517_s15  }
  0xbb   : > { %p11_p4 = scmp.ge.s32.totalorder %s14_s15, 4  }
  0xbd   :  { %13 = sbr.rel (!%p11_p4) target bundleno = 1 (0x1), region = 66 }

// kernel: _lambda_.5
= control target key start
LH: loop header
LB: loop body
LE: loop exit
PB: predicated region body
PF: predicated region fallthrough
CT: control target
= control target key end

     0   :  { %s1732_s25 = smov 0   ;;  %s2022_s0 = inlined_call_operand.vmem [shape: bf16[2,20,32], index: 0, kind: input, shape index: {}]   ;;  %s2023_s1 = inlined_call_operand.vmem [shape: f32[1,32], index: 1, kind: input, shape index: {}, may-alias: {1,7}]   ;;  %s2024_s2 = inlined_call_operand.vmem [shape: f32[1,32], index: 2, kind: input, shape index: {}, may-alias: {2,6,8,12}]   ;;  %s2025_s3 = inlined_call_operand.vmem [shape: bf16[32,96], index: 3, kind: input, shape index: {}]   ;;  %s2026_s4 = inlined_call_operand.vmem [shape: f32[1,96], index: 4, kind: input, shape index: {}]   ;;  %s2027_s5 = inlined_call_operand.vmem [shape: bf16[32,32], index: 5, kind: input, shape index: {}]   ;;  %s2028_s6 = inlined_call_operand.vmem [shape: f32[1,32], index: 6, kind: input, shape index: {}, may-alias: {2,6,8,12}]   ;;  %s2029_s7 = inlined_call_operand.vmem [shape: f32[1,32], index: 7, kind: input, shape index: {}, may-alias: {1,7}]   ;;  %s2030_s8 = inlined_call_operand.vmem [shape: f32[1,32], index: 8, kind: input, shape index: {}, may-alias: {2,6,8,12}]   ;;  %s2031_s9 = inlined_call_operand.vmem [shape: bf16[32,128], index: 9, kind: input, shape index: {}]   ;;  %s2032_s10 = inlined_call_operand.vmem [shape: f32[1,128], index: 10, kind: input, shape index: {}]   ;;  %s2033_s11 = inlined_call_operand.vmem [shape: bf16[128,32], index: 11, kind: input, shape index: {}]   ;;  %s2034_s12 = inlined_call_operand.vmem [shape: f32[1,32], index: 12, kind: input, shape index: {}, may-alias: {2,6,8,12}]   ;;  %s2035_s13 = inlined_call_operand.vmem [shape: bf16[2,20,32], index: 13, kind: output, shape index: {}]  }
   0x1 LB: > { %s1419_s26 = sadd.s32 4294967295, %s1645_s25   ;;  %p1423_p0 = scmp.ge.s32.totalorder %s1645_s25, 1  ;;  %s1645_s25 = sphi %s1732_s25, %s23_s25  }
   0x2   : > { %p387_p1 = scmp.lt.s32.totalorder %s1645_s25, 3 }
   0x4   : > { %p388_p2 = pnand %p1423_p0, %p387_p1 }
   0x5   : > { %p431_p3 = scmp.lt.s32.totalorder (!%p388_p2), %s1419_s26, 1  ;;  %s1648_s24 = smov (!%p388_p2), 96  }
   0x6   : > { %391 = sbr.rel (%p388_p2) target bundleno = 2525 (0x9dd), region = 72  ;;  %s1649_s28 = smov (!%p388_p2), 88  }
   0x7   : > { %s1650_s29 = smov (!%p388_p2), 64   ;;  %s1652_s14 = smov (!%p388_p2), 80  }
   0x8   : > { %s1653_s15 = smov (!%p388_p2), 72   ;;  %s1654_s16 = smov (!%p388_p2), 104  }
   0x9   : > { %s1655_s17 = smov (!%p388_p2), 112   ;;  %s1656_s18 = smov (!%p388_p2), 56  }
   0xa   : > { %s1657_s19 = smov (!%p388_p2), 48   ;;  %s1658_s20 = smov (!%p388_p2), 40  }
   0xb   : > { %s2037_s26 = smov (!%p431_p3, %s1419_s26), 1  ;;  %vm450_vm0 = vcmask 261120   ;;  %vm457_vm1 = vcmask 257024   ;;  %v1647_v8 = vmov 32.0   ;;  %v1507_v30 = vld [vmem:[%s2025_s3 + $0x8] sm:$0xff]  ;;  %v1506_v33 = vld [vmem:[%s2025_s3] sm:$0xff] }
   0xc   : > { %s1524_s27 = smul.u32 12, %s2037_s26  ;;  %1571 = vrcp.f32 %v1647_v8  ;;  %571 = vmatpush.bf16.msra.mxu0 %v1507_v30  ;;  %v1563_v55 = vld [vmem:[%s2023_s1] ss:$0 sm:$0xff]  ;;  %vm596_vm12 = vcmask 64512   ;;  %vm675_vm13 = vcmask 1041408   ;;  %vm627_vm14 = vcmask 162816  }
   0xd   : > { %v1564_v62 = vld [vmem:[%s2024_s2] ss:$0 sm:$0xff]  ;;  %vm634_vm15 = vcmask 158720   ;;  %s1659_s21 = smov 8   ;;  %s1660_s22 = smov 16  }
   0xe   : > { %s435_s30 = scalar_lea.vmem %s2022_s0, %s1524_s27  ;;  %s1661_s23 = smov 24  }
   0xf   : > { %v1521_v0 = vld [vmem:[%s435_s30] sm:$0xff]   ;;  %v444_v1 = vld [vmem:[%s435_s30 + $0x8] sm:$0x3]  ;;  %s1651_s30 = smov 120  }
  0x10   : > { %v1748_v2 = vunpack.c.l.bf16 %v1521_v0  ;;  %v1750_v3 = vunpack.c.l.bf16 %v444_v1  ;;  %v1756_v6 = vunpack.c.h.bf16 %v1521_v0  ;;  %572 = vmatpush.bf16.msra.mxu0 %v1506_v33 }
  0x12   : > { %v451_v4 = vsel %vm450_vm0, %v1748_v2, 0.0  ;;  %v458_v5 = vsel %vm457_vm1, %v1750_v3, 0.0  ;;  %v454_v7 = vsel %vm450_vm0, %v1756_v6, 0.0  ;;  %v1572_v9 = vpop.eup %1571 }
  0x13   : > { %452 = vadd.xlane.f32.xlu0 %v451_v4  ;;  %459 = vadd.xlane.f32.xlu1 %v458_v5  ;;  %v462_v10 = vmul.f32 32.0, %v1572_v9  ;;  %vm466_vm2 = vweird.f32 %v1572_v9 }
  0x15   : > { %v463_v11 = vsub.f32 1.0, %v462_v10 }
  0x17   : > { %v464_v12 = vmul.f32 %v1572_v9, %v463_v11 }
  0x19   : > { %v465_v13 = vadd.f32 %v1572_v9, %v464_v12 }
  0x1b   : > { %455 = vadd.xlane.f32.xlu0 %v454_v7  ;;  %v1760_v14 = vsel %vm466_vm2, %v1572_v9, %v465_v13  ;;  %vm1053_vm2 = vcmask 130048  }
  0x86   : > { %v453_v15 = vpop.xlane.xlu0 %452  ;;  %v460_v19 = vpop.xlane.xlu1 %459 }
  0x87   : > { %v468_v16 = vmul.f32 %v1760_v14, %v453_v15  ;;  %v470_v23 = vmul.f32 %v1760_v14, %v460_v19 }
  0x89   : > { %v471_v17 = vsub.f32 %v1748_v2, %v468_v16  ;;  %v1769_v25 = vsub.f32 %v1750_v3, %v470_v23  ;;  %v1565_v16 = vld [vmem:[%s2026_s4] ss:$0 sm:$0xff] }
  0x8b   : > { %v474_v18 = vmul.f32 %v471_v17, %v471_v17  ;;  %v476_v28 = vmul.f32 %v1769_v25, %v1769_v25 }
  0x8d   : > { %v477_v20 = vsel %vm450_vm0, %v474_v18, 0.0  ;;  %v483_v29 = vsel %vm457_vm1, %v476_v28, 0.0 }
  0x8e   : > { %478 = vadd.xlane.f32.xlu1 %v477_v20  ;;  %v456_v21 = vpop.xlane.xlu0 %455 }
  0x8f   : > { %v469_v22 = vmul.f32 %v1760_v14, %v456_v21 }
  0x91   : > { %v472_v24 = vsub.f32 %v1756_v6, %v469_v22 }
  0x93   : > { %v475_v26 = vmul.f32 %v472_v24, %v472_v24 }
  0x95   : > { %v480_v27 = vsel %vm450_vm0, %v475_v26, 0.0 }
  0x96   : > { %481 = vadd.xlane.f32.xlu2 %v480_v27 }
  0x9e   : > { %484 = vadd.xlane.f32.xlu2 %v483_v29 }
 0x101   : > { %v479_v31 = vpop.xlane.xlu1 %478 }
 0x102   : > { %v486_v32 = vmul.f32 %v479_v31, %v1760_v14 }
 0x104   : > { %v489_v34 = vadd.f32 1e-06, %v486_v32 }
 0x106   : > { %1573 = vrsqrt.f32 %v489_v34  ;;  %vm498_vm4 = vweird.f32 %v489_v34 }
 0x109   : > { %v482_v35 = vpop.xlane.xlu2 %481 }
 0x10a   : > { %v487_v36 = vmul.f32 %v482_v35, %v1760_v14 }
 0x10c   : > { %v1574_v37 = vpop.eup %1573  ;;  %v490_v38 = vadd.f32 1e-06, %v487_v36 }
 0x10d   : > { %v493_v39 = vmul.f32 %v1574_v37, %v489_v34  ;;  %vm499_vm3 = vweird.f32 %v1574_v37 }
 0x10e   : > { %1575 = vrsqrt.f32 %v490_v38  ;;  %vm500_vm5 = vmor %vm498_vm4, %vm499_vm3  ;;  %vm508_vm7 = vweird.f32 %v490_v38  ;;  %vm1057_vm3 = vcmask 195584  }
 0x10f   : > { %v494_v40 = vmul.f32 %v1574_v37, %v493_v39 }
 0x111   : > { %v495_v41 = vmul.f32 0.5, %v494_v40  ;;  %v485_v42 = vpop.xlane.xlu2 %484 }
 0x112   : > { %v488_v43 = vmul.f32 %v485_v42, %v1760_v14 }
 0x113   : > { %v496_v44 = vsub.f32 1.5, %v495_v41 }
 0x114   : > { %v1576_v45 = vpop.eup %1575  ;;  %v491_v46 = vadd.f32 1e-06, %v488_v43 }
 0x115   : > { %v497_v47 = vmul.f32 %v1574_v37, %v496_v44  ;;  %v503_v48 = vmul.f32 %v1576_v45, %v490_v38  ;;  %vm509_vm6 = vweird.f32 %v1576_v45 }
 0x116   : > { %1577 = vrsqrt.f32 %v491_v46  ;;  %vm510_vm8 = vmor %vm508_vm7, %vm509_vm6  ;;  %vm518_vm9 = vweird.f32 %v491_v46 }
 0x117   : > { %v504_v49 = vmul.f32 %v1576_v45, %v503_v48  ;;  %v501_v50 = vsel %vm500_vm5, %v1574_v37, %v497_v47 }
 0x118   : > { %v522_v54 = vmul.f32 %v501_v50, %v471_v17 }
 0x119   : > { %v505_v51 = vmul.f32 0.5, %v504_v49 }
 0x11a   : > { %v528_v61 = vmul.f32 %v1563_v55, %v522_v54 }
 0x11b   : > { %v506_v52 = vsub.f32 1.5, %v505_v51 }
 0x11c   : > { %v1578_v53 = vpop.eup %1577  ;;  %v534_v4 = vadd.f32 %v1564_v62, %v528_v61 }
 0x11d   : > { %v507_v56 = vmul.f32 %v1576_v45, %v506_v52  ;;  %v513_v57 = vmul.f32 %v1578_v53, %v491_v46  ;;  %vm519_vm10 = vweird.f32 %v1578_v53 }
 0x11e   : > { %vm520_vm11 = vmor %vm518_vm9, %vm519_vm10 }
 0x11f   : > { %v511_v58 = vsel %vm510_vm8, %v1576_v45, %v507_v56  ;;  %v514_v59 = vmul.f32 %v1578_v53, %v513_v57 }
 0x120   : > { %v523_v60 = vmul.f32 %v511_v58, %v472_v24 }
 0x121   : > { %v515_v63 = vmul.f32 0.5, %v514_v59 }
 0x122   : > { %v529_v0 = vmul.f32 %v1563_v55, %v523_v60 }
 0x123   : > { %v516_v1 = vsub.f32 1.5, %v515_v63 }
 0x124   : > { %v535_v5 = vadd.f32 %v1564_v62, %v529_v0 }
 0x125   : > { %v517_v7 = vmul.f32 %v1578_v53, %v516_v1 }
 0x126   : > { %v537_v8 = vpack.c.bf16 %v535_v5, %v534_v4 }
 0x127   : > { %v521_v9 = vsel %vm520_vm11, %v1578_v53, %v517_v7 }
 0x128   : > { %1434 = vmatmul.msk.bf16.vlgmr.msra.gmra.mxu0 %vm450_vm0, %v537_v8  ;;  %v524_v10 = vmul.f32 %v521_v9, %v1769_v25 }
 0x12a   : > { %v530_v11 = vmul.f32 %v1563_v55, %v524_v10 }
 0x12c   : > { %v536_v12 = vadd.f32 %v1564_v62, %v530_v11 }
 0x12e   : > { %v538_v13 = vpack.c.bf16 %v536_v12, %v536_v12 }
 0x138   : > { %1435 = vmatmul.msk.bf16.gmra.mxu0 %vm450_vm0, %v538_v13 }
 0x1a5   : > { %v574_v15 = vpop.f32.mrf.mxu0 }
 0x1a6   : > { %v575_v18 = vadd.f32 %v1565_v16, %v574_v15 }
 0x1a8   : > { %v583_v26 = vmul.f32 0.35355338, %v575_v18 }
 0x1ad   : > { %v576_v17 = vpop.f32.mrf.mxu0 }
 0x1ae   : > { %v577_v19 = vadd.f32 %v1565_v16, %v576_v17 }
 0x1b0   : > { %v1796_v20 = vpack.c.bf16 %v577_v19, %v575_v18  ;;  %v584_v25 = vmul.f32 0.35355338, %v577_v19 }
 0x1b2   : > { %592 = vrot.lane.b32.xlu1 %v1796_v20, %s1648_s24  ;;  %v1806_v27 = vpack.c.bf16 %v584_v25, %v583_v26 }
 0x1b5   : > { %v579_v21 = vpop.f32.mrf.mxu0 }
 0x1b6   : > { %v580_v22 = vadd.f32 %v1565_v16, %v579_v21 }
 0x1b8   : > { %v1799_v23 = vpack.c.bf16 %v580_v22, %v580_v22  ;;  %v585_v37 = vmul.f32 0.35355338, %v580_v22 }
 0x1ba   : > { %594 = vrot.lane.b32.xlu0 %v1799_v23, %s1648_s24  ;;  %v587_v38 = vpack.c.bf16 %v585_v37, %v585_v37 }
 0x1bd   : > { %v581_v24 = vpop.f32.mrf.mxu0 }
 0x1c2   : > { %705 = vrot.lane.b32.xlu0 %v1799_v23, %s1649_s28 }
 0x1ca   : > { %666 = vrot.lane.b32.xlu0 %v1799_v23, %s1650_s29 }
 0x1d2   : > { %664 = vrot.lane.b32.xlu0 %v1796_v20, %s1650_s29 }
 0x1da   : > { %699 = vrot.lane.b32.xlu0 %v1806_v27, %s1651_s30 }
 0x224   : > { %v593_v30 = vpop.permute.xlu1 %592 }
 0x225   : > { %v604_v32 = vsel %vm596_vm12, %v593_v30, 0 }
 0x22c   : > { %v595_v28 = vpop.permute.xlu0 %594 }
 0x22d   : > { %v607_v29 = vsel %vm596_vm12, %v595_v28, 0 }
 0x22e   : > { %615 = vmatpush.bf16.xpose.msra.mxu1 %v607_v29 }
 0x234   : > { %v706_v31 = vpop.permute.xlu0 %705 }
 0x235   : > { %v717_v33 = vsel %vm596_vm12, %v706_v31, 0 }
 0x236   : > { %616 = vmatpush.bf16.xpose.msra.mxu1 %v604_v32  ;;  %725 = vmatpush.bf16.xpose.msra.mxu3 %v717_v33 }
 0x23c   : > { %v667_v34 = vpop.permute.xlu0 %666 }
 0x23d   : > { %1436 = vmatmul.msk.bf16.vlgmr.msra.gmra.mxu1 %vm596_vm12, %v1806_v27  ;;  %v677_v35 = vsel %vm675_vm13, %v667_v34, 0 }
 0x23e   : > { %685 = vmatpush.bf16.msra.mxu2 %v677_v35 }
 0x244   : > { %v665_v36 = vpop.permute.xlu0 %664 }
 0x245   : > { %686 = vmatpush.bf16.msra.mxu2 %v665_v36 }
 0x24c   : > { %v700_v58 = vpop.permute.xlu0 %699 }
 0x24d   : > { %1437 = vmatmul.msk.bf16.gmra.mxu1 %vm596_vm12, %v587_v38 }
 0x2ba   : > { %v618_v39 = vpop.f32.mrf.mxu1 }
 0x2bb   : > { %v628_v40 = vsel %vm627_vm14, %v618_v39, -inf }
 0x2bc   : > { %629 = vmax.xlane.f32.xlu2 %v628_v40 }
 0x2c2   : > { %v620_v41 = vpop.f32.mrf.mxu1 }
 0x2c3   : > { %v631_v42 = vsel %vm627_vm14, %v620_v41, -inf }
 0x2c4   : > { %632 = vmax.xlane.f32.xlu2 %v631_v42 }
 0x2ca   : > { %v623_v43 = vpop.f32.mrf.mxu1 }
 0x2cb   : > { %v635_v45 = vsel %vm634_vm15, %v623_v43, -inf }
 0x2d2   : > { %v625_v44 = vpop.f32.mrf.mxu1 }
 0x2dc   : > { %703 = vrot.lane.b32.xlu2 %v1796_v20, %s1649_s28 }
 0x305   : > { %636 = vmax.xlane.f32.xlu2 %v635_v45 }
 0x32f   : > { %v630_v46 = vpop.xlane.xlu2 %629 }
 0x330   : > { %v638_v47 = vsub.f32 %v618_v39, %v630_v46 }
 0x332   : > { %v641_v48 = vmul.f32 1.442695, %v638_v47 }
 0x334   : > { %1579 = vpow2.f32 %v641_v48 }
 0x337   : > { %v633_v49 = vpop.xlane.xlu2 %632 }
 0x338   : > { %v639_v50 = vsub.f32 %v620_v41, %v633_v49 }
 0x33a   : > { %v1580_v51 = vpop.eup %1579  ;;  %v643_v52 = vmul.f32 1.442695, %v639_v50 }
 0x33b   : > { %v647_v53 = vsel %vm627_vm14, %v1580_v51, 0.0 }
 0x33c   : > { %1581 = vpow2.f32 %v643_v52  ;;  %648 = vadd.xlane.f32.xlu2 %v647_v53 }
 0x33f   : > { %v704_v54 = vpop.permute.xlu2 %703 }
 0x340   : > { %v714_v55 = vsel %vm596_vm12, %v704_v54, 0 }
 0x341   : > { %726 = vmatpush.bf16.xpose.msra.mxu3 %v714_v55 }
 0x342   : > { %v1582_v56 = vpop.eup %1581 }
 0x343   : > { %v650_v57 = vsel %vm627_vm14, %v1582_v56, 0.0 }
 0x344   : > { %651 = vadd.xlane.f32.xlu1 %v650_v57 }
 0x348   : > { %1440 = vmatmul.msk.bf16.vlgmr.msra.gmra.mxu3 %vm596_vm12, %v700_v58 }
 0x354   : > { %810 = vrot.lane.b32.xlu2 %v1799_v23, %s1652_s14 }
 0x35c   : > { %701 = vrot.lane.b32.xlu2 %v587_v38, %s1651_s30 }
 0x35d   : > { %915 = vrot.lane.b32.xlu1 %v1799_v23, %s1653_s15 }
 0x364   : > { %808 = vrot.lane.b32.xlu2 %v1796_v20, %s1652_s14 }
 0x365   : > { %909 = vrot.lane.b32.xlu1 %v1806_v27, %s1654_s16 }
 0x36c   : > { %913 = vrot.lane.b32.xlu2 %v1796_v20, %s1653_s15 }
 0x374   : > { %804 = vrot.lane.b32.xlu2 %v1806_v27, %s1655_s17 }
 0x378   : > { %v637_v59 = vpop.xlane.xlu2 %636 }
 0x379   : > { %v640_v60 = vsub.f32 %v623_v43, %v637_v59 }
 0x37b   : > { %v645_v61 = vmul.f32 1.442695, %v640_v60 }
 0x37c   : > { %911 = vrot.lane.b32.xlu2 %v587_v38, %s1654_s16 }
 0x37d   : > { %1583 = vpow2.f32 %v645_v61 }
 0x383   : > { %v1584_v62 = vpop.eup %1583 }
 0x384   : > { %v653_v63 = vsel %vm634_vm15, %v1584_v62, 0.0 }
 0x385   : > { %654 = vadd.xlane.f32.xlu0 %v653_v63 }
 0x399   : > { %806 = vrot.lane.b32.xlu0 %v587_v38, %s1655_s17 }
 0x3af   : > { %v649_v0 = vpop.xlane.xlu2 %648 }
 0x3b0   : > { %1585 = vrcp.f32 %v649_v0 }
 0x3b6   : > { %v1586_v7 = vpop.eup %1585 }
 0x3b7   : > { %v652_v1 = vpop.xlane.xlu1 %651  ;;  %v811_v4 = vpop.permute.xlu2 %810  ;;  %v659_v10 = vmul.f32 %v1586_v7, %v1580_v51 }
 0x3b8   : > { %1587 = vrcp.f32 %v652_v1  ;;  %v822_v5 = vsel %vm596_vm12, %v811_v4, 0 }
 0x3b9   : > { %830 = vmatpush.bf16.xpose.msrb.mxu2 %v822_v5 }
 0x3be   : > { %v1588_v8 = vpop.eup %1587 }
 0x3bf   : > { %v702_v9 = vpop.permute.xlu2 %701  ;;  %v660_v11 = vmul.f32 %v1588_v8, %v1582_v56 }
 0x3c0   : > { %1441 = vmatmul.msk.bf16.gmra.mxu3 %vm596_vm12, %v702_v9 }
 0x3c1   : > { %v662_v12 = vpack.c.bf16 %v660_v11, %v659_v10 }
 0x3c3   : > { %1438 = vmatmul.msk.bf16.vlgmr.msra.gmra.mxu2 %vm627_vm14, %v662_v12 }
 0x3c7   : > { %v809_v13 = vpop.permute.xlu2 %808 }
 0x3c8   : > { %v819_v15 = vsel %vm596_vm12, %v809_v13, 0 }
 0x3c9   : > { %831 = vmatpush.bf16.xpose.msrb.mxu2 %v819_v15 }
 0x3cb   : > { %v728_v16 = vpop.f32.mrf.mxu3 }
 0x3cc   : > { %v737_v17 = vsel %vm627_vm14, %v728_v16, -inf }
 0x3cd   : > { %738 = vmax.xlane.f32.xlu1 %v737_v17 }
 0x3cf   : > { %v916_v18 = vpop.permute.xlu1 %915  ;;  %v914_v24 = vpop.permute.xlu2 %913 }
 0x3d0   : > { %v927_v19 = vsel %vm596_vm12, %v916_v18, 0  ;;  %v924_v25 = vsel %vm596_vm12, %v914_v24, 0 }
 0x3d1   : > { %935 = vmatpush.bf16.xpose.msrb.mxu3 %v927_v19 }
 0x3d3   : > { %v730_v21 = vpop.f32.mrf.mxu3 }
 0x3d4   : > { %v740_v22 = vsel %vm627_vm14, %v730_v21, -inf }
 0x3d5   : > { %741 = vmax.xlane.f32.xlu2 %v740_v22 }
 0x3d7   : > { %v910_v26 = vpop.permute.xlu1 %909  ;;  %v805_v27 = vpop.permute.xlu2 %804 }
 0x3d9   : > { %936 = vmatpush.bf16.xpose.msrb.mxu3 %v924_v25 }
 0x3df   : > { %v912_v28 = vpop.permute.xlu2 %911 }
 0x3e0   : > { %1448 = vmatmul.msk.bf16.vlgmr.msrb.gmra.mxu3 %vm596_vm12, %v910_v26 }
 0x3f0   : > { %1449 = vmatmul.msk.bf16.gmra.mxu3 %vm596_vm12, %v912_v28 }
 0x3f8   : > { %v655_v29 = vpop.xlane.xlu0 %654 }
 0x3f9   : > { %1589 = vrcp.f32 %v655_v29 }
 0x3ff   : > { %v1590_v30 = vpop.eup %1589 }
 0x400   : > { %v661_v31 = vmul.f32 %v1590_v30, %v1584_v62 }
 0x402   : > { %v663_v32 = vpack.c.bf16 %v661_v31, %v661_v31 }
 0x404   : > { %1439 = vmatmul.msk.bf16.gmra.mxu2 %vm627_vm14, %v663_v32 }
 0x40b   : > { %v807_v33 = vpop.permute.xlu0 %806 }
 0x414   : > { %1444 = vmatmul.msk.bf16.vlgmr.msrb.gmra.mxu2 %vm596_vm12, %v805_v27 }
 0x424   : > { %1445 = vmatmul.msk.bf16.gmra.mxu2 %vm596_vm12, %v807_v33 }
 0x440   : > { %v739_v34 = vpop.xlane.xlu1 %738 }
 0x441   : > { %v746_v35 = vsub.f32 %v728_v16, %v739_v34 }
 0x443   : > { %v749_v36 = vmul.f32 1.442695, %v746_v35  ;;  %v733_v37 = vpop.f32.mrf.mxu3 }
 0x444   : > { %v743_v38 = vsel %vm634_vm15, %v733_v37, -inf }
 0x445   : > { %1591 = vpow2.f32 %v749_v36  ;;  %744 = vmax.xlane.f32.xlu0 %v743_v38 }
 0x446   : > { %v1861_v52 = vpop.f32.mrf.mxu2 }
 0x448   : > { %v742_v42 = vpop.xlane.xlu2 %741 }
 0x449   : > { %v747_v43 = vsub.f32 %v730_v21, %v742_v42 }
 0x44b   : > { %v1848_v39 = vpop.eup %1591  ;;  %v735_v40 = vpop.f32.mrf.mxu3  ;;  %v751_v44 = vmul.f32 1.442695, %v747_v43 }
 0x44c   : > { %v755_v41 = vsel %vm627_vm14, %v1848_v39, 0.0 }
 0x44d   : > { %756 = vadd.xlane.f32.xlu0 %v755_v41  ;;  %1593 = vpow2.f32 %v751_v44 }
 0x44e   : > { %v1863_v54 = vpop.f32.mrf.mxu2 }
 0x453   : > { %v1854_v47 = vpop.eup %1593 }
 0x454   : > { %v758_v50 = vsel %vm627_vm14, %v1854_v47, 0.0 }
 0x461   : > { %772 = vrot.lane.b32.xlu0 %v1796_v20, %s1656_s18 }
 0x463   : > { %v938_v45 = vpop.f32.mrf.mxu3 }
 0x464   : > { %v947_v46 = vsel %vm627_vm14, %v938_v45, -inf }
 0x465   : > { %948 = vmax.xlane.f32.xlu1 %v947_v46 }
 0x46b   : > { %v940_v48 = vpop.f32.mrf.mxu3 }
 0x46c   : > { %v950_v49 = vsel %vm627_vm14, %v940_v48, -inf }
 0x46d   : > { %951 = vmax.xlane.f32.xlu2 %v950_v49  ;;  %759 = vadd.xlane.f32.xlu1 %v758_v50 }
 0x473   : > { %v1859_v51 = vpop.f32.mrf.mxu3 }
 0x474   : > { %v953_v7 = vsel %vm634_vm15, %v1859_v51, -inf }
 0x47b   : > { %v945_v53 = vpop.f32.mrf.mxu3 }
 0x487   : > { %v1865_v55 = vpop.f32.mrf.mxu2 }
 0x48f   : > { %v695_v56 = vpop.f32.mrf.mxu2 }
 0x497   : > { %v833_v57 = vpop.f32.mrf.mxu2 }
 0x498   : > { %v842_v58 = vsel %vm627_vm14, %v833_v57, -inf }
 0x499   : > { %843 = vmax.xlane.f32.xlu1 %v842_v58 }
 0x49f   : > { %v835_v59 = vpop.f32.mrf.mxu2 }
 0x4a0   : > { %v845_v60 = vsel %vm627_vm14, %v835_v59, -inf }
 0x4a1   : > { %846 = vmax.xlane.f32.xlu2 %v845_v60 }
 0x4a7   : > { %v1869_v61 = vpop.f32.mrf.mxu2 }
 0x4a8   : > { %v848_v42 = vsel %vm634_vm15, %v1869_v61, -inf }
 0x4af   : > { %v840_v62 = vpop.f32.mrf.mxu2 }
 0x4b8   : > { %v745_v63 = vpop.xlane.xlu0 %744 }
 0x4b9   : > { %v748_v0 = vsub.f32 %v733_v37, %v745_v63  ;;  %774 = vrot.lane.b32.xlu2 %v1799_v23, %s1656_s18  ;;  %s440_s18 = scalar_lea.vmem %s2035_s13, %s1524_s27 }
 0x4bb   : > { %v753_v1 = vmul.f32 1.442695, %v748_v0 }
 0x4bd   : > { %1595 = vpow2.f32 %v753_v1 }
 0x4c0   : > { %v757_v26 = vpop.xlane.xlu0 %756 }
 0x4c3   : > { %v1596_v4 = vpop.eup %1595 }
 0x4c4   : > { %v761_v5 = vsel %vm634_vm15, %v1596_v4, 0.0 }
 0x4c5   : > { %762 = vadd.xlane.f32.xlu1 %v761_v5 }
 0x4cd   : > { %954 = vmax.xlane.f32.xlu1 %v953_v7 }
 0x4d3   : > { %v773_v40 = vpop.permute.xlu0 %772 }
 0x4d8   : > { %v949_v8 = vpop.xlane.xlu1 %948 }
 0x4d9   : > { %v956_v9 = vsub.f32 %v938_v45, %v949_v8 }
 0x4db   : > { %v959_v10 = vmul.f32 1.442695, %v956_v9 }
 0x4dd   : > { %1597 = vpow2.f32 %v959_v10 }
 0x4e0   : > { %v952_v11 = vpop.xlane.xlu2 %951  ;;  %v760_v19 = vpop.xlane.xlu1 %759 }
 0x4e1   : > { %v957_v12 = vsub.f32 %v940_v48, %v952_v11 }
 0x4e3   : > { %v1875_v13 = vpop.eup %1597  ;;  %v961_v15 = vmul.f32 1.442695, %v957_v12 }
 0x4e4   : > { %v965_v16 = vsel %vm627_vm14, %v1875_v13, 0.0 }
 0x4e5   : > { %1599 = vpow2.f32 %v961_v15  ;;  %966 = vadd.xlane.f32.xlu1 %v965_v16 }
 0x4eb   : > { %v1600_v17 = vpop.eup %1599 }
 0x4ec   : > { %v968_v18 = vsel %vm627_vm14, %v1600_v17, 0.0 }
 0x4ed   : > { %969 = vadd.xlane.f32.xlu1 %v968_v18 }
 0x506   : > { %879 = vrot.lane.b32.xlu1 %v1799_v23, %s1657_s19 }
 0x50c   : > { %v844_v21 = vpop.xlane.xlu1 %843 }
 0x50d   : > { %v851_v22 = vsub.f32 %v833_v57, %v844_v21 }
 0x50f   : > { %v854_v24 = vmul.f32 1.442695, %v851_v22 }
 0x511   : > { %1601 = vpow2.f32 %v854_v24 }
 0x512   : > { %1603 = vrcp.f32 %v760_v19 }
 0x513   : > { %1605 = vrcp.f32 %v757_v26 }
 0x514   : > { %v847_v25 = vpop.xlane.xlu2 %846 }
 0x515   : > { %v852_v27 = vsub.f32 %v835_v59, %v847_v25 }
 0x517   : > { %v1602_v28 = vpop.eup %1601  ;;  %v856_v29 = vmul.f32 1.442695, %v852_v27 }
 0x518   : > { %v860_v30 = vsel %vm627_vm14, %v1602_v28, 0.0  ;;  %v1604_v31 = vpop.eup %1603 }
 0x519   : > { %1607 = vpow2.f32 %v856_v29  ;;  %861 = vadd.xlane.f32.xlu0 %v860_v30  ;;  %v1606_v34 = vpop.eup %1605  ;;  %v768_v36 = vmul.f32 %v1604_v31, %v1854_v47 }
 0x51a   : > { %v767_v38 = vmul.f32 %v1606_v34, %v1848_v39 }
 0x51c   : > { %v775_v32 = vpop.permute.xlu2 %774  ;;  %v770_v41 = vpack.c.bf16 %v768_v36, %v767_v38 }
 0x51d   : > { %v784_v33 = vsel %vm675_vm13, %v775_v32, 0 }
 0x51e   : > { %792 = vmatpush.bf16.msrb.mxu0 %v784_v33 }
 0x51f   : > { %v1608_v35 = vpop.eup %1607 }
 0x520   : > { %v863_v37 = vsel %vm627_vm14, %v1608_v35, 0.0 }
 0x521   : > { %864 = vadd.xlane.f32.xlu2 %v863_v37 }
 0x522   : > { %793 = vmatpush.bf16.msrb.mxu0 %v773_v40 }
 0x525   : > { %1442 = vmatmul.msk.bf16.vlgmr.msrb.gmra.mxu0 %vm627_vm14, %v770_v41  ;;  %v1509_v41 = vld [vmem:[%s2027_s5 + $0x8] sm:$0xff] }
 0x526   : > { %1091 = vmatpush.bf16.msra.mxu2 %v1509_v41 }
 0x52d   : > { %984 = vrot.lane.b32.xlu0 %v1799_v23, %s1658_s20 }
 0x530   : > { %849 = vmax.xlane.f32.xlu1 %v848_v42  ;;  %v1508_v42 = vld [vmem:[%s2027_s5] sm:$0xff] }
 0x531   : > { %1092 = vmatpush.bf16.msra.mxu2 %v1508_v42 }
 0x538   : > { %v763_v43 = vpop.xlane.xlu1 %762 }
 0x539   : > { %1609 = vrcp.f32 %v763_v43  ;;  %877 = vrot.lane.b32.xlu2 %v1796_v20, %s1657_s19 }
 0x53f   : > { %v1610_v44 = vpop.eup %1609 }
 0x540   : > { %v769_v39 = vmul.f32 %v1610_v44, %v1596_v4  ;;  %v955_v45 = vpop.xlane.xlu1 %954 }
 0x541   : > { %v958_v47 = vsub.f32 %v1859_v51, %v955_v45 }
 0x542   : > { %v771_v46 = vpack.c.bf16 %v769_v39, %v769_v39 }
 0x543   : > { %v963_v48 = vmul.f32 1.442695, %v958_v47 }
 0x544   : > { %1443 = vmatmul.msk.bf16.gmra.mxu0 %vm627_vm14, %v771_v46 }
 0x545   : > { %1611 = vpow2.f32 %v963_v48 }
 0x549   : > { %982 = vrot.lane.b32.xlu1 %v1796_v20, %s1658_s20 }
 0x54b   : > { %v1612_v23 = vpop.eup %1611 }
 0x54c   : > { %v971_v49 = vsel %vm634_vm15, %v1612_v23, 0.0 }
 0x557   : > { %972 = vadd.xlane.f32.xlu0 %v971_v49 }
 0x558   : > { %v967_v50 = vpop.xlane.xlu1 %966 }
 0x559   : > { %1613 = vrcp.f32 %v967_v50 }
 0x55f   : > { %v1614_v56 = vpop.eup %1613 }
 0x560   : > { %v970_v53 = vpop.xlane.xlu1 %969  ;;  %v977_v58 = vmul.f32 %v1614_v56, %v1875_v13 }
 0x561   : > { %1615 = vrcp.f32 %v970_v53 }
 0x567   : > { %v1616_v57 = vpop.eup %1615 }
 0x568   : > { %v978_v59 = vmul.f32 %v1616_v57, %v1600_v17 }
 0x56a   : > { %v980_v60 = vpack.c.bf16 %v978_v59, %v977_v58 }
 0x578   : > { %v880_v62 = vpop.permute.xlu1 %879 }
 0x579   : > { %v889_v51 = vsel %vm675_vm13, %v880_v62, 0 }
 0x57a   : > { %897 = vmatpush.bf16.msrb.mxu1 %v889_v51 }
 0x58c   : > { %v862_v20 = vpop.xlane.xlu0 %861 }
 0x58d   : > { %1617 = vrcp.f32 %v862_v20 }
 0x593   : > { %v1618_v0 = vpop.eup %1617 }
 0x594   : > { %v865_v63 = vpop.xlane.xlu2 %864  ;;  %v872_v4 = vmul.f32 %v1618_v0, %v1602_v28 }
 0x595   : > { %1619 = vrcp.f32 %v865_v63 }
 0x59b   : > { %v1620_v1 = vpop.eup %1619 }
 0x59c   : > { %v873_v5 = vmul.f32 %v1620_v1, %v1608_v35  ;;  %v878_v7 = vpop.permute.xlu2 %877 }
 0x59d   : > { %898 = vmatpush.bf16.msrb.mxu1 %v878_v7 }
 0x59e   : > { %v875_v8 = vpack.c.bf16 %v873_v5, %v872_v4  ;;  %v1566_v5 = vld [vmem:[%s2028_s6] ss:$0 sm:$0xff] }
 0x59f   : > { %v985_v9 = vpop.permute.xlu0 %984 }
 0x5a0   : > { %v994_v10 = vsel %vm675_vm13, %v985_v9, 0  ;;  %1446 = vmatmul.msk.bf16.vlgmr.msrb.gmra.mxu1 %vm627_vm14, %v875_v8 }
 0x5a1   : > { %1002 = vmatpush.bf16.msra.mxu0 %v994_v10 }
 0x5a2   : > { %v795_v11 = vpop.f32.mrf.mxu0 }
 0x5a3   : > { %v850_v12 = vpop.xlane.xlu1 %849 }
 0x5a4   : > { %v853_v13 = vsub.f32 %v1869_v61, %v850_v12 }
 0x5a6   : > { %v858_v15 = vmul.f32 1.442695, %v853_v13 }
 0x5a8   : > { %1621 = vpow2.f32 %v858_v15 }
 0x5aa   : > { %v797_v16 = vpop.f32.mrf.mxu0 }
 0x5ab   : > { %v1548_v17 = vpack.i.bf16 %v797_v16, %v795_v11 }
 0x5ad   : > { %1549 = vrot.lane.b32.xlu2 %v1548_v17, %s1659_s21 }
 0x5ae   : > { %v1622_v18 = vpop.eup %1621 }
 0x5af   : > { %v866_v19 = vsel %vm634_vm15, %v1622_v18, 0.0 }
 0x5b0   : > { %867 = vadd.xlane.f32.xlu1 %v866_v19 }
 0x5bb   : > { %v983_v21 = vpop.permute.xlu1 %982 }
 0x5bc   : > { %1003 = vmatpush.bf16.msra.mxu0 %v983_v21 }
 0x5bf   : > { %1450 = vmatmul.msk.bf16.vlgmr.msra.gmra.mxu0 %vm627_vm14, %v980_v60 }
 0x5c1   : > { %v800_v22 = vpop.f32.mrf.mxu0 }
 0x5c9   : > { %v802_v24 = vpop.f32.mrf.mxu0 }
 0x5ca   : > { %v973_v25 = vpop.xlane.xlu0 %972 }
 0x5cb   : > { %1623 = vrcp.f32 %v973_v25 }
 0x5d1   : > { %v1624_v61 = vpop.eup %1623 }
 0x5d2   : > { %v979_v26 = vmul.f32 %v1624_v61, %v1612_v23 }
 0x5d4   : > { %v981_v27 = vpack.c.bf16 %v979_v26, %v979_v26 }
 0x5d6   : > { %1451 = vmatmul.msk.bf16.gmra.mxu0 %vm627_vm14, %v981_v27 }
 0x607   : > { %v1550_v43 = vpop.permute.xlu2 %1549 }
 0x608   : > { %v1552_v39 = vunpack.i.h.bf16 %v1550_v43  ;;  %v1551_v45 = vunpack.i.l.bf16 %v1550_v43 }
 0x60a   : > { %v1051_v23 = vsel %vm596_vm12, %v1863_v54, %v1552_v39  ;;  %v1050_v49 = vsel %vm596_vm12, %v1861_v52, %v1551_v45 }
 0x61d   : > { %v900_v28 = vpop.f32.mrf.mxu1 }
 0x623   : > { %v868_v29 = vpop.xlane.xlu1 %867 }
 0x624   : > { %1625 = vrcp.f32 %v868_v29 }
 0x625   : > { %v902_v30 = vpop.f32.mrf.mxu1 }
 0x626   : > { %v1553_v31 = vpack.i.bf16 %v902_v30, %v900_v28  ;;  %v1511_v28 = vld [vmem:[%s2031_s9 + $0x8] sm:$0xff] }
 0x627   : > { %1227 = vmatpush.bf16.msra.mxu1 %v1511_v28 }
 0x628   : > { %1554 = vrot.lane.b32.xlu2 %v1553_v31, %s1660_s22  ;;  %v1510_v31 = vld [vmem:[%s2031_s9] sm:$0xff] }
 0x62a   : > { %v1626_v32 = vpop.eup %1625 }
 0x62b   : > { %v874_v33 = vmul.f32 %v1626_v32, %v1622_v18  ;;  %1228 = vmatpush.bf16.msra.mxu1 %v1510_v31 }
 0x62d   : > { %v876_v34 = vpack.c.bf16 %v874_v33, %v874_v33 }
 0x62f   : > { %1447 = vmatmul.msk.bf16.gmra.mxu1 %vm627_vm14, %v876_v34 }
 0x63c   : > { %v1005_v35 = vpop.f32.mrf.mxu0 }
 0x644   : > { %v1007_v36 = vpop.f32.mrf.mxu0 }
 0x645   : > { %v1558_v37 = vpack.i.bf16 %v1007_v36, %v1005_v35 }
 0x647   : > { %1559 = vrot.lane.b32.xlu2 %v1558_v37, %s1661_s23 }
 0x64f   : > { %1021 = vrot.lane.b32.xlu2 %v800_v22, %s1659_s21 }
 0x653   : > { %v1010_v38 = vpop.f32.mrf.mxu0 }
 0x657   : > { %1045 = vrot.lane.b32.xlu2 %v1010_v38, %s1661_s23 }
 0x65b   : > { %v1012_v40 = vpop.f32.mrf.mxu0 }
 0x682   : > { %v1555_v44 = vpop.permute.xlu2 %1554 }
 0x683   : > { %v1557_v46 = vunpack.i.h.bf16 %v1555_v44  ;;  %v1556_v47 = vunpack.i.l.bf16 %v1555_v44 }
 0x685   : > { %v1055_v56 = vsel %vm1053_vm2, %v1051_v23, %v1557_v46  ;;  %v1054_v57 = vsel %vm1053_vm2, %v1050_v49, %v1556_v47 }
 0x6a1   : > { %v1560_v48 = vpop.permute.xlu2 %1559 }
 0x6a2   : > { %v1562_v50 = vunpack.i.h.bf16 %v1560_v48  ;;  %v1561_v53 = vunpack.i.l.bf16 %v1560_v48 }
 0x6a4   : > { %v1058_v58 = vsel %vm1057_vm3, %v1054_v57, %v1561_v53  ;;  %v1059_v59 = vsel %vm1057_vm3, %v1055_v56, %v1562_v50  ;;  %v1567_v53 = vld [vmem:[%s2029_s7] ss:$0 sm:$0xff] }
 0x6a5   : > { %v1061_v60 = vpack.c.bf16 %v1059_v59, %v1058_v58 }
 0x6a7   : > { %1460 = vmatmul.msk.bf16.vlgmr.msra.gmra.mxu2 %vm450_vm0, %v1061_v60  ;;  %v1568_v60 = vld [vmem:[%s2030_s8] ss:$0 sm:$0xff] }
 0x6a9   : > { %v1022_v51 = vpop.permute.xlu2 %1021 }
 0x6aa   : > { %v1052_v52 = vsel %vm596_vm12, %v1865_v55, %v1022_v51 }
 0x6ac   : > { %v905_v62 = vpop.f32.mrf.mxu1 }
 0x6ad   : > { %1033 = vrot.lane.b32.xlu1 %v905_v62, %s1660_s22 }
 0x6b1   : > { %v1046_v63 = vpop.permute.xlu2 %1045 }
 0x6b4   : > { %v907_v54 = vpop.f32.mrf.mxu1 }
 0x71f   : > { %v1034_v20 = vpop.permute.xlu1 %1033 }
 0x720   : > { %v1056_v0 = vsel %vm1053_vm2, %v1052_v52, %v1034_v20 }
 0x721   : > { %v1060_v1 = vsel %vm1057_vm3, %v1056_v0, %v1046_v63 }
 0x722   : > { %v1062_v4 = vpack.c.bf16 %v1060_v1, %v1060_v1 }
 0x724   : > { %1461 = vmatmul.msk.bf16.gmra.mxu2 %vm450_vm0, %v1062_v4 }
 0x72a   : > { %v1094_v7 = vpop.f32.mrf.mxu2 }
 0x72b   : > { %v1103_v8 = vadd.f32 %v1748_v2, %v1094_v7 }
 0x72d   : > { %v1934_v9 = vadd.f32 %v1566_v5, %v1103_v8 }
 0x72f   : > { %v1115_v55 = vsel %vm450_vm0, %v1934_v9, 0.0 }
 0x730   : > { %1116 = vadd.xlane.f32.xlu0 %v1115_v55 }
 0x732   : > { %v1096_v10 = vpop.f32.mrf.mxu2 }
 0x733   : > { %v1104_v11 = vadd.f32 %v1756_v6, %v1096_v10  ;;  %v1518_v10 = vld [vmem:[%s2033_s11 + $0x30] sm:$0xff] }
 0x735   : > { %v1939_v12 = vadd.f32 %v1566_v5, %v1104_v11 }
 0x737   : > { %v1118_v13 = vsel %vm450_vm0, %v1939_v12, 0.0 }
 0x738   : > { %1119 = vadd.xlane.f32.xlu2 %v1118_v13 }
 0x7a3   : > { %v1117_v15 = vpop.xlane.xlu0 %1116 }
 0x7a4   : > { %v1124_v17 = vmul.f32 %v1117_v15, %v1760_v14 }
 0x7a6   : > { %v1127_v21 = vsub.f32 %v1934_v9, %v1124_v17  ;;  %v1516_v17 = vld [vmem:[%s2033_s11 + $0x20] sm:$0xff] }
 0x7a7   : > { %v1099_v16 = vpop.f32.mrf.mxu2 }
 0x7a8   : > { %v1105_v2 = vadd.f32 %v1099_v16, %v1750_v3  ;;  %v1130_v26 = vmul.f32 %v1127_v21, %v1127_v21 }
 0x7aa   : > { %v1945_v18 = vadd.f32 %v1566_v5, %v1105_v2  ;;  %v1133_v3 = vsel %vm450_vm0, %v1130_v26, 0.0  ;;  %v1519_v5 = vld [vmem:[%s2033_s11 + $0x38] sm:$0xff]  ;;  %v1569_v26 = vld [vmem:[%s2032_s10] ss:$0 sm:$0xff] }
 0x7ab   : > { %v1120_v19 = vpop.xlane.xlu2 %1119  ;;  %1336 = vmatpush.bf16.msra.mxu3 %v1519_v5 }
 0x7ac   : > { %v1125_v22 = vmul.f32 %v1120_v19, %v1760_v14  ;;  %v1121_v6 = vsel %vm457_vm1, %v1945_v18, 0.0 }
 0x7ad   : > { %1122 = vadd.xlane.f32.xlu0 %v1121_v6  ;;  %v1514_v6 = vld [vmem:[%s2033_s11 + $0x10] sm:$0xff] }
 0x7ae   : > { %v1128_v24 = vsub.f32 %v1939_v12, %v1125_v22 }
 0x7af   : > { %v1101_v25 = vpop.f32.mrf.mxu2  ;;  %1337 = vmatpush.bf16.msra.mxu3 %v1518_v10 }
 0x7b0   : > { %v1131_v61 = vmul.f32 %v1128_v24, %v1128_v24  ;;  %v1513_v25 = vld [vmem:[%s2033_s11 + $0x8] sm:$0xff] }
 0x7b2   : > { %v1136_v27 = vsel %vm450_vm0, %v1131_v61, 0.0  ;;  %v1512_v61 = vld [vmem:[%s2033_s11] sm:$0xff] }
 0x7b3   : > { %1137 = vadd.xlane.f32.xlu1 %v1136_v27 }
 0x7b5   : > { %1134 = vadd.xlane.f32.xlu0 %v1133_v3 }
 0x820   : > { %v1123_v29 = vpop.xlane.xlu0 %1122 }
 0x821   : > { %v1126_v30 = vmul.f32 %v1123_v29, %v1760_v14 }
 0x823   : > { %v1962_v32 = vsub.f32 %v1945_v18, %v1126_v30 }
 0x825   : > { %v1132_v33 = vmul.f32 %v1962_v32, %v1962_v32 }
 0x826   : > { %v1138_v34 = vpop.xlane.xlu1 %1137 }
 0x827   : > { %v1143_v35 = vmul.f32 %v1138_v34, %v1760_v14  ;;  %v1139_v36 = vsel %vm457_vm1, %v1132_v33, 0.0 }
 0x828   : > { %1140 = vadd.xlane.f32.xlu0 %v1139_v36  ;;  %v1135_v37 = vpop.xlane.xlu0 %1134 }
 0x829   : > { %v1146_v38 = vadd.f32 1e-06, %v1143_v35  ;;  %v1142_v40 = vmul.f32 %v1135_v37, %v1760_v14 }
 0x82b   : > { %1627 = vrsqrt.f32 %v1146_v38  ;;  %v1145_v41 = vadd.f32 1e-06, %v1142_v40  ;;  %vm1164_vm5 = vweird.f32 %v1146_v38 }
 0x82d   : > { %1629 = vrsqrt.f32 %v1145_v41  ;;  %vm1154_vm8 = vweird.f32 %v1145_v41 }
 0x831   : > { %v1628_v42 = vpop.eup %1627 }
 0x832   : > { %v1159_v43 = vmul.f32 %v1628_v42, %v1146_v38  ;;  %vm1165_vm4 = vweird.f32 %v1628_v42 }
 0x833   : > { %v1630_v44 = vpop.eup %1629  ;;  %vm1166_vm7 = vmor %vm1164_vm5, %vm1165_vm4 }
 0x834   : > { %v1160_v39 = vmul.f32 %v1628_v42, %v1159_v43  ;;  %v1149_v45 = vmul.f32 %v1630_v44, %v1145_v41  ;;  %vm1155_vm6 = vweird.f32 %v1630_v44 }
 0x835   : > { %vm1156_vm9 = vmor %vm1154_vm8, %vm1155_vm6 }
 0x836   : > { %v1161_v46 = vmul.f32 0.5, %v1160_v39  ;;  %v1150_v47 = vmul.f32 %v1630_v44, %v1149_v45 }
 0x838   : > { %v1162_v48 = vsub.f32 1.5, %v1161_v46  ;;  %v1151_v23 = vmul.f32 0.5, %v1150_v47 }
 0x83a   : > { %v1163_v49 = vmul.f32 %v1628_v42, %v1162_v48  ;;  %v1152_v50 = vsub.f32 1.5, %v1151_v23 }
 0x83c   : > { %v1167_v56 = vsel %vm1166_vm7, %v1628_v42, %v1163_v49  ;;  %v1153_v57 = vmul.f32 %v1630_v44, %v1152_v50 }
 0x83d   : > { %v1179_v58 = vmul.f32 %v1167_v56, %v1128_v24 }
 0x83e   : > { %v1157_v59 = vsel %vm1156_vm9, %v1630_v44, %v1153_v57 }
 0x83f   : > { %v1185_v62 = vmul.f32 %v1567_v53, %v1179_v58  ;;  %v1178_v54 = vmul.f32 %v1157_v59, %v1127_v21  ;;  %v1515_v21 = vld [vmem:[%s2033_s11 + $0x18] sm:$0xff] }
 0x841   : > { %v1184_v51 = vmul.f32 %v1567_v53, %v1178_v54  ;;  %v1191_v52 = vadd.f32 %v1568_v60, %v1185_v62 }
 0x843   : > { %v1190_v20 = vadd.f32 %v1568_v60, %v1184_v51 }
 0x845   : > { %v1193_v63 = vpack.c.bf16 %v1191_v52, %v1190_v20  ;;  %v1570_v20 = vld [vmem:[%s2034_s12] ss:$0 sm:$0xff] }
 0x847   : > { %1470 = vmatmul.msk.bf16.vlgmr.msra.gmra.mxu1 %vm450_vm0, %v1193_v63 }
 0x89b   : > { %v1141_v0 = vpop.xlane.xlu0 %1140 }
 0x89c   : > { %v1144_v1 = vmul.f32 %v1141_v0, %v1760_v14  ;;  %v1517_v14 = vld [vmem:[%s2033_s11 + $0x28] sm:$0xff] }
 0x89d   : > { %1338 = vmatpush.bf16.msra.mxu3 %v1517_v14 }
 0x89e   : > { %v1147_v4 = vadd.f32 1e-06, %v1144_v1 }
 0x8a0   : > { %1631 = vrsqrt.f32 %v1147_v4  ;;  %vm1174_vm11 = vweird.f32 %v1147_v4 }
 0x8a1   : > { %1339 = vmatpush.bf16.msra.mxu3 %v1516_v17 }
 0x8a5   : > { %1340 = vmatpush.bf16.msra.mxu3 %v1515_v21 }
 0x8a6   : > { %v1632_v7 = vpop.eup %1631 }
 0x8a7   : > { %v1169_v8 = vmul.f32 %v1632_v7, %v1147_v4  ;;  %vm1175_vm10 = vweird.f32 %v1632_v7 }
 0x8a8   : > { %vm1176_vm12 = vmor %vm1174_vm11, %vm1175_vm10 }
 0x8a9   : > { %v1170_v55 = vmul.f32 %v1632_v7, %v1169_v8  ;;  %1341 = vmatpush.bf16.msra.mxu3 %v1514_v6 }
 0x8ab   : > { %v1171_v11 = vmul.f32 0.5, %v1170_v55 }
 0x8ad   : > { %v1172_v13 = vsub.f32 1.5, %v1171_v11  ;;  %1342 = vmatpush.bf16.msra.mxu3 %v1513_v25 }
 0x8af   : > { %v1173_v15 = vmul.f32 %v1632_v7, %v1172_v13 }
 0x8b1   : > { %v1177_v16 = vsel %vm1176_vm12, %v1632_v7, %v1173_v15  ;;  %1343 = vmatpush.bf16.msra.mxu3 %v1512_v61 }
 0x8b2   : > { %v1180_v2 = vmul.f32 %v1177_v16, %v1962_v32 }
 0x8b4   : > { %v1186_v19 = vmul.f32 %v1567_v53, %v1180_v2 }
 0x8b6   : > { %v1192_v22 = vadd.f32 %v1568_v60, %v1186_v19 }
 0x8b8   : > { %v1194_v24 = vpack.c.bf16 %v1192_v22, %v1192_v22 }
 0x8ba   : > { %1471 = vmatmul.msk.bf16.gmra.mxu1 %vm450_vm0, %v1194_v24  ;;  %vm1362_vm0 = vcmask 254976  }
 0x8c4   : > { %v1230_v27 = vpop.f32.mrf.mxu1 }
 0x8c5   : > { %v1231_v3 = vadd.f32 %v1569_v26, %v1230_v27 }
 0x8c7   : > { %v1242_v28 = vmul.f32 0.044715, %v1231_v3  ;;  %v1239_v44 = vmul.f32 0.5, %v1231_v3 }
 0x8c9   : > { %v1245_v29 = vmul.f32 %v1242_v28, %v1231_v3 }
 0x8cb   : > { %v1248_v30 = vmul.f32 %v1245_v29, %v1231_v3 }
 0x8cc   : > { %v1232_v31 = vpop.f32.mrf.mxu1 }
 0x8cd   : > { %v1251_v32 = vadd.f32 %v1248_v30, %v1231_v3  ;;  %v1233_v33 = vadd.f32 %v1569_v26, %v1232_v31 }
 0x8cf   : > { %v1243_v34 = vmul.f32 0.044715, %v1233_v33  ;;  %v1254_v35 = vmul.f32 0.7978846, %v1251_v32  ;;  %v1240_v39 = vmul.f32 0.5, %v1233_v33 }
 0x8d1   : > { %v1246_v36 = vmul.f32 %v1243_v34, %v1233_v33  ;;  %1633 = vtanh.f32 %v1254_v35 }
 0x8d3   : > { %v1249_v37 = vmul.f32 %v1246_v36, %v1233_v33 }
 0x8d5   : > { %v1252_v38 = vadd.f32 %v1249_v37, %v1233_v33 }
 0x8d7   : > { %v1255_v40 = vmul.f32 0.7978846, %v1252_v38  ;;  %v1634_v41 = vpop.eup %1633 }
 0x8d8   : > { %v1260_v42 = vadd.f32 1.0, %v1634_v41 }
 0x8d9   : > { %1635 = vtanh.f32 %v1255_v40 }
 0x8da   : > { %v1263_v46 = vmul.f32 %v1260_v42, %v1239_v44 }
 0x8df   : > { %v1636_v43 = vpop.eup %1635 }
 0x8e0   : > { %v1261_v45 = vadd.f32 1.0, %v1636_v43 }
 0x8e2   : > { %v1264_v47 = vmul.f32 %v1261_v45, %v1240_v39 }
 0x8e4   : > { %v1266_v48 = vpack.c.bf16 %v1264_v47, %v1263_v46 }
 0x8e6   : > { %1344 = vmatmul.bf16.vlgmr.msra.gmra.mxu3 %v1266_v48 }
 0x937   : > { %v1235_v23 = vpop.f32.mrf.mxu1 }
 0x938   : > { %v1236_v49 = vadd.f32 %v1569_v26, %v1235_v23 }
 0x93a   : > { %v1244_v50 = vmul.f32 0.044715, %v1236_v49  ;;  %v1241_v62 = vmul.f32 0.5, %v1236_v49 }
 0x93c   : > { %v1247_v53 = vmul.f32 %v1244_v50, %v1236_v49 }
 0x93e   : > { %v1250_v56 = vmul.f32 %v1247_v53, %v1236_v49 }
 0x93f   : > { %v1237_v57 = vpop.f32.mrf.mxu1 }
 0x940   : > { %v1253_v58 = vadd.f32 %v1250_v56, %v1236_v49 }
 0x942   : > { %v1256_v59 = vmul.f32 0.7978846, %v1253_v58 }
 0x944   : > { %1637 = vtanh.f32 %v1256_v59 }
 0x94a   : > { %v1638_v60 = vpop.eup %1637 }
 0x94b   : > { %v1262_v54 = vadd.f32 1.0, %v1638_v60 }
 0x94d   : > { %v1265_v51 = vmul.f32 %v1262_v54, %v1241_v62 }
 0x94f   : > { %v1267_v52 = vpack.c.bf16 %v1265_v51, %v1265_v51 }
 0x951   : > { %1349 = vmatmul.bf16.gmra.mxu3 %v1267_v52 }
 0x969   : > { %v1345_v63 = vpop.f32.mrf.mxu3 }
 0x96a   : > { %v1346_v0 = vadd.f32 %v1570_v20, %v1345_v63 }
 0x96c   : > { %v1354_v1 = vadd.f32 %v1346_v0, %v1934_v9 }
 0x96e   : > { %v1357_v4 = vpack.c.bf16 %v1354_v1, %v1354_v1 }
 0x970   : > { %1360 = vst.msk [vmem:[%s440_s18] sm:$0xf] %vm457_vm1, %v1357_v4 }
 0x971   : > { %v1347_v5 = vpop.f32.mrf.mxu3 }
 0x972   : > { %v1348_v7 = vadd.f32 %v1570_v20, %v1347_v5 }
 0x974   : > { %v1355_v8 = vadd.f32 %v1348_v7, %v1939_v12 }
 0x976   : > { %v1358_v55 = vpack.c.bf16 %v1355_v8, %v1355_v8 }
 0x978   : > { %1361 = vst.msk [vmem:[%s440_s18 + $0x4] sm:$0xf] %vm457_vm1, %v1358_v55 }
 0x9d4   : > { %v1350_v10 = vpop.f32.mrf.mxu3 }
 0x9d5   : > { %v1351_v11 = vadd.f32 %v1570_v20, %v1350_v10 }
 0x9d7   : > { %v1356_v13 = vadd.f32 %v1351_v11, %v1945_v18 }
 0x9d9   : > { %v1359_v9 = vpack.c.bf16 %v1356_v13, %v1356_v13 }
 0x9db   : > { %1363 = vst.msk [vmem:[%s440_s18 + $0x8] sm:$0x3] %vm1362_vm0, %v1359_v9 }
 0x9dc   : > { %v1352_v14 = vpop.f32.mrf.mxu3 }
 0x9dd PF: > { %s23_s25 = sadd.s32 1, %s1645_s25  }
 0x9de   : > { %p20_p4 = scmp.ge.s32.totalorder %s23_s25, 4  }
 0x9e0   :  { %22 = sbr.rel (!%p20_p4) target bundleno = 1 (0x1), region = 102 }

// kernel: _lambda_.7
= control target key start
LH: loop header
LB: loop body
LE: loop exit
PB: predicated region body
PF: predicated region fallthrough
CT: control target
= control target key end

     0   :  { %s3209_s29 = smov 0   ;;  %s3969_s0 = inlined_call_operand.vmem [shape: bf16[2,16,32], index: 0, kind: input, shape index: {}]   ;;  %s3970_s1 = inlined_call_operand.vmem [shape: f32[1,32], index: 1, kind: input, shape index: {}]   ;;  %s3971_s2 = inlined_call_operand.vmem [shape: f32[1,32], index: 2, kind: input, shape index: {}]   ;;  %s3972_s3 = inlined_call_operand.vmem [shape: f32[16,9], index: 3, kind: input, shape index: {}]   ;;  %s3973_s4 = inlined_call_operand.vmem [shape: bf16[288,96], index: 4, kind: input, shape index: {}]   ;;  %s3974_s5 = inlined_call_operand.vmem [shape: f32[1,96], index: 5, kind: input, shape index: {}]   ;;  %s3975_s6 = inlined_call_operand.vmem [shape: bf16[864,48], index: 6, kind: input, shape index: {}]   ;;  %s3976_s7 = inlined_call_operand.vmem [shape: f32[1,48], index: 7, kind: input, shape index: {}]   ;;  %s3977_s8 = inlined_call_operand.vmem [shape: bf16[432,24], index: 8, kind: input, shape index: {}]   ;;  %s3978_s9 = inlined_call_operand.vmem [shape: f32[1,24], index: 9, kind: input, shape index: {}]   ;;  %s3979_s10 = inlined_call_operand.vmem [shape: bf16[216,12], index: 10, kind: input, shape index: {}]   ;;  %s3980_s11 = inlined_call_operand.vmem [shape: f32[1,12], index: 11, kind: input, shape index: {}]   ;;  %s3981_s12 = inlined_call_operand.vmem [shape: bf16[12,8], index: 12, kind: input, shape index: {}]   ;;  %s3982_s13 = inlined_call_operand.vmem [shape: f32[1,8], index: 13, kind: input, shape index: {}]   ;;  %s3983_s14 = inlined_call_operand.vmem [shape: f32[2,16,8], index: 14, kind: output, shape index: {}]  }
   0x1 LB: > { %s2325_s30 = sadd.s32 4294967295, %s3111_s29   ;;  %p2329_p0 = scmp.ge.s32.totalorder %s3111_s29, 1  ;;  %s3111_s29 = sphi %s3209_s29, %s24_s29  }
   0x2   : > { %p412_p1 = scmp.lt.s32.totalorder %s3111_s29, 3 }
   0x4   : > { %p413_p2 = pnand %p2329_p0, %p412_p1 }
   0x5   : > { %p458_p3 = scmp.lt.s32.totalorder (!%p413_p2), %s2325_s30, 1  ;;  %s3123_s17 = smov (!%p413_p2), 32  }
   0x6   : > { %416 = sbr.rel (%p413_p2) target bundleno = 1584 (0x630), region = 76  ;;  %s3124_s18 = smov (!%p413_p2), 64  }
   0x7   : > { %s3126_s27 = smov (!%p413_p2), 16   ;;  %s3127_s28 = smov (!%p413_p2), 80  }
   0x8   : > { %s3128_s15 = smov (!%p413_p2), 112   ;;  %s3129_s16 = smov (!%p413_p2), 48  }
   0x9   : > { %s3130_s20 = smov (!%p413_p2), 120   ;;  %s3131_s21 = smov (!%p413_p2), 40  }
   0xb   : > { %v3220_v0 = vld [vmem:[%s3972_s3 + $0x8] sm:$0xff]  ;;  %v3113_v1 = vmov 2   ;;  %s3985_s30 = smov (!%p458_p3, %s2325_s30), 1  ;;  %v3228_v2 = vld [vmem:[%s3972_s3] sm:$0xff]  ;;  %v3114_v3 = vmov 1   ;;  %vm475_vm0 = vcmask 261120  }
   0xc   : > { %2943 = vset.pattern.permute.xlu1 %v3113_v1  ;;  %2942 = vset.pattern.permute.xlu0 %v3113_v1  ;;  %s2793_s19 = sshll.u32 %s3985_s30, 3  ;;  %v3115_v7 = vmov 6   ;;  %v3116_v10 = vmov 3   ;;  %v3117_v11 = vmov 32.0   ;;  %v3118_v14 = vmov 7   ;;  %v2812_v50 = vld [vmem:[%s3973_s4 + $0x88] sm:$0xff] }
   0xd   : > { %583 = vperm.xlu1 %2943, %v3220_v0   ;;  %2941 = vset.pattern.permute.xlu2 %v3114_v3  ;;  %s462_s22 = scalar_lea.vmem %s3969_s0, %s2793_s19  ;;  %3099 = vrcp.f32 %v3117_v11  ;;  %v3119_v16 = vmov 5   ;;  %v3120_v19 = vmov 4   ;;  %v3121_v31 = vmov 0   ;;  %v2811_v53 = vld [vmem:[%s3973_s4 + $0x80] sm:$0xff]  ;;  %s3125_s19 = smov 96  }
   0xe   : > { %564 = vperm.xlu2 %2941, %v3228_v2   ;;  %v2909_v4 = vld [vmem:[%s462_s22] sm:$0xff]   ;;  %v3122_v32 = vmov 8   ;;  %908 = vmatpush.bf16.msra.mxu2 %v2812_v50  ;;  %vm708_vm13 = vcmask 523264   ;;  %vm711_vm14 = vcmask 785408   ;;  %vm1656_vm15 = vcmask 392192   ;;  %s3132_s22 = smov 24  }
   0xf   : > { %v2910_v5 = vunpack.c.l.bf16 %v2909_v4  ;;  %v2911_v8 = vunpack.c.h.bf16 %v2909_v4  ;;  %v3092_v60 = vld [vmem:[%s3970_s1] ss:$0 sm:$0xff]  ;;  %s2794_s26 = sshll.u32 %s3985_s30, 4 }
  0x10   : > { %v3093_v1 = vld [vmem:[%s3971_s2] ss:$0 sm:$0xff] }
  0x11   : > { %v476_v6 = vsel %vm475_vm0, %v2910_v5, 0.0  ;;  %v479_v9 = vsel %vm475_vm0, %v2911_v8, 0.0 }
  0x12   : > { %477 = vadd.xlane.f32.xlu0 %v476_v6  ;;  %909 = vmatpush.bf16.msra.mxu2 %v2811_v53 }
  0x13   : > { %v3100_v12 = vpop.eup %3099 }
  0x14   : > { %v483_v13 = vmul.f32 32.0, %v3100_v12  ;;  %vm487_vm1 = vweird.f32 %v3100_v12 }
  0x15   : > { %2946 = vset.pattern.permute.xlu1 %v3115_v7 }
  0x16   : > { %629 = vperm.xlu1 %2946, %v3228_v2   ;;  %568 = vperm.xlu2 %2941, %v3220_v0   ;;  %v484_v15 = vsub.f32 1.0, %v483_v13 }
  0x18   : > { %v485_v17 = vmul.f32 %v3100_v12, %v484_v15 }
  0x1a   : > { %480 = vadd.xlane.f32.xlu0 %v479_v9  ;;  %v486_v18 = vadd.f32 %v3100_v12, %v485_v17 }
  0x1c   : > { %v488_v20 = vsel %vm487_vm1, %v3100_v12, %v486_v18  ;;  %vm1661_vm1 = vcmask 130048  }
  0x1e   : > { %2944 = vset.pattern.permute.xlu2 %v3116_v10  ;;  %2948 = vset.pattern.permute.xlu1 %v3118_v14 }
  0x1f   : > { %594 = vperm.xlu2 %2944, %v3228_v2  }
  0x27   : > { %598 = vperm.xlu2 %2944, %v3220_v0  }
  0x2e   : > { %579 = vperm.xlu0 %2942, %v3228_v2  }
  0x2f   : > { %2945 = vset.pattern.permute.xlu2 %v3119_v16 }
  0x30   : > { %619 = vperm.xlu2 %2945, %v3228_v2  }
  0x36   : > { %2949 = vset.pattern.permute.xlu0 %v3118_v14 }
  0x37   : > { %643 = vperm.xlu0 %2949, %v3220_v0  }
  0x38   : > { %623 = vperm.xlu2 %2945, %v3220_v0  }
  0x3f   : > { %2954 = vset.pattern.permute.xlu0 %v3120_v19 }
  0x40   : > { %604 = vperm.xlu0 %2954, %v3228_v2   ;;  %2947 = vset.pattern.permute.xlu2 %v3115_v7 }
  0x41   : > { %633 = vperm.xlu2 %2947, %v3220_v0  }
  0x48   : > { %3091 = vset.pattern.permute.xlu0 %v3122_v32 }
  0x49   : > { %2950 = vset.pattern.permute.xlu2 %v3121_v31 }
  0x4a   : > { %548 = vperm.xlu2 %2950, %v3228_v2  }
  0x52   : > { %2952 = vset.pattern.permute.xlu2 %v3122_v32 }
  0x53   : > { %649 = vperm.xlu2 %2952, %v3228_v2  }
  0x5b   : > { %2955 = vset.pattern.permute.xlu2 %v3120_v19 }
  0x5c   : > { %608 = vperm.xlu2 %2955, %v3220_v0  }
  0x68   : > { %v3259_v33 = vpop.permute.xlu2 %564 }
  0x70   : > { %v3261_v34 = vpop.permute.xlu2 %568 }
  0x79   : > { %v3265_v36 = vpop.permute.xlu2 %594 }
  0x7f   : > { %v3263_v35 = vpop.permute.xlu1 %583 }
  0x81   : > { %v3269_v38 = vpop.permute.xlu2 %598 }
  0x85   : > { %v478_v21 = vpop.xlane.xlu0 %477 }
  0x86   : > { %v489_v22 = vmul.f32 %v488_v20, %v478_v21 }
  0x88   : > { %v491_v23 = vsub.f32 %v2910_v5, %v489_v22  ;;  %v3267_v37 = vpop.permute.xlu1 %629 }
  0x8a   : > { %v493_v24 = vmul.f32 %v491_v23, %v491_v23  ;;  %v3271_v44 = vpop.permute.xlu2 %619 }
  0x8c   : > { %v495_v25 = vsel %vm475_vm0, %v493_v24, 0.0 }
  0x8d   : > { %496 = vadd.xlane.f32.xlu1 %v495_v25  ;;  %v481_v26 = vpop.xlane.xlu0 %480 }
  0x8e   : > { %v490_v27 = vmul.f32 %v488_v20, %v481_v26 }
  0x90   : > { %v3248_v28 = vsub.f32 %v2911_v8, %v490_v27 }
  0x92   : > { %v494_v29 = vmul.f32 %v3248_v28, %v3248_v28  ;;  %v3279_v55 = vpop.permute.xlu2 %623 }
  0x94   : > { %v498_v30 = vsel %vm475_vm0, %v494_v29, 0.0 }
  0x95   : > { %499 = vadd.xlane.f32.xlu1 %v498_v30 }
  0x9b   : > { %v3287_v4 = vpop.permute.xlu2 %633 }
  0xa0   : > { %v3309_v18 = vpop.permute.xlu0 %579 }
  0xa4   : > { %v3311_v19 = vpop.permute.xlu2 %548 }
  0xad   : > { %v3356_v53 = vpop.permute.xlu2 %649 }
  0xae   : > { %639 = vperm.xlu1 %2948, %v3228_v2  }
  0xb6   : > { %2951 = vset.pattern.permute.xlu1 %v3121_v31 }
  0xb7   : > { %553 = vperm.xlu1 %2951, %v3220_v0  }
  0xbf   : > { %2953 = vset.pattern.permute.xlu1 %v3122_v32 }
  0xc0   : > { %653 = vperm.xlu1 %2953, %v3220_v0   ;;  %v541_v0 = vlaneseq }
  0xc2   : > { %v3290_v6 = vshrl.u32 %v541_v0, 7 }
  0xc4   : > { %vm575_vm8 = vcmp.lt.s32.totalorder %v3290_v6, 3  ;;  %vm560_vm9 = vcmp.lt.s32.totalorder %v3290_v6, 4  ;;  %vm615_vm10 = vcmp.lt.s32.totalorder %v3290_v6, 7  ;;  %vm590_vm11 = vcmp.lt.s32.totalorder %v3290_v6, 1 }
  0xc5   : > { %vm543_vm12 = vcmp.lt.s32.totalorder %v3290_v6, 5 }
 0x100   : > { %v497_v39 = vpop.xlane.xlu1 %496 }
 0x101   : > { %v501_v40 = vmul.f32 %v497_v39, %v488_v20 }
 0x103   : > { %v503_v41 = vadd.f32 1e-06, %v501_v40 }
 0x105   : > { %3101 = vrsqrt.f32 %v503_v41  ;;  %vm511_vm3 = vweird.f32 %v503_v41 }
 0x108   : > { %v500_v42 = vpop.xlane.xlu1 %499 }
 0x109   : > { %v502_v43 = vmul.f32 %v500_v42, %v488_v20 }
 0x10b   : > { %v3102_v45 = vpop.eup %3101  ;;  %v504_v46 = vadd.f32 1e-06, %v502_v43 }
 0x10c   : > { %v506_v47 = vmul.f32 %v3102_v45, %v503_v41  ;;  %vm512_vm2 = vweird.f32 %v3102_v45 }
 0x10d   : > { %3103 = vrsqrt.f32 %v504_v46  ;;  %vm513_vm4 = vmor %vm511_vm3, %vm512_vm2  ;;  %vm521_vm6 = vweird.f32 %v504_v46  ;;  %vm1666_vm2 = vcmask 916480   ;;  %vm1671_vm3 = vcmask 654336  }
 0x10e   : > { %v507_v48 = vmul.f32 %v3102_v45, %v506_v47 }
 0x110   : > { %v508_v49 = vmul.f32 0.5, %v507_v48 }
 0x112   : > { %v509_v51 = vsub.f32 1.5, %v508_v49 }
 0x113   : > { %v3104_v52 = vpop.eup %3103 }
 0x114   : > { %v510_v54 = vmul.f32 %v3102_v45, %v509_v51  ;;  %v516_v56 = vmul.f32 %v3104_v52, %v504_v46  ;;  %vm522_vm5 = vweird.f32 %v3104_v52 }
 0x115   : > { %vm523_vm7 = vmor %vm521_vm6, %vm522_vm5  ;;  %vm2061_vm5 = vcmask 195584   ;;  %vm2195_vm6 = vcmask 719872  }
 0x116   : > { %v514_v57 = vsel %vm513_vm4, %v3102_v45, %v510_v54  ;;  %v517_v58 = vmul.f32 %v3104_v52, %v516_v56  ;;  %vm2076_vm4 = vcmask 326656  }
 0x117   : > { %v525_v61 = vmul.f32 %v514_v57, %v491_v23 }
 0x118   : > { %v518_v59 = vmul.f32 0.5, %v517_v58 }
 0x119   : > { %v530_v2 = vmul.f32 %v3092_v60, %v525_v61 }
 0x11a   : > { %v519_v62 = vsub.f32 1.5, %v518_v59 }
 0x11b   : > { %v3294_v8 = vadd.f32 %v3093_v1, %v530_v2  ;;  %v2802_v2 = vld [vmem:[%s3973_s4 + $0x38] sm:$0xff] }
 0x11c   : > { %v520_v63 = vmul.f32 %v3104_v52, %v519_v62  ;;  %v3366_v62 = vpop.permute.xlu0 %643  ;;  %874 = vmatpush.bf16.msra.mxu0 %v2802_v2 }
 0x11d   : > { %v573_v11 = vrot.slane %v3294_v8, 5  ;;  %v558_v14 = vrot.slane %v3294_v8, 4  ;;  %v613_v17 = vrot.slane %v3294_v8, 1  ;;  %v588_v40 = vrot.slane %v3294_v8, 7 }
 0x11e   : > { %v524_v3 = vsel %vm523_vm7, %v3104_v52, %v520_v63  ;;  %v539_v41 = vrot.slane %v3294_v8, 3  ;;  %vm2066_vm7 = vcmask 588800  }
 0x11f   : > { %v526_v5 = vmul.f32 %v524_v3, %v3248_v28  ;;  %v2801_v3 = vld [vmem:[%s3973_s4 + $0x30] sm:$0xff] }
 0x120   : > { %v3292_v7 = vpop.permute.xlu1 %639  ;;  %875 = vmatpush.bf16.msra.mxu0 %v2801_v3 }
 0x121   : > { %v531_v9 = vmul.f32 %v3092_v60, %v526_v5  ;;  %v2810_v5 = vld [vmem:[%s3973_s4 + $0x78] sm:$0xff] }
 0x122   : > { %888 = vmatpush.bf16.msra.mxu1 %v2810_v5 }
 0x123   : > { %v3296_v10 = vadd.f32 %v3093_v1, %v531_v9  ;;  %v2800_v9 = vld [vmem:[%s3973_s4 + $0x28] sm:$0xff] }
 0x124   : > { %876 = vmatpush.bf16.msra.mxu0 %v2800_v9 }
 0x125   : > { %v574_v12 = vrot.slane %v3296_v10, 5  ;;  %v559_v13 = vrot.slane %v3296_v10, 4  ;;  %v614_v15 = vrot.slane %v3296_v10, 1  ;;  %v540_v26 = vrot.slane %v3296_v10, 3 }
 0x126   : > { %v589_v29 = vrot.slane %v3296_v10, 7 }
 0x127   : > { %v577_v16 = vsel %vm575_vm8, %v574_v12, %v573_v11  ;;  %v562_v20 = vsel %vm560_vm9, %v559_v13, %v558_v14  ;;  %v576_v21 = vsel %vm575_vm8, %v573_v11, %v574_v12  ;;  %v561_v23 = vsel %vm560_vm9, %v558_v14, %v559_v13  ;;  %v2809_v11 = vld [vmem:[%s3973_s4 + $0x70] sm:$0xff]  ;;  %v2799_v12 = vld [vmem:[%s3973_s4 + $0x20] sm:$0xff]  ;;  %v2808_v13 = vld [vmem:[%s3973_s4 + $0x68] sm:$0xff] }
 0x128   : > { %v586_v22 = vmul.f32 %v3309_v18, %v577_v16  ;;  %v616_v25 = vsel %vm615_vm10, %v613_v17, %v614_v15  ;;  %v617_v27 = vsel %vm615_vm10, %v614_v15, %v613_v17  ;;  %v571_v31 = vmul.f32 %v3259_v33, %v562_v20  ;;  %889 = vmatpush.bf16.msra.mxu1 %v2809_v11  ;;  %v2798_v14 = vld [vmem:[%s3973_s4 + $0x18] sm:$0xff]  ;;  %v2797_v15 = vld [vmem:[%s3973_s4 + $0x10] sm:$0xff]  ;;  %v2796_v17 = vld [vmem:[%s3973_s4 + $0x8] sm:$0xff] }
 0x129   : > { %v3320_v24 = vpop.permute.xlu1 %553  ;;  %v626_v28 = vmul.f32 %v3271_v44, %v616_v25  ;;  %v627_v30 = vmul.f32 %v3279_v55, %v617_v27  ;;  %v572_v32 = vmul.f32 %v3261_v34, %v561_v23  ;;  %v587_v39 = vmul.f32 %v3263_v35, %v576_v21  ;;  %877 = vmatpush.bf16.msra.mxu0 %v2799_v12  ;;  %v2803_v25 = vld [vmem:[%s3973_s4 + $0x40] sm:$0xff]  ;;  %v3422_v27 = vpop.permute.xlu0 %604 }
 0x12a   : > { %v591_v46 = vsel %vm590_vm11, %v588_v40, %v589_v29  ;;  %v592_v47 = vsel %vm590_vm11, %v589_v29, %v588_v40  ;;  %v3343_v48 = vsel %vm543_vm12, %v540_v26, %v539_v41  ;;  %v3347_v49 = vsel %vm543_vm12, %v539_v41, %v540_v26  ;;  %v3420_v26 = vpop.permute.xlu2 %608 }
 0x12b   : > { %v2971_v42 = vpack.i.bf16 %v627_v30, %v626_v28  ;;  %v2956_v43 = vpack.i.bf16 %v572_v32, %v571_v31  ;;  %v2961_v45 = vpack.i.bf16 %v587_v39, %v586_v22  ;;  %v601_v50 = vmul.f32 %v3265_v36, %v592_v47  ;;  %v2805_v22 = vld [vmem:[%s3973_s4 + $0x50] sm:$0xff] }
 0x12c   : > { %v602_v51 = vmul.f32 %v3269_v38, %v591_v46  ;;  %v637_v52 = vmul.f32 %v3287_v4, %v3343_v48  ;;  %v636_v56 = vmul.f32 %v3267_v37, %v3347_v49  ;;  %v656_v57 = vmul.f32 %v3356_v53, %v576_v21  ;;  %890 = vmatpush.bf16.msra.mxu1 %v2808_v13  ;;  %v2795_v21 = vld [vmem:[%s3973_s4] sm:$0xff] }
 0x12d   : > { %2972 = vrot.lane.b32.xlu0 %v2971_v42, %s3123_s17  ;;  %2957 = vrot.lane.b32.xlu1 %v2956_v43, %s3123_s17  ;;  %v647_v63 = vmul.f32 %v3366_v62, %v562_v20  ;;  %v646_v0 = vmul.f32 %v3292_v7, %v561_v23  ;;  %v2806_v20 = vld [vmem:[%s3973_s4 + $0x58] sm:$0xff]  ;;  %v2804_v23 = vld [vmem:[%s3973_s4 + $0x48] sm:$0xff]  ;;  %v556_v32 = vmul.f32 %v3311_v19, %v3343_v48 }
 0x12e   : > { %2962 = vrot.lane.b32.xlu2 %v2961_v45, %s3124_s18  ;;  %v2966_v59 = vpack.i.bf16 %v602_v51, %v601_v50  ;;  %v2976_v61 = vpack.i.bf16 %v637_v52, %v636_v56  ;;  %878 = vmatpush.bf16.msra.mxu0 %v2798_v14  ;;  %v557_v39 = vmul.f32 %v3320_v24, %v3347_v49 }
 0x12f   : > { %v2981_v1 = vpack.i.bf16 %v647_v63, %v646_v0 }
 0x132   : > { %v3358_v54 = vpop.permute.xlu1 %653  ;;  %879 = vmatpush.bf16.msra.mxu0 %v2797_v15  ;;  %v3094_v15 = vld [vmem:[%s3974_s5] ss:$0 sm:$0xff] }
 0x133   : > { %v657_v58 = vmul.f32 %v3358_v54, %v577_v16  ;;  %v2807_v16 = vld [vmem:[%s3973_s4 + $0x60] sm:$0xff] }
 0x134   : > { %891 = vmatpush.bf16.msra.mxu1 %v2807_v16 }
 0x135   : > { %v722_v60 = vpack.c.bf16 %v657_v58, %v656_v57  ;;  %2967 = vrot.lane.b32.xlu1 %v2966_v59, %s3125_s19  ;;  %v611_v59 = vmul.f32 %v3422_v27, %v3294_v8 }
 0x136   : > { %2977 = vrot.lane.b32.xlu2 %v2976_v61, %s3124_s18  ;;  %880 = vmatpush.bf16.msra.mxu0 %v2796_v17 }
 0x137   : > { %2406 = vmatmul.msk.bf16.vlgmr.msra.gmra.mxu2 %vm475_vm0, %v722_v60  ;;  %v612_v60 = vmul.f32 %v3420_v26, %v3296_v10 }
 0x138   : > { %892 = vmatpush.bf16.msra.mxu1 %v2806_v20 }
 0x13a   : > { %881 = vmatpush.bf16.msra.mxu0 %v2795_v21  ;;  %v2820_v21 = vld [vmem:[%s3975_s6 + $0x38] sm:$0xff] }
 0x13b   : > { %1462 = vmatpush.bf16.msra.mxu3 %v2820_v21 }
 0x13c   : > { %893 = vmatpush.bf16.msra.mxu1 %v2805_v22  ;;  %v2828_v22 = vld [vmem:[%s3975_s6 + $0x78] sm:$0xff] }
 0x13d   : > { %2982 = vrot.lane.b32.xlu1 %v2981_v1, %s3125_s19  ;;  %1476 = vmatpush.bf16.msrb.mxu2 %v2828_v22 }
 0x140   : > { %894 = vmatpush.bf16.msra.mxu1 %v2804_v23 }
 0x144   : > { %895 = vmatpush.bf16.msra.mxu1 %v2803_v25  ;;  %v2819_v25 = vld [vmem:[%s3975_s6 + $0x30] sm:$0xff] }
 0x145   : > { %1463 = vmatpush.bf16.msra.mxu3 %v2819_v25 }
 0x188   : > { %v2963_v29 = vpop.permute.xlu2 %2962 }
 0x189   : > { %v2965_v42 = vunpack.i.h.bf16 %v2963_v29  ;;  %v2964_v43 = vunpack.i.l.bf16 %v2963_v29  ;;  %v2836_v29 = vld [vmem:[%s3975_s6 + $0xb8] sm:$0xff] }
 0x18a   : > { %1490 = vmatpush.bf16.msrb.mxu0 %v2836_v29 }
 0x190   : > { %v2978_v61 = vpop.permute.xlu2 %2977 }
 0x191   : > { %v2980_v1 = vunpack.i.h.bf16 %v2978_v61  ;;  %v2979_v2 = vunpack.i.l.bf16 %v2978_v61 }
 0x19f   : > { %v2958_v28 = vpop.permute.xlu1 %2957  ;;  %v2973_v45 = vpop.permute.xlu0 %2972 }
 0x1a0   : > { %v2960_v30 = vunpack.i.h.bf16 %v2958_v28  ;;  %v2959_v31 = vunpack.i.l.bf16 %v2958_v28  ;;  %v2975_v48 = vunpack.i.h.bf16 %v2973_v45  ;;  %v2974_v56 = vunpack.i.l.bf16 %v2973_v45  ;;  %v2827_v28 = vld [vmem:[%s3975_s6 + $0x70] sm:$0xff] }
 0x1a1   : > { %1477 = vmatpush.bf16.msrb.mxu2 %v2827_v28 }
 0x1a2   : > { %v707_v40 = vsel %vm475_vm0, %v557_v39, %v2960_v30  ;;  %v706_v41 = vsel %vm475_vm0, %v556_v32, %v2959_v31  ;;  %v715_v63 = vsel %vm475_vm0, %v612_v60, %v2975_v48  ;;  %v714_v0 = vsel %vm475_vm0, %v611_v59, %v2974_v56  ;;  %v2835_v31 = vld [vmem:[%s3975_s6 + $0xb0] sm:$0xff]  ;;  %v2818_v39 = vld [vmem:[%s3975_s6 + $0x28] sm:$0xff] }
 0x1a3   : > { %v709_v51 = vsel %vm708_vm13, %v706_v41, %v2964_v43  ;;  %v710_v52 = vsel %vm708_vm13, %v707_v40, %v2965_v42  ;;  %v716_v11 = vsel %vm708_vm13, %v714_v0, %v2979_v2  ;;  %v717_v12 = vsel %vm708_vm13, %v715_v63, %v2980_v1  ;;  %v2826_v40 = vld [vmem:[%s3975_s6 + $0x68] sm:$0xff]  ;;  %1491 = vmatpush.bf16.msrb.mxu0 %v2835_v31 }
 0x1a4   : > { %1464 = vmatpush.bf16.msra.mxu3 %v2818_v39 }
 0x1a5   : > { %1478 = vmatpush.bf16.msrb.mxu2 %v2826_v40 }
 0x1a7   : > { %v2968_v46 = vpop.permute.xlu1 %2967 }
 0x1a8   : > { %v2970_v47 = vunpack.i.h.bf16 %v2968_v46  ;;  %v2969_v50 = vunpack.i.l.bf16 %v2968_v46 }
 0x1aa   : > { %v712_v49 = vsel %vm711_vm14, %v709_v51, %v2969_v50  ;;  %v713_v57 = vsel %vm711_vm14, %v710_v52, %v2970_v47  ;;  %v2817_v47 = vld [vmem:[%s3975_s6 + $0x20] sm:$0xff] }
 0x1ab   : > { %v720_v58 = vpack.c.bf16 %v713_v57, %v712_v49  ;;  %v2825_v50 = vld [vmem:[%s3975_s6 + $0x60] sm:$0xff]  ;;  %1465 = vmatpush.bf16.msra.mxu3 %v2817_v47 }
 0x1ac   : > { %1479 = vmatpush.bf16.msrb.mxu2 %v2825_v50  ;;  %v2816_v50 = vld [vmem:[%s3975_s6 + $0x18] sm:$0xff] }
 0x1ad   : > { %882 = vmatmul.bf16.vlgmr.msra.gmra.mxu0 %v720_v58 }
 0x1af   : > { %v2983_v3 = vpop.permute.xlu1 %2982  ;;  %1466 = vmatpush.bf16.msra.mxu3 %v2816_v50  ;;  %v2846_v50 = vld [vmem:[%s3975_s6 + $0x108] sm:$0xff] }
 0x1b0   : > { %v2985_v5 = vunpack.i.h.bf16 %v2983_v3  ;;  %v2984_v9 = vunpack.i.l.bf16 %v2983_v3 }
 0x1b2   : > { %v718_v8 = vsel %vm711_vm14, %v716_v11, %v2984_v9  ;;  %v719_v13 = vsel %vm711_vm14, %v717_v12, %v2985_v5 }
 0x1b3   : > { %v721_v10 = vpack.c.bf16 %v719_v13, %v718_v8 }
 0x1b5   : > { %896 = vmatmul.bf16.vlgmr.msra.gmra.mxu1 %v721_v10 }
 0x1ba   : > { %v911_v16 = vpop.f32.mrf.mxu2 }
 0x1c2   : > { %v913_v45 = vpop.f32.mrf.mxu2 }
 0x22a   : > { %v883_v14 = vpop.f32.mrf.mxu0 }
 0x22b   : > { %v884_v17 = vadd.f32 %v3094_v15, %v883_v14 }
 0x232   : > { %v897_v20 = vpop.f32.mrf.mxu1  ;;  %v885_v30 = vpop.f32.mrf.mxu0 }
 0x233   : > { %v898_v23 = vadd.f32 %v897_v20, %v884_v17  ;;  %v886_v41 = vadd.f32 %v3094_v15, %v885_v30 }
 0x235   : > { %v912_v32 = vadd.f32 %v911_v16, %v898_v23 }
 0x237   : > { %v3471_v46 = vmax.f32 %v912_v32, 0.0 }
 0x239   : > { %v936_v48 = vrot.slane %v3471_v46, 7  ;;  %v930_v49 = vrot.slane %v3471_v46, 5  ;;  %v924_v59 = vrot.slane %v3471_v46, 4  ;;  %v944_v21 = vrot.slane %v3471_v46, 1 }
 0x23a   : > { %v899_v42 = vpop.f32.mrf.mxu1  ;;  %v918_v22 = vrot.slane %v3471_v46, 3 }
 0x23b   : > { %v900_v43 = vadd.f32 %v899_v42, %v886_v41 }
 0x23d   : > { %v914_v51 = vadd.f32 %v913_v45, %v900_v43 }
 0x23f   : > { %v3479_v52 = vmax.f32 %v914_v51, 0.0  ;;  %v2824_v51 = vld [vmem:[%s3975_s6 + $0x58] sm:$0xff] }
 0x240   : > { %1480 = vmatpush.bf16.msrb.mxu2 %v2824_v51  ;;  %v2854_v51 = vld [vmem:[%s3975_s6 + $0x148] sm:$0xff] }
 0x241   : > { %v937_v56 = vrot.slane %v3479_v52, 7  ;;  %v931_v57 = vrot.slane %v3479_v52, 5  ;;  %v925_v58 = vrot.slane %v3479_v52, 4  ;;  %v945_v60 = vrot.slane %v3479_v52, 1 }
 0x242   : > { %v919_v61 = vrot.slane %v3479_v52, 3 }
 0x243   : > { %v938_v63 = vsel %vm590_vm11, %v936_v48, %v937_v56  ;;  %v939_v0 = vsel %vm590_vm11, %v937_v56, %v936_v48  ;;  %v932_v1 = vsel %vm575_vm8, %v930_v49, %v931_v57  ;;  %v933_v2 = vsel %vm575_vm8, %v931_v57, %v930_v49  ;;  %v2834_v48 = vld [vmem:[%s3975_s6 + $0xa8] sm:$0xff]  ;;  %v2815_v56 = vld [vmem:[%s3975_s6 + $0x10] sm:$0xff]  ;;  %v2844_v57 = vld [vmem:[%s3975_s6 + $0xf8] sm:$0xff] }
 0x244   : > { %v940_v3 = vmul.f32 %v939_v0, %v3265_v36  ;;  %v941_v5 = vmul.f32 %v938_v63, %v3269_v38  ;;  %v934_v9 = vmul.f32 %v933_v2, %v3309_v18  ;;  %v935_v11 = vmul.f32 %v932_v1, %v3263_v35  ;;  %v2823_v49 = vld [vmem:[%s3975_s6 + $0x50] sm:$0xff]  ;;  %1492 = vmatpush.bf16.msrb.mxu0 %v2834_v48  ;;  %v2813_v0 = vld [vmem:[%s3975_s6] sm:$0xff]  ;;  %v2862_v48 = vld [vmem:[%s3975_s6 + $0x188] sm:$0xff] }
 0x245   : > { %v3502_v12 = vmul.f32 %v932_v1, %v3356_v53  ;;  %v3505_v8 = vmul.f32 %v933_v2, %v3358_v54  ;;  %v926_v13 = vsel %vm560_vm9, %v924_v59, %v925_v58  ;;  %v927_v10 = vsel %vm560_vm9, %v925_v58, %v924_v59  ;;  %v2833_v58 = vld [vmem:[%s3975_s6 + $0xa0] sm:$0xff]  ;;  %1504 = vmatpush.bf16.msrb.mxu1 %v2844_v57  ;;  %v2814_v59 = vld [vmem:[%s3975_s6 + $0x8] sm:$0xff]  ;;  %v2843_v63 = vld [vmem:[%s3975_s6 + $0xf0] sm:$0xff] }
 0x246   : > { %v2996_v14 = vpack.i.bf16 %v941_v5, %v940_v3  ;;  %v2991_v15 = vpack.i.bf16 %v935_v11, %v934_v9  ;;  %v928_v16 = vmul.f32 %v927_v10, %v3259_v33  ;;  %v929_v17 = vmul.f32 %v926_v13, %v3261_v34  ;;  %1467 = vmatpush.bf16.msra.mxu3 %v2815_v56  ;;  %v2821_v1 = vld [vmem:[%s3975_s6 + $0x40] sm:$0xff]  ;;  %v2831_v2 = vld [vmem:[%s3975_s6 + $0x90] sm:$0xff]  ;;  %v2842_v3 = vld [vmem:[%s3975_s6 + $0xe8] sm:$0xff] }
 0x247   : > { %v1022_v20 = vpack.c.bf16 %v3505_v8, %v3502_v12  ;;  %v946_v25 = vsel %vm615_vm10, %v944_v21, %v945_v60  ;;  %v947_v28 = vsel %vm615_vm10, %v945_v60, %v944_v21  ;;  %v3525_v29 = vsel %vm543_vm12, %v918_v22, %v919_v61  ;;  %1481 = vmatpush.bf16.msrb.mxu2 %v2823_v49  ;;  %v2822_v60 = vld [vmem:[%s3975_s6 + $0x48] sm:$0xff]  ;;  %v2852_v5 = vld [vmem:[%s3975_s6 + $0x138] sm:$0xff]  ;;  %v2845_v56 = vld [vmem:[%s3975_s6 + $0x100] sm:$0xff] }
 0x248   : > { %2997 = vrot.lane.b32.xlu1 %v2996_v14, %s3123_s17  ;;  %2992 = vrot.lane.b32.xlu2 %v2991_v15, %s3124_s18  ;;  %v2986_v23 = vpack.i.bf16 %v929_v17, %v928_v16  ;;  %v3529_v30 = vsel %vm543_vm12, %v919_v61, %v918_v22  ;;  %v952_v31 = vmul.f32 %v926_v13, %v3292_v7  ;;  %v2832_v61 = vld [vmem:[%s3975_s6 + $0x98] sm:$0xff]  ;;  %v2830_v11 = vld [vmem:[%s3975_s6 + $0x88] sm:$0xff] }
 0x249   : > { %v953_v32 = vmul.f32 %v927_v10, %v3366_v62  ;;  %v950_v39 = vmul.f32 %v3525_v29, %v3267_v37  ;;  %v951_v40 = vmul.f32 %v3529_v30, %v3287_v4  ;;  %v948_v41 = vmul.f32 %v946_v25, %v3271_v44  ;;  %1493 = vmatpush.bf16.msrb.mxu0 %v2833_v58  ;;  %v2860_v9 = vld [vmem:[%s3975_s6 + $0x178] sm:$0xff]  ;;  %v2841_v13 = vld [vmem:[%s3975_s6 + $0xe0] sm:$0xff]  ;;  %v2851_v10 = vld [vmem:[%s3975_s6 + $0x130] sm:$0xff] }
 0x24a   : > { %2987 = vrot.lane.b32.xlu0 %v2986_v23, %s3125_s19  ;;  %v949_v42 = vmul.f32 %v947_v28, %v3279_v55  ;;  %1468 = vmatpush.bf16.msra.mxu3 %v2814_v59  ;;  %v2859_v14 = vld [vmem:[%s3975_s6 + $0x170] sm:$0xff]  ;;  %v2829_v15 = vld [vmem:[%s3975_s6 + $0x80] sm:$0xff]  ;;  %v2840_v16 = vld [vmem:[%s3975_s6 + $0xd8] sm:$0xff] }
 0x24b   : > { %v3011_v43 = vpack.i.bf16 %v953_v32, %v952_v31  ;;  %v3006_v45 = vpack.i.bf16 %v951_v40, %v950_v39  ;;  %1482 = vmatpush.bf16.msrb.mxu2 %v2822_v60  ;;  %1505 = vmatpush.bf16.msrb.mxu1 %v2843_v63  ;;  %v2850_v17 = vld [vmem:[%s3975_s6 + $0x128] sm:$0xff]  ;;  %v2839_v23 = vld [vmem:[%s3975_s6 + $0xd0] sm:$0xff]  ;;  %v2849_v25 = vld [vmem:[%s3975_s6 + $0x120] sm:$0xff] }
 0x24c   : > { %v3001_v47 = vpack.i.bf16 %v949_v42, %v948_v41  ;;  %v2858_v21 = vld [vmem:[%s3975_s6 + $0x168] sm:$0xff]  ;;  %v2857_v28 = vld [vmem:[%s3975_s6 + $0x160] sm:$0xff]  ;;  %v2848_v39 = vld [vmem:[%s3975_s6 + $0x118] sm:$0xff] }
 0x24d   : > { %1494 = vmatpush.bf16.msrb.mxu0 %v2832_v61  ;;  %v2866_v22 = vld [vmem:[%s3975_s6 + $0x1a8] sm:$0xff]  ;;  %v2865_v31 = vld [vmem:[%s3975_s6 + $0x1a0] sm:$0xff]  ;;  %v2856_v40 = vld [vmem:[%s3975_s6 + $0x158] sm:$0xff] }
 0x24e   : > { %1469 = vmatpush.bf16.msra.mxu3 %v2813_v0  ;;  %v2838_v32 = vld [vmem:[%s3975_s6 + $0xc8] sm:$0xff]  ;;  %v2864_v41 = vld [vmem:[%s3975_s6 + $0x198] sm:$0xff]  ;;  %v2837_v42 = vld [vmem:[%s3975_s6 + $0xc0] sm:$0xff] }
 0x24f   : > { %1483 = vmatpush.bf16.msrb.mxu2 %v2821_v1  ;;  %1506 = vmatpush.bf16.msrb.mxu1 %v2842_v3  ;;  %v2853_v49 = vld [vmem:[%s3975_s6 + $0x140] sm:$0xff]  ;;  %v923_v3 = vmul.f32 %v3525_v29, %v3320_v24  ;;  %v2892_v12 = vld [vmem:[%s3977_s8 + $0xc8] sm:$0xff] }
 0x250   : > { %3012 = vrot.lane.b32.xlu1 %v3011_v43, %s3123_s17  ;;  %3007 = vrot.lane.b32.xlu2 %v3006_v45, %s3124_s18  ;;  %v2847_v43 = vld [vmem:[%s3975_s6 + $0x110] sm:$0xff]  ;;  %v2861_v57 = vld [vmem:[%s3975_s6 + $0x180] sm:$0xff] }
 0x251   : > { %1495 = vmatpush.bf16.msrb.mxu0 %v2831_v2  ;;  %v2855_v45 = vld [vmem:[%s3975_s6 + $0x150] sm:$0xff]  ;;  %v922_v2 = vmul.f32 %v3529_v30, %v3311_v19 }
 0x252   : > { %3002 = vrot.lane.b32.xlu0 %v3001_v47, %s3125_s19  ;;  %1518 = vmatpush.bf16.msrb.mxu3 %v2852_v5  ;;  %v2863_v47 = vld [vmem:[%s3975_s6 + $0x190] sm:$0xff] }
 0x253   : > { %1532 = vmatpush.bf16.msra.mxu2 %v2860_v9  ;;  %1507 = vmatpush.bf16.msrb.mxu1 %v2841_v13 }
 0x255   : > { %1496 = vmatpush.bf16.msrb.mxu0 %v2830_v11 }
 0x256   : > { %1519 = vmatpush.bf16.msrb.mxu3 %v2851_v10 }
 0x257   : > { %1533 = vmatpush.bf16.msra.mxu2 %v2859_v14  ;;  %1508 = vmatpush.bf16.msrb.mxu1 %v2840_v16 }
 0x259   : > { %1497 = vmatpush.bf16.msrb.mxu0 %v2829_v15 }
 0x25a   : > { %1520 = vmatpush.bf16.msrb.mxu3 %v2850_v17 }
 0x25b   : > { %1534 = vmatpush.bf16.msra.mxu2 %v2858_v21  ;;  %1509 = vmatpush.bf16.msrb.mxu1 %v2839_v23 }
 0x25d   : > { %1548 = vmatpush.bf16.msra.mxu0 %v2866_v22 }
 0x25e   : > { %1521 = vmatpush.bf16.msrb.mxu3 %v2849_v25  ;;  %v942_v25 = vmul.f32 %v3471_v46, %v3422_v27 }
 0x25f   : > { %1535 = vmatpush.bf16.msra.mxu2 %v2857_v28  ;;  %1510 = vmatpush.bf16.msrb.mxu1 %v2838_v32  ;;  %v943_v28 = vmul.f32 %v3479_v52, %v3420_v26 }
 0x261   : > { %1549 = vmatpush.bf16.msra.mxu0 %v2865_v31 }
 0x262   : > { %1522 = vmatpush.bf16.msrb.mxu3 %v2848_v39 }
 0x263   : > { %1536 = vmatpush.bf16.msra.mxu2 %v2856_v40  ;;  %1511 = vmatpush.bf16.msrb.mxu1 %v2837_v42 }
 0x265   : > { %1550 = vmatpush.bf16.msra.mxu0 %v2864_v41 }
 0x266   : > { %1523 = vmatpush.bf16.msrb.mxu3 %v2847_v43 }
 0x267   : > { %1537 = vmatpush.bf16.msra.mxu2 %v2855_v45 }
 0x269   : > { %1551 = vmatpush.bf16.msra.mxu0 %v2863_v47 }
 0x26a   : > { %1524 = vmatpush.bf16.msrb.mxu3 %v2846_v50 }
 0x26b   : > { %1538 = vmatpush.bf16.msra.mxu2 %v2854_v51 }
 0x26d   : > { %1552 = vmatpush.bf16.msra.mxu0 %v2862_v48 }
 0x26e   : > { %1525 = vmatpush.bf16.msrb.mxu3 %v2845_v56 }
 0x26f   : > { %1539 = vmatpush.bf16.msra.mxu2 %v2853_v49 }
 0x271   : > { %1553 = vmatpush.bf16.msra.mxu0 %v2861_v57  ;;  %v3095_v57 = vld [vmem:[%s3976_s7] ss:$0 sm:$0xff] }
 0x2a2   : > { %v2993_v58 = vpop.permute.xlu2 %2992 }
 0x2a3   : > { %v2995_v60 = vunpack.i.h.bf16 %v2993_v58  ;;  %v2994_v61 = vunpack.i.l.bf16 %v2993_v58  ;;  %v2893_v58 = vld [vmem:[%s3977_s8 + $0xd0] sm:$0xff] }
 0x2aa   : > { %v3008_v40 = vpop.permute.xlu2 %3007 }
 0x2ab   : > { %v3010_v45 = vunpack.i.h.bf16 %v3008_v40  ;;  %v3009_v47 = vunpack.i.l.bf16 %v3008_v40 }
 0x2ba   : > { %v2998_v59 = vpop.permute.xlu1 %2997 }
 0x2bb   : > { %v3000_v63 = vunpack.i.h.bf16 %v2998_v59  ;;  %v2999_v0 = vunpack.i.l.bf16 %v2998_v59 }
 0x2bc   : > { %v2988_v1 = vpop.permute.xlu0 %2987 }
 0x2bd   : > { %v2990_v5 = vunpack.i.h.bf16 %v2988_v1  ;;  %v2989_v9 = vunpack.i.l.bf16 %v2988_v1  ;;  %v1008_v11 = vsel %vm475_vm0, %v2994_v61, %v2999_v0  ;;  %v1009_v13 = vsel %vm475_vm0, %v2995_v60, %v3000_v63 }
 0x2be   : > { %v1018_v10 = vpack.c.bf16 %v1009_v13, %v1008_v11 }
 0x2bf   : > { %v1004_v14 = vsel %vm711_vm14, %v922_v2, %v2989_v9  ;;  %v1005_v15 = vsel %vm711_vm14, %v923_v3, %v2990_v5  ;;  %v1006_v16 = vsel %vm708_vm13, %v2989_v9, %v2994_v61  ;;  %v1007_v17 = vsel %vm708_vm13, %v2990_v5, %v2995_v60 }
 0x2c0   : > { %v1016_v21 = vpack.c.bf16 %v1005_v15, %v1004_v14  ;;  %v1017_v30 = vpack.c.bf16 %v1007_v17, %v1006_v16  ;;  %1498 = vmatmul.bf16.vlgmr.msrb.gmra.mxu0 %v1018_v10 }
 0x2c1   : > { %1948 = vmatpush.bf16.msrb.mxu0 %v2893_v58 }
 0x2c2   : > { %1470 = vmatmul.bf16.vlgmr.msra.gmra.mxu3 %v1016_v21  ;;  %1484 = vmatmul.bf16.vlgmr.msrb.gmra.mxu2 %v1017_v30  ;;  %v3013_v31 = vpop.permute.xlu1 %3012 }
 0x2c3   : > { %v3015_v42 = vunpack.i.h.bf16 %v3013_v31  ;;  %v3014_v43 = vunpack.i.l.bf16 %v3013_v31 }
 0x2c4   : > { %v3003_v29 = vpop.permute.xlu0 %3002 }
 0x2c5   : > { %v3005_v22 = vunpack.i.h.bf16 %v3003_v29  ;;  %v3004_v23 = vunpack.i.l.bf16 %v3003_v29  ;;  %v1014_v50 = vsel %vm475_vm0, %v3009_v47, %v3014_v43  ;;  %v1015_v51 = vsel %vm475_vm0, %v3010_v45, %v3015_v42  ;;  %1949 = vmatpush.bf16.msrb.mxu0 %v2892_v12 }
 0x2c6   : > { %v1021_v48 = vpack.c.bf16 %v1015_v51, %v1014_v50 }
 0x2c7   : > { %v1010_v32 = vsel %vm711_vm14, %v942_v25, %v3004_v23  ;;  %v1011_v39 = vsel %vm711_vm14, %v943_v28, %v3005_v22  ;;  %v1012_v46 = vsel %vm708_vm13, %v3004_v23, %v3009_v47  ;;  %v1013_v52 = vsel %vm708_vm13, %v3005_v22, %v3010_v45 }
 0x2c8   : > { %v1019_v41 = vpack.c.bf16 %v1011_v39, %v1010_v32  ;;  %v1020_v56 = vpack.c.bf16 %v1013_v52, %v1012_v46 }
 0x2ca   : > { %1512 = vmatmul.bf16.vlgmr.msrb.gmra.mxu1 %v1019_v41 }
 0x2d0   : > { %2623 = vmatmul.msk.bf16.vlgmr.msra.gmra.mxu0 %vm711_vm14, %v1022_v20  ;;  %v2891_v20 = vld [vmem:[%s3977_s8 + $0xc0] sm:$0xff] }
 0x2d1   : > { %1950 = vmatpush.bf16.msrb.mxu0 %v2891_v20 }
 0x2d2   : > { %1526 = vmatmul.bf16.vlgmr.msrb.gmra.mxu3 %v1020_v56  ;;  %1540 = vmatmul.bf16.vlgmr.msra.gmra.mxu2 %v1021_v48 }
 0x33d   : > { %v1499_v49 = vpop.f32.mrf.mxu0 }
 0x345   : > { %v1471_v59 = vpop.f32.mrf.mxu3  ;;  %v1485_v60 = vpop.f32.mrf.mxu2 }
 0x346   : > { %v1472_v8 = vadd.f32 %v3095_v57, %v1471_v59  ;;  %v1501_v63 = vpop.f32.mrf.mxu0 }
 0x347   : > { %v1513_v5 = vpop.f32.mrf.mxu1 }
 0x348   : > { %v1486_v61 = vadd.f32 %v1485_v60, %v1472_v8 }
 0x34a   : > { %v1500_v2 = vadd.f32 %v1499_v49, %v1486_v61 }
 0x34c   : > { %v1514_v9 = vadd.f32 %v1513_v5, %v1500_v2 }
 0x34d   : > { %v1473_v0 = vpop.f32.mrf.mxu3  ;;  %v1487_v1 = vpop.f32.mrf.mxu2 }
 0x34e   : > { %v1474_v3 = vadd.f32 %v3095_v57, %v1473_v0  ;;  %v1555_v15 = vpop.f32.mrf.mxu0 }
 0x34f   : > { %v1515_v21 = vpop.f32.mrf.mxu1 }
 0x350   : > { %v1488_v11 = vadd.f32 %v1487_v1, %v1474_v3 }
 0x352   : > { %v1502_v16 = vadd.f32 %v1501_v63, %v1488_v11 }
 0x354   : > { %v1516_v30 = vadd.f32 %v1515_v21, %v1502_v16 }
 0x355   : > { %v1527_v13 = vpop.f32.mrf.mxu3  ;;  %v1541_v10 = vpop.f32.mrf.mxu2 }
 0x356   : > { %v1528_v14 = vadd.f32 %v1527_v13, %v1514_v9  ;;  %v1557_v32 = vpop.f32.mrf.mxu0 }
 0x358   : > { %v1542_v17 = vadd.f32 %v1541_v10, %v1528_v14 }
 0x35a   : > { %v1556_v29 = vadd.f32 %v1555_v15, %v1542_v17 }
 0x35c   : > { %v1560_v31 = vmax.f32 %v1556_v29, 0.0 }
 0x35d   : > { %v1529_v22 = vpop.f32.mrf.mxu3  ;;  %v1543_v25 = vpop.f32.mrf.mxu2 }
 0x35e   : > { %v1530_v23 = vadd.f32 %v1529_v22, %v1516_v30  ;;  %v1586_v41 = vmul.f32 %v1560_v31, %v3422_v27  ;;  %v1580_v42 = vrot.slane %v1560_v31, 7  ;;  %v1574_v43 = vrot.slane %v1560_v31, 5 }
 0x35f   : > { %v1568_v46 = vrot.slane %v1560_v31, 4  ;;  %v1588_v3 = vrot.slane %v1560_v31, 1  ;;  %v1562_v5 = vrot.slane %v1560_v31, 3 }
 0x360   : > { %v1544_v28 = vadd.f32 %v1543_v25, %v1530_v23 }
 0x362   : > { %v1558_v39 = vadd.f32 %v1557_v32, %v1544_v28 }
 0x364   : > { %v1561_v40 = vmax.f32 %v1558_v39, 0.0 }
 0x366   : > { %v1587_v45 = vmul.f32 %v1561_v40, %v3420_v26  ;;  %v1581_v47 = vrot.slane %v1561_v40, 7  ;;  %v1575_v50 = vrot.slane %v1561_v40, 5  ;;  %v1569_v51 = vrot.slane %v1561_v40, 4 }
 0x367   : > { %v1589_v52 = vrot.slane %v1561_v40, 1  ;;  %v1563_v48 = vrot.slane %v1561_v40, 3  ;;  %v2882_v40 = vld [vmem:[%s3977_s8 + $0x78] sm:$0xff] }
 0x368   : > { %v3016_v56 = vpack.i.bf16 %v1587_v45, %v1586_v41  ;;  %v1582_v49 = vsel %vm590_vm11, %v1580_v42, %v1581_v47  ;;  %v1583_v57 = vsel %vm590_vm11, %v1581_v47, %v1580_v42  ;;  %v1576_v58 = vsel %vm575_vm8, %v1574_v43, %v1575_v50  ;;  %v2890_v41 = vld [vmem:[%s3977_s8 + $0xb8] sm:$0xff]  ;;  %1915 = vmatpush.bf16.msra.mxu3 %v2882_v40  ;;  %v2881_v42 = vld [vmem:[%s3977_s8 + $0x70] sm:$0xff]  ;;  %v2880_v47 = vld [vmem:[%s3977_s8 + $0x68] sm:$0xff] }
 0x369   : > { %v1584_v59 = vmul.f32 %v1583_v57, %v3265_v36  ;;  %v1585_v60 = vmul.f32 %v1582_v49, %v3269_v38  ;;  %v1577_v12 = vsel %vm575_vm8, %v1575_v50, %v1574_v43  ;;  %v1598_v8 = vmul.f32 %v1576_v58, %v3356_v53  ;;  %1929 = vmatpush.bf16.msrb.mxu2 %v2890_v41  ;;  %v2889_v43 = vld [vmem:[%s3977_s8 + $0xb0] sm:$0xff]  ;;  %v2874_v45 = vld [vmem:[%s3977_s8 + $0x38] sm:$0xff]  ;;  %v2888_v50 = vld [vmem:[%s3977_s8 + $0xa8] sm:$0xff] }
 0x36a   : > { %3017 = vrot.lane.b32.xlu1 %v3016_v56, %s3124_s18  ;;  %v1599_v20 = vmul.f32 %v1577_v12, %v3358_v54  ;;  %v1578_v61 = vmul.f32 %v1577_v12, %v3309_v18  ;;  %v1579_v63 = vmul.f32 %v1576_v58, %v3263_v35  ;;  %v1570_v0 = vsel %vm560_vm9, %v1568_v46, %v1569_v51  ;;  %v2872_v56 = vld [vmem:[%s3977_s8 + $0x28] sm:$0xff]  ;;  %v2886_v49 = vld [vmem:[%s3977_s8 + $0x98] sm:$0xff]  ;;  %v2877_v57 = vld [vmem:[%s3977_s8 + $0x50] sm:$0xff] }
 0x36b   : > { %v3026_v1 = vpack.i.bf16 %v1585_v60, %v1584_v59  ;;  %v1571_v2 = vsel %vm560_vm9, %v1569_v51, %v1568_v46  ;;  %v1596_v13 = vmul.f32 %v1570_v0, %v3292_v7  ;;  %v1590_v14 = vsel %vm615_vm10, %v1588_v3, %v1589_v52  ;;  %1901 = vmatpush.bf16.msra.mxu1 %v2874_v45  ;;  %v2873_v51 = vld [vmem:[%s3977_s8 + $0x30] sm:$0xff]  ;;  %v2879_v46 = vld [vmem:[%s3977_s8 + $0x60] sm:$0xff]  ;;  %v2876_v60 = vld [vmem:[%s3977_s8 + $0x48] sm:$0xff] }
 0x36c   : > { %v1677_v9 = vpack.c.bf16 %v1599_v20, %v1598_v8  ;;  %v3021_v11 = vpack.i.bf16 %v1579_v63, %v1578_v61  ;;  %v1597_v10 = vmul.f32 %v1571_v2, %v3366_v62  ;;  %v1591_v15 = vsel %vm615_vm10, %v1589_v52, %v1588_v3  ;;  %1916 = vmatpush.bf16.msra.mxu3 %v2881_v42  ;;  %v2887_v52 = vld [vmem:[%s3977_s8 + $0xa0] sm:$0xff]  ;;  %v2885_v59 = vld [vmem:[%s3977_s8 + $0x90] sm:$0xff]  ;;  %v2870_v12 = vld [vmem:[%s3977_s8 + $0x18] sm:$0xff] }
 0x36d   : > { %3027 = vrot.lane.b32.xlu2 %v3026_v1, %s3126_s27  ;;  %v3741_v16 = vsel %vm543_vm12, %v1562_v5, %v1563_v48  ;;  %v3745_v17 = vsel %vm543_vm12, %v1563_v48, %v1562_v5  ;;  %v1592_v22 = vmul.f32 %v1590_v14, %v3271_v44  ;;  %v1593_v23 = vmul.f32 %v1591_v15, %v3279_v55  ;;  %v2878_v48 = vld [vmem:[%s3977_s8 + $0x58] sm:$0xff]  ;;  %v2871_v58 = vld [vmem:[%s3977_s8 + $0x20] sm:$0xff]  ;;  %v2884_v8 = vld [vmem:[%s3977_s8 + $0x88] sm:$0xff] }
 0x36e   : > { %2732 = vmatmul.msk.bf16.vlgmr.msrb.gmra.mxu0 %vm1656_vm15, %v1677_v9  ;;  %3022 = vrot.lane.b32.xlu0 %v3021_v11, %s3125_s19  ;;  %v1594_v21 = vmul.f32 %v3741_v16, %v3267_v37  ;;  %v1595_v30 = vmul.f32 %v3745_v17, %v3287_v4  ;;  %v3041_v29 = vpack.i.bf16 %v1597_v10, %v1596_v13  ;;  %v2875_v20 = vld [vmem:[%s3977_s8 + $0x40] sm:$0xff]  ;;  %v2869_v61 = vld [vmem:[%s3977_s8 + $0x10] sm:$0xff] }
 0x36f   : > { %v3031_v28 = vpack.i.bf16 %v1593_v23, %v1592_v22  ;;  %v1572_v31 = vmul.f32 %v1571_v2, %v3259_v33  ;;  %v1573_v32 = vmul.f32 %v1570_v0, %v3261_v34  ;;  %1930 = vmatpush.bf16.msrb.mxu2 %v2889_v43  ;;  %1902 = vmatpush.bf16.msra.mxu1 %v2873_v51  ;;  %v2883_v63 = vld [vmem:[%s3977_s8 + $0x80] sm:$0xff]  ;;  %v2868_v0 = vld [vmem:[%s3977_s8 + $0x8] sm:$0xff] }
 0x370   : > { %v3036_v25 = vpack.i.bf16 %v1595_v30, %v1594_v21  ;;  %1917 = vmatpush.bf16.msra.mxu3 %v2880_v47  ;;  %v2867_v1 = vld [vmem:[%s3977_s8] sm:$0xff] }
 0x371   : > { %v3046_v39 = vpack.i.bf16 %v1573_v32, %v1572_v31 }
 0x372   : > { %3042 = vrot.lane.b32.xlu1 %v3041_v29, %s3127_s28 }
 0x373   : > { %1931 = vmatpush.bf16.msrb.mxu2 %v2888_v50  ;;  %1903 = vmatpush.bf16.msra.mxu1 %v2872_v56 }
 0x374   : > { %1918 = vmatpush.bf16.msra.mxu3 %v2879_v46 }
 0x375   : > { %3037 = vrot.lane.b32.xlu2 %v3036_v25, %s3123_s17 }
 0x376   : > { %3032 = vrot.lane.b32.xlu0 %v3031_v28, %s3128_s15 }
 0x377   : > { %1932 = vmatpush.bf16.msrb.mxu2 %v2887_v52  ;;  %1904 = vmatpush.bf16.msra.mxu1 %v2871_v58 }
 0x378   : > { %1919 = vmatpush.bf16.msra.mxu3 %v2878_v48 }
 0x37b   : > { %1933 = vmatpush.bf16.msrb.mxu2 %v2886_v49  ;;  %1905 = vmatpush.bf16.msra.mxu1 %v2870_v12  ;;  %v1566_v49 = vmul.f32 %v3745_v17, %v3311_v19 }
 0x37c   : > { %1920 = vmatpush.bf16.msra.mxu3 %v2877_v57  ;;  %v1567_v57 = vmul.f32 %v3741_v16, %v3320_v24 }
 0x37e   : > { %3047 = vrot.lane.b32.xlu0 %v3046_v39, %s3129_s16 }
 0x37f   : > { %1934 = vmatpush.bf16.msrb.mxu2 %v2885_v59  ;;  %1906 = vmatpush.bf16.msra.mxu1 %v2869_v61 }
 0x380   : > { %1921 = vmatpush.bf16.msra.mxu3 %v2876_v60 }
 0x383   : > { %1935 = vmatpush.bf16.msrb.mxu2 %v2884_v8  ;;  %1907 = vmatpush.bf16.msra.mxu1 %v2868_v0 }
 0x384   : > { %1922 = vmatpush.bf16.msra.mxu3 %v2875_v20 }
 0x387   : > { %1936 = vmatpush.bf16.msrb.mxu2 %v2883_v63  ;;  %1908 = vmatpush.bf16.msra.mxu1 %v2867_v1  ;;  %v3096_v63 = vld [vmem:[%s3978_s9] ss:$0 sm:$0xff] }
 0x3c7   : > { %v3028_v2 = vpop.permute.xlu2 %3027 }
 0x3c8   : > { %v3030_v13 = vunpack.i.h.bf16 %v3028_v2  ;;  %v3029_v10 = vunpack.i.l.bf16 %v3028_v2 }
 0x3cf   : > { %v3038_v14 = vpop.permute.xlu2 %3037 }
 0x3d0   : > { %v3040_v25 = vunpack.i.h.bf16 %v3038_v14  ;;  %v3039_v28 = vunpack.i.l.bf16 %v3038_v14 }
 0x3dc   : > { %v3018_v3 = vpop.permute.xlu1 %3017 }
 0x3dd   : > { %v3020_v29 = vunpack.i.h.bf16 %v3018_v3  ;;  %v3019_v22 = vunpack.i.l.bf16 %v3018_v3 }
 0x3e0   : > { %v3023_v5 = vpop.permute.xlu0 %3022 }
 0x3e1   : > { %v3025_v9 = vunpack.i.h.bf16 %v3023_v5  ;;  %v3024_v11 = vunpack.i.l.bf16 %v3023_v5 }
 0x3e3   : > { %v1663_v15 = vsel %vm1661_vm1, %v3025_v9, %v3030_v13  ;;  %v1662_v21 = vsel %vm1661_vm1, %v3024_v11, %v3029_v10 }
 0x3e4   : > { %v3043_v30 = vpop.permute.xlu1 %3042  ;;  %v1664_v41 = vsel %vm708_vm13, %v1662_v21, %v3019_v22  ;;  %v1665_v42 = vsel %vm708_vm13, %v1663_v15, %v3020_v29 }
 0x3e5   : > { %v3045_v39 = vunpack.i.h.bf16 %v3043_v30  ;;  %v3044_v40 = vunpack.i.l.bf16 %v3043_v30 }
 0x3e8   : > { %v3033_v23 = vpop.permute.xlu0 %3032 }
 0x3e9   : > { %v3035_v31 = vunpack.i.h.bf16 %v3033_v23  ;;  %v3034_v32 = vunpack.i.l.bf16 %v3033_v23 }
 0x3eb   : > { %v1667_v43 = vsel %vm1666_vm2, %v1664_v41, %v3034_v32  ;;  %v1668_v45 = vsel %vm1666_vm2, %v1665_v42, %v3035_v31  ;;  %v1669_v47 = vsel %vm475_vm0, %v3034_v32, %v3039_v28  ;;  %v1670_v50 = vsel %vm475_vm0, %v3035_v31, %v3040_v25  ;;  %v1952_v3 = vpop.f32.mrf.mxu0 }
 0x3ec   : > { %v1675_v51 = vpack.c.bf16 %v1668_v45, %v1667_v43  ;;  %v1672_v46 = vsel %vm1671_vm3, %v1669_v47, %v3044_v40  ;;  %v1673_v52 = vsel %vm1671_vm3, %v1670_v50, %v3045_v39  ;;  %vm2199_vm0 = vcmask 1043456  }
 0x3ed   : > { %v1676_v48 = vpack.c.bf16 %v1673_v52, %v1672_v46 }
 0x3ee   : > { %1923 = vmatmul.bf16.vlgmr.msra.gmra.mxu3 %v1675_v51 }
 0x3ef   : > { %1937 = vmatmul.bf16.vlgmr.msrb.gmra.mxu2 %v1676_v48 }
 0x3f0   : > { %v3048_v56 = vpop.permute.xlu0 %3047 }
 0x3f1   : > { %v3050_v58 = vunpack.i.h.bf16 %v3048_v56  ;;  %v3049_v59 = vunpack.i.l.bf16 %v3048_v56 }
 0x3f3   : > { %v1657_v60 = vsel %vm1656_vm15, %v1566_v49, %v3049_v59  ;;  %v1658_v12 = vsel %vm1656_vm15, %v1567_v57, %v3050_v58  ;;  %v1954_v30 = vpop.f32.mrf.mxu0 }
 0x3f4   : > { %v1659_v8 = vsel %vm711_vm14, %v1657_v60, %v3024_v11  ;;  %v1660_v20 = vsel %vm711_vm14, %v1658_v12, %v3025_v9 }
 0x3f5   : > { %v1674_v61 = vpack.c.bf16 %v1660_v20, %v1659_v8 }
 0x3f7   : > { %1909 = vmatmul.bf16.vlgmr.msra.gmra.mxu1 %v1674_v61 }
 0x471   : > { %v1924_v17 = vpop.f32.mrf.mxu3 }
 0x472   : > { %v1938_v16 = vpop.f32.mrf.mxu2 }
 0x474   : > { %v1910_v0 = vpop.f32.mrf.mxu1 }
 0x475   : > { %v1911_v1 = vadd.f32 %v3096_v63, %v1910_v0 }
 0x477   : > { %v1925_v2 = vadd.f32 %v1924_v17, %v1911_v1 }
 0x479   : > { %v1939_v5 = vadd.f32 %v1938_v16, %v1925_v2  ;;  %v1926_v15 = vpop.f32.mrf.mxu3  ;;  %v2109_v2 = vld [vmem:[%s3979_s10 + $0x68] sm:$0xf] }
 0x47a   : > { %v1940_v21 = vpop.f32.mrf.mxu2 }
 0x47b   : > { %v1953_v14 = vadd.f32 %v1952_v3, %v1939_v5  ;;  %v2900_v5 = vld [vmem:[%s3979_s10 + $0x30] sm:$0xff] }
 0x47c   : > { %v1912_v13 = vpop.f32.mrf.mxu1 }
 0x47d   : > { %v1913_v10 = vadd.f32 %v3096_v63, %v1912_v13  ;;  %v1957_v29 = vmax.f32 %v1953_v14, 0.0  ;;  %v2899_v13 = vld [vmem:[%s3979_s10 + $0x28] sm:$0xff]  ;;  %v2904_v14 = vld [vmem:[%s3979_s10 + $0x50] sm:$0xff] }
 0x47f   : > { %v1927_v11 = vadd.f32 %v1926_v15, %v1913_v10  ;;  %v1985_v25 = vrot.slane %v1957_v29, 1  ;;  %v1965_v31 = vrot.slane %v1957_v29, 4  ;;  %v1959_v40 = vrot.slane %v1957_v29, 3  ;;  %v2905_v10 = vld [vmem:[%s3979_s10 + $0x58] sm:$0xff]  ;;  %v2898_v15 = vld [vmem:[%s3979_s10 + $0x20] sm:$0xff] }
 0x480   : > { %v1971_v49 = vrot.slane %v1957_v29, 5  ;;  %v1977_v63 = vrot.slane %v1957_v29, 7  ;;  %v1983_v16 = vmul.f32 %v1957_v29, %v3422_v27  ;;  %v2906_v27 = vld [vmem:[%s3979_s10 + $0x60] sm:$0xff]  ;;  %v2895_v29 = vld [vmem:[%s3979_s10 + $0x8] sm:$0xff] }
 0x481   : > { %v1941_v9 = vadd.f32 %v1940_v21, %v1927_v11  ;;  %v2903_v11 = vld [vmem:[%s3979_s10 + $0x48] sm:$0xff]  ;;  %v2897_v21 = vld [vmem:[%s3979_s10 + $0x18] sm:$0xff] }
 0x483   : > { %v1955_v22 = vadd.f32 %v1954_v30, %v1941_v9  ;;  %v2902_v9 = vld [vmem:[%s3979_s10 + $0x40] sm:$0xff]  ;;  %v2896_v30 = vld [vmem:[%s3979_s10 + $0x10] sm:$0xff] }
 0x485   : > { %v1958_v23 = vmax.f32 %v1955_v22, 0.0  ;;  %v2894_v22 = vld [vmem:[%s3979_s10] sm:$0xff] }
 0x487   : > { %v1986_v28 = vrot.slane %v1958_v23, 1  ;;  %v1966_v32 = vrot.slane %v1958_v23, 4  ;;  %v1960_v39 = vrot.slane %v1958_v23, 3  ;;  %v1972_v41 = vrot.slane %v1958_v23, 5 }
 0x489   : > { %v1987_v42 = vsel %vm615_vm10, %v1985_v25, %v1986_v28  ;;  %v1988_v43 = vsel %vm615_vm10, %v1986_v28, %v1985_v25  ;;  %v1967_v45 = vsel %vm560_vm9, %v1965_v31, %v1966_v32  ;;  %v1968_v47 = vsel %vm560_vm9, %v1966_v32, %v1965_v31 }
 0x48a   : > { %v1989_v50 = vmul.f32 %v1987_v42, %v3271_v44  ;;  %v1990_v51 = vmul.f32 %v1988_v43, %v3279_v55  ;;  %v1993_v46 = vmul.f32 %v1967_v45, %v3292_v7  ;;  %v1994_v52 = vmul.f32 %v1968_v47, %v3366_v62 }
 0x48b   : > { %v3862_v48 = vsel %vm543_vm12, %v1959_v40, %v1960_v39  ;;  %v3866_v56 = vsel %vm543_vm12, %v1960_v39, %v1959_v40  ;;  %v1973_v7 = vsel %vm575_vm8, %v1971_v49, %v1972_v41  ;;  %v1974_v62 = vsel %vm575_vm8, %v1972_v41, %v1971_v49 }
 0x48c   : > { %v3051_v57 = vpack.i.bf16 %v1990_v51, %v1989_v50  ;;  %v3061_v58 = vpack.i.bf16 %v1994_v52, %v1993_v46  ;;  %v1991_v44 = vmul.f32 %v3862_v48, %v3267_v37  ;;  %v1992_v55 = vmul.f32 %v3866_v56, %v3287_v4 }
 0x48d   : > { %v1975_v60 = vmul.f32 %v1974_v62, %v3309_v18  ;;  %v1976_v12 = vmul.f32 %v1973_v7, %v3263_v35  ;;  %v1969_v37 = vmul.f32 %v1968_v47, %v3259_v33  ;;  %v1970_v8 = vmul.f32 %v1967_v45, %v3261_v34 }
 0x48e   : > { %3052 = vrot.lane.b32.xlu2 %v3051_v57, %s3130_s20  ;;  %3062 = vrot.lane.b32.xlu0 %v3061_v58, %s3131_s21  ;;  %v3056_v59 = vpack.i.bf16 %v1992_v55, %v1991_v44  ;;  %v1978_v4 = vrot.slane %v1958_v23, 7  ;;  %v1995_v20 = vmul.f32 %v1973_v7, %v3356_v53  ;;  %v1996_v61 = vmul.f32 %v1974_v62, %v3358_v54  ;;  %s467_s21 = scalar_lea.vmem %s3983_s14, %s2794_s26 }
 0x48f   : > { %v3076_v17 = vpack.i.bf16 %v1976_v12, %v1975_v60  ;;  %v3066_v0 = vpack.i.bf16 %v1970_v8, %v1969_v37  ;;  %v1984_v53 = vmul.f32 %v1958_v23, %v3420_v26  ;;  %v1963_v60 = vmul.f32 %v3866_v56, %v3311_v19 }
 0x490   : > { %3057 = vrot.lane.b32.xlu1 %v3056_v59, %s3126_s27  ;;  %v1979_v1 = vsel %vm590_vm11, %v1977_v63, %v1978_v4  ;;  %v1980_v35 = vsel %vm590_vm11, %v1978_v4, %v1977_v63  ;;  %v3071_v33 = vpack.i.bf16 %v1996_v61, %v1995_v20  ;;  %s3133_s27 = smov 72   ;;  %v1964_v12 = vmul.f32 %v3862_v48, %v3320_v24 }
 0x491   : > { %v1981_v34 = vmul.f32 %v1980_v35, %v3265_v36  ;;  %v1982_v18 = vmul.f32 %v1979_v1, %v3269_v38  ;;  %v3086_v6 = vpack.i.bf16 %v1984_v53, %v1983_v16  ;;  %v2901_v36 = vld [vmem:[%s3979_s10 + $0x38] sm:$0xff]  ;;  %v2167_v38 = vunpack.c.l.b16 %v2109_v2  ;;  %v2907_v16 = vld [vmem:[%s3981_s12] sm:$0x30] }
 0x492   : > { %2203 = vmatpush.bf16.msrb.mxu1 %v2901_v36  ;;  %vm2071_vm8 = vcmask 982016   ;;  %vm2249_vm9 = vcmask 1045504   ;;  %vm2245_vm10 = vcmask 97280   ;;  %vm2267_vm11 = vcmask 64512  }
 0x493   : > { %v3081_v54 = vpack.i.bf16 %v1982_v18, %v1981_v34  ;;  %v2181_v26 = vpack.c.b16 %v2167_v38, %v2167_v38 }
 0x495   : > { %v2201_v3 = vsel %vm2199_vm0, %v2181_v26, 0  ;;  %v3097_v26 = vld [vmem:[%s3980_s11] ss:$0 sm:$0xff] }
 0x496   : > { %3077 = vrot.lane.b32.xlu0 %v3076_v17, %s3129_s16  ;;  %3067 = vrot.lane.b32.xlu2 %v3066_v0, %s3132_s22 }
 0x497   : > { %2219 = vmatpush.bf16.msrb.mxu3 %v2201_v3  ;;  %2204 = vmatpush.bf16.msrb.mxu1 %v2900_v5 }
 0x498   : > { %3072 = vrot.lane.b32.xlu1 %v3071_v33, %s3124_s18 }
 0x49b   : > { %2220 = vmatpush.bf16.msrb.mxu3 %v2906_v27  ;;  %2205 = vmatpush.bf16.msrb.mxu1 %v2899_v13 }
 0x49e   : > { %3082 = vrot.lane.b32.xlu2 %v3081_v54, %s3133_s27  ;;  %v2788_v54 = vld [vmem:[%s3981_s12] sm:$0xf] }
 0x49f   : > { %2221 = vmatpush.bf16.msrb.mxu3 %v2905_v10  ;;  %2206 = vmatpush.bf16.msrb.mxu1 %v2898_v15 }
 0x4a0   : > { %3087 = vrot.lane.b32.xlu1 %v3086_v6, %s3125_s19  ;;  %v2789_v6 = vor.u32 %v2907_v16, %v2788_v54 }
 0x4a2   : > { %v2251_v2 = vsel %vm2249_vm9, %v2789_v6, 0 }
 0x4a3   : > { %2222 = vmatpush.bf16.msrb.mxu3 %v2904_v14  ;;  %2207 = vmatpush.bf16.msrb.mxu1 %v2897_v21 }
 0x4a4   : > { %2260 = vmatpush.bf16.msra.mxu0 %v2251_v2 }
 0x4a7   : > { %2223 = vmatpush.bf16.msrb.mxu3 %v2903_v11  ;;  %2208 = vmatpush.bf16.msrb.mxu1 %v2896_v30 }
 0x4ab   : > { %2224 = vmatpush.bf16.msrb.mxu3 %v2902_v9  ;;  %2209 = vmatpush.bf16.msrb.mxu1 %v2895_v29  ;;  %v3098_v9 = vld [vmem:[%s3982_s13] ss:$0 sm:$0xff] }
 0x4af   : > { %2210 = vmatpush.bf16.msrb.mxu1 %v2894_v22 }
 0x4e8   : > { %v3053_v23 = vpop.permute.xlu2 %3052 }
 0x4e9   : > { %v3055_v40 = vunpack.i.h.bf16 %v3053_v23  ;;  %v3054_v41 = vunpack.i.l.bf16 %v3053_v23 }
 0x4f0   : > { %v3068_v31 = vpop.permute.xlu2 %3067 }
 0x4f1   : > { %v3070_v49 = vunpack.i.h.bf16 %v3068_v31  ;;  %v3069_v57 = vunpack.i.l.bf16 %v3068_v31 }
 0x4f3   : > { %v2062_v4 = vsel %vm2061_vm5, %v1963_v60, %v3069_v57  ;;  %v2063_v20 = vsel %vm2061_vm5, %v1964_v12, %v3070_v49 }
 0x4f8   : > { %v3083_v8 = vpop.permute.xlu2 %3082 }
 0x4f9   : > { %v3085_v17 = vunpack.i.h.bf16 %v3083_v8  ;;  %v3084_v0 = vunpack.i.l.bf16 %v3083_v8 }
 0x500   : > { %v3063_v25 = vpop.permute.xlu0 %3062 }
 0x501   : > { %v3065_v42 = vunpack.i.h.bf16 %v3063_v25  ;;  %v3064_v43 = vunpack.i.l.bf16 %v3063_v25 }
 0x502   : > { %v3058_v28 = vpop.permute.xlu1 %3057 }
 0x503   : > { %v3060_v32 = vunpack.i.h.bf16 %v3058_v28  ;;  %v3059_v39 = vunpack.i.l.bf16 %v3058_v28 }
 0x505   : > { %v2075_v45 = vsel %vm1661_vm1, %v3055_v40, %v3060_v32  ;;  %v2074_v47 = vsel %vm1661_vm1, %v3054_v41, %v3059_v39 }
 0x506   : > { %v2077_v58 = vsel %vm2076_vm4, %v2074_v47, %v3064_v43  ;;  %v2078_v44 = vsel %vm2076_vm4, %v2075_v45, %v3065_v42 }
 0x508   : > { %v3078_v50 = vpop.permute.xlu0 %3077 }
 0x509   : > { %v3080_v55 = vunpack.i.h.bf16 %v3078_v50  ;;  %v3079_v7 = vunpack.i.l.bf16 %v3078_v50 }
 0x50a   : > { %v3073_v51 = vpop.permute.xlu1 %3072 }
 0x50b   : > { %v3075_v46 = vunpack.i.h.bf16 %v3073_v51  ;;  %v3074_v52 = vunpack.i.l.bf16 %v3073_v51  ;;  %v2064_v61 = vsel %vm1656_vm15, %v2062_v4, %v3079_v7  ;;  %v2065_v63 = vsel %vm1656_vm15, %v2063_v20, %v3080_v55 }
 0x50c   : > { %v2067_v35 = vsel %vm2066_vm7, %v2064_v61, %v3084_v0  ;;  %v2068_v24 = vsel %vm2066_vm7, %v2065_v63, %v3085_v17 }
 0x50d   : > { %v2079_v62 = vsel %vm708_vm13, %v2077_v58, %v3074_v52  ;;  %v2080_v59 = vsel %vm708_vm13, %v2078_v44, %v3075_v46 }
 0x50e   : > { %v2082_v37 = vpack.c.bf16 %v2080_v59, %v2079_v62 }
 0x510   : > { %2785 = vmatmul.msk.bf16.vlgmr.msrb.gmra.mxu3 %vm2195_vm6, %v2082_v37 }
 0x512   : > { %v3088_v1 = vpop.permute.xlu1 %3087 }
 0x513   : > { %v3090_v19 = vunpack.i.h.bf16 %v3088_v1  ;;  %v3089_v56 = vunpack.i.l.bf16 %v3088_v1 }
 0x515   : > { %v2069_v48 = vsel %vm711_vm14, %v2067_v35, %v3089_v56  ;;  %v2070_v33 = vsel %vm711_vm14, %v2068_v24, %v3090_v19 }
 0x516   : > { %v2072_v34 = vsel %vm2071_vm8, %v2069_v48, %v3054_v41  ;;  %v2073_v18 = vsel %vm2071_vm8, %v2070_v33, %v3055_v40 }
 0x517   : > { %v2081_v53 = vpack.c.bf16 %v2073_v18, %v2072_v34 }
 0x519   : > { %2211 = vmatmul.bf16.vlgmr.msrb.gmra.mxu1 %v2081_v53 }
 0x593   : > { %v2226_v36 = vpop.f32.mrf.mxu3 }
 0x596   : > { %v2212_v38 = vpop.f32.mrf.mxu1 }
 0x597   : > { %v2213_v3 = vadd.f32 %v3097_v26, %v2212_v38 }
 0x599   : > { %v2227_v5 = vadd.f32 %v2226_v36, %v2213_v3 }
 0x59b   : > { %v2228_v10 = vpop.f32.mrf.mxu3  ;;  %v2231_v15 = vmax.f32 %v2227_v5, 0.0 }
 0x59e   : > { %v2214_v27 = vpop.f32.mrf.mxu1 }
 0x59f   : > { %v2215_v13 = vadd.f32 %v3097_v26, %v2214_v27 }
 0x5a1   : > { %v2229_v14 = vadd.f32 %v2228_v10, %v2215_v13 }
 0x5a3   : > { %v2232_v11 = vmax.f32 %v2229_v14, 0.0 }
 0x5a5   : > { %v2233_v21 = vpack.c.bf16 %v2232_v11, %v2231_v15 }
 0x5a7   : > { %2790 = vmatmul.msk.bf16.vlgmr.msra.gmra.mxu0 %vm2245_vm10, %v2233_v21 }
 0x624   : > { %v2262_v30 = vpop.f32.mrf.mxu0 }
 0x625   : > { %v2263_v29 = vadd.f32 %v3098_v9, %v2262_v30 }
 0x627   : > { %2268 = vst.msk [vmem:[%s467_s21] sm:$0xff] %vm2267_vm11, %v2263_v29 }
 0x62c   : > { %v2264_v22 = vpop.f32.mrf.mxu0 }
 0x62d   : > { %v2265_v23 = vadd.f32 %v3098_v9, %v2264_v22 }
 0x62f   : > { %2269 = vst.msk [vmem:[%s467_s21 + $0x8] sm:$0xff] %vm2267_vm11, %v2265_v23 }
 0x630 PF: > { %s24_s29 = sadd.s32 1, %s3111_s29  }
 0x631   : > { %p21_p4 = scmp.ge.s32.totalorder %s24_s29, 4  }
 0x633   :  { %23 = sbr.rel (!%p21_p4) target bundleno = 1 (0x1), region = 106 }

</bundles_post_ra>
